<compile_context>
chip_gen: v5e
topology: v5e:2x2
jax: 0.10.0
libtpu: 0.0.40
codegen_flags: <defaults>
</compile_context>

<pallas_src>
import functools

import jax
import jax.numpy as jnp
from jax import lax
from jax.experimental import pallas as pl
from jax.experimental.pallas import tpu as pltpu

_EPS = 1e-5


# --------------------------------------------------------------------------------------
# Kernel
# --------------------------------------------------------------------------------------
def _clfm1_kernel(xin_ref, w1_ref, b1_ref, wf_ref, bf_ref, out_ref,
                  col1_ref, f2p_ref, *, TH, W, Cf, Cout, taps1, tapsf):
    """One (batch, row-tile) grid step.

    xin_ref : (TH+6, W+4, Cf)        halo window of the (3,2)-padded feat1 (channels minor)
    w1_ref  : (len(taps1)*Cf, Cout)  folded branch weights (tap-major rows), VMEM-resident
    b1_ref  : (1, Cout)              folded branch bias
    wf_ref  : (9*Cout, Cout)         folded final-conv weights (tap-major rows)
    bf_ref  : (1, Cout)              folded final-conv bias
    out_ref : (TH, W, Cout)
    col1_ref: VMEM (TH+2, W, len(taps1)*Cf)  stage-1 im2col scratch (matmul_dtype)
    f2p_ref : VMEM (TH+2, W+2, Cout)         feat2 rows incl. 1-row recomputed halo,
                                             1-px zero column halo (matmul_dtype)
    """
    i = pl.program_id(1)
    HH = TH + 2                      # feat2 rows produced per step (incl. 1 halo row each side)
    nt = len(taps1)

    # ---- stage 1: both separable branches + channel concat as ONE im2col matmul ----
    for t, (dy, dx) in enumerate(taps1):
        col1_ref[:, :, t * Cf:(t + 1) * Cf] = xin_ref[dy:dy + HH, dx:dx + W, :]
    slab1 = col1_ref[...].reshape(HH * W, nt * Cf)
    feat2 = jnp.dot(slab1, w1_ref[...], preferred_element_type=jnp.float32)
    feat2 = jnp.maximum(feat2 + b1_ref[...], 0.0)        # folded BN shift + ReLU, one pass

    # ---- feat2 halo buffer for the final 3x3 conv ----
    # Only the 1-px column strips are zeroed; the interior is fully overwritten every step.
    f2p_ref[:, 0:1, :] = jnp.zeros((HH, 1, Cout), f2p_ref.dtype)
    f2p_ref[:, W + 1:W + 2, :] = jnp.zeros((HH, 1, Cout), f2p_ref.dtype)
    f2p_ref[:, 1:W + 1, :] = feat2.reshape(HH, W, Cout).astype(f2p_ref.dtype)  # single cast

    # The recomputed halo rows are real feat2 rows except at the image border, where the
    # final conv's padding=1 demands zeros.
    @pl.when(i == 0)
    def _():
        f2p_ref[0:1, :, :] = jnp.zeros((1, W + 2, Cout), f2p_ref.dtype)

    @pl.when(i == pl.num_programs(1) - 1)
    def _():
        f2p_ref[HH - 1:HH, :, :] = jnp.zeros((1, W + 2, Cout), f2p_ref.dtype)

    # ---- stage 2: final 3x3 conv + BN + ReLU as a 9-tap accumulate (no col2 scratch) ----
    acc = None
    for t, (dy, dx) in enumerate(tapsf):
        slab = f2p_ref[dy:dy + TH, dx:dx + W, :].reshape(TH * W, Cout)
        part = jnp.dot(slab, wf_ref[t * Cout:(t + 1) * Cout, :],
                       preferred_element_type=jnp.float32)
        acc = part if acc is None else acc + part
    out = jnp.maximum(acc + bf_ref[...], 0.0)
    out_ref[...] = out.reshape(TH, W, Cout).astype(out_ref.dtype)


# --------------------------------------------------------------------------------------
# Parameter folding (eval-mode BatchNorm)
# --------------------------------------------------------------------------------------
def _bn_fold(params, name):
    g, b, m, v = (params[f"{name}_{k}"] for k in ("g", "b", "m", "v"))
    s = g / jnp.sqrt(v + _EPS)
    return s, b - s * m


def _fold_separable(dw, pw, s1, t1, s2, t2):
    """Fold depthwise3x3 -> BN -> pointwise1x1 -> BN into one dense conv weight + bias."""
    pw2 = pw[:, :, 0, 0]                                                # (Ch, Cf)
    dense = jnp.einsum("o,oc,c,ckl->klco", s2, pw2, s1, dw[:, 0])       # (3, 3, Cf, Ch)
    bias = s2 * (pw2 @ t1) + t2                                         # (Ch,)
    return dense, bias


# --------------------------------------------------------------------------------------
# Per-generation sizing
# --------------------------------------------------------------------------------------
def _vmem_budget_bytes():
    phys = 0
    try:
        info = pltpu.get_tpu_info()
        for attr in ("vmem_capacity_bytes", "vmem_bytes", "vmem_size_bytes"):
            v = getattr(info, attr, None)
            if v:
                phys = int(v)
                break
    except Exception:
        phys = 0
    if phys <= 0:
        phys = 64 * 1024 * 1024          # conservative default = v7x per-TC VMEM
    # Leave headroom below physical: v7x (64 MiB) -> ~51 MiB, v5e/v6e (128 MiB) -> ~102 MiB.
    return max(32 * 1024 * 1024, min(int(phys * 0.8), 110 * 1024 * 1024))


def _pick_row_tile(H2, W2, Cf, Cout, n_taps, ebytes, budget):
    """Largest row tile (divisor of H2, multiple of 8 or full) whose working set fits VMEM."""
    def need(th):
        xin = 2 * (th + 6) * (W2 + 4) * Cf * ebytes        # double-buffered input window
        col1 = (th + 2) * W2 * n_taps * Cf * ebytes        # stage-1 im2col scratch
        f2p = (th + 2) * (W2 + 2) * Cout * ebytes          # feat2 + halo scratch
        outb = 2 * th * W2 * Cout * 4                      # double-buffered output block
        wts = (n_taps * Cf + 9 * Cout) * Cout * ebytes * 2
        return xin + col1 + f2p + outb + wts + (4 << 20)   # slack for acc / regalloc
    cands = [d for d in range(1, H2 + 1) if H2 % d == 0 and (d % 8 == 0 or d == H2)]
    best = min(cands)
    for d in sorted(cands):
        if need(d) <= budget:
            best = d
    return best


# --------------------------------------------------------------------------------------
# Forward wrapper
# --------------------------------------------------------------------------------------
def clfm1_forward(x_skip, x_low, params, *, matmul_dtype=jnp.bfloat16, row_tile=None):
    """CLFM1 forward. x_skip = inputs[-2]: (N, Cin-Cout, 2H, 2W); x_low = inputs[-1]: (N, Cin, H, W)."""
    N, Cin, H, W = x_low.shape
    Cout = params["up_w"].shape[1]
    Ch = Cout // 2
    H2, W2 = 2 * H, 2 * W

    # ----- XLA glue: ConvTranspose2d(2, stride=2) + channel concat -----
    # TODO(synk): the 2x2/stride-2 transposed-conv pixel interleave (depth-to-space) and the
    # NCHW<->NHWC transposes stay as thin XLA glue; doing them in-kernel needs a strided-sublane
    # scatter / lane<->sublane relayout that is not worth the Mosaic lowering risk here.
    up = jnp.einsum("nihw,iokl->nohkwl", x_low, params["up_w"],
                    precision=lax.Precision.HIGHEST).reshape(N, Cout, H2, W2)
    up = up + params["up_b"][None, :, None, None]
    feat1 = jnp.concatenate([up, x_skip], axis=1)                       # (N, Cf, 2H, 2W)
    Cf = feat1.shape[1]
    assert Cf == params["d1_dw"].shape[0], "skip + upsampled channels must equal in_channels"

    # ----- fold both separable branches (+ their concat) into one (17*Cf, Cout) matrix -----
    s11, t11 = _bn_fold(params, "d1_bn1"); s12, t12 = _bn_fold(params, "d1_bn2")
    s21, t21 = _bn_fold(params, "d2_bn1"); s22, t22 = _bn_fold(params, "d2_bn2")
    d1_dense, d1_bias = _fold_separable(params["d1_dw"], params["d1_pw"], s11, t11, s12, t12)
    d2_dense, d2_bias = _fold_separable(params["d2_dw"], params["d2_pw"], s21, t21, s22, t22)

    off1 = {(1 + ki, 1 + kj): (ki, kj) for ki in range(3) for kj in range(3)}  # dil 1, pad 2
    off2 = {(2 * ki, 2 * kj): (ki, kj) for ki in range(3) for kj in range(3)}  # dil 2, pad 2
    taps1 = tuple(sorted(set(off1) | set(off2)))                               # 17 unique taps
    blocks = []
    for dy, dx in taps1:
        blk = jnp.zeros((Cf, Cout), jnp.float32)
        if (dy, dx) in off1:
            blk = blk.at[:, :Ch].set(d1_dense[off1[dy, dx]])
        if (dy, dx) in off2:
            blk = blk.at[:, Ch:].set(d2_dense[off2[dy, dx]])
        blocks.append(blk)
    w1_mat = jnp.concatenate(blocks, axis=0).astype(matmul_dtype)       # (17*Cf, Cout)
    b1_vec = jnp.concatenate([d1_bias, d2_bias]).reshape(1, Cout).astype(jnp.float32)

    # ----- fold final Conv3x3 + BN -----
    sf, tf = _bn_fold(params, "f_bn")
    wf_mat = jnp.einsum("o,ockl->klco", sf, params["f_w"]).reshape(9 * Cout, Cout)
    wf_mat = wf_mat.astype(matmul_dtype)
    bf_vec = tf.reshape(1, Cout).astype(jnp.float32)
    tapsf = tuple((ki, kj) for ki in range(3) for kj in range(3))

    # ----- per-generation row tile + VMEM budget -----
    n_taps = len(taps1)
    ebytes = jnp.dtype(matmul_dtype).itemsize
    budget = _vmem_budget_bytes()
    TH = row_tile if row_tile is not None else _pick_row_tile(H2, W2, Cf, Cout, n_taps,
                                                              ebytes, budget)
    assert H2 % TH == 0, "row tile must divide the output height"
    n_tiles = H2 // TH

    # Pad rows by 3 (2 for the dilation-2 taps + 1 for the recomputed feat2 halo row) and cols
    # by 2, then materialize per-tile halo windows so plain Blocked BlockSpecs (auto double-
    # buffered) can be used; the (TH+6)/TH HBM duplication is the price for not hand-rolling DMA.
    xpad = jnp.pad(jnp.transpose(feat1, (0, 2, 3, 1)),
                   ((0, 0), (3, 3), (2, 2), (0, 0))).astype(matmul_dtype)
    windows = jnp.stack([xpad[:, i * TH:i * TH + TH + 6] for i in range(n_tiles)], axis=1)
    # windows: (N, n_tiles, TH+6, W2+4, Cf)

    kernel = functools.partial(_clfm1_kernel, TH=TH, W=W2, Cf=Cf, Cout=Cout,
                               taps1=taps1, tapsf=tapsf)

    # Note: when Cout < 128 at production, a lane-dense (N, H2, W2*Cout) out_shape / transposed
    # GEMM would avoid masked output stores; skipped here (minor-dim-merging reshape is a
    # Mosaic lowering risk).  At Cout >= 128 the current stores are already lane-dense.
    out_nhwc = pl.pallas_call(
        kernel,
        out_shape=jax.ShapeDtypeStruct((N, H2, W2, Cout), jnp.float32),
        grid_spec=pltpu.PrefetchScalarGridSpec(
            num_scalar_prefetch=0,
            grid=(N, n_tiles),
            in_specs=[
                pl.BlockSpec((None, None, TH + 6, W2 + 4, Cf),
                             lambda n, i: (n, i, 0, 0, 0)),
                pl.BlockSpec((n_taps * Cf, Cout), lambda n, i: (0, 0)),   # resident weights
                pl.BlockSpec((1, Cout), lambda n, i: (0, 0)),
                pl.BlockSpec((9 * Cout, Cout), lambda n, i: (0, 0)),
                pl.BlockSpec((1, Cout), lambda n, i: (0, 0)),
            ],
            out_specs=pl.BlockSpec((None, TH, W2, Cout), lambda n, i: (n, i, 0, 0)),
            scratch_shapes=[
                pltpu.VMEM((TH + 2, W2, n_taps * Cf), matmul_dtype),      # col1
                pltpu.VMEM((TH + 2, W2 + 2, Cout), matmul_dtype),         # feat2 + halo
            ],
        ),
        compiler_params=pltpu.CompilerParams(
            dimension_semantics=("parallel", "parallel"),
            vmem_limit_bytes=budget,
        ),
    )(windows, w1_mat, b1_vec, wf_mat, bf_vec)

    return jnp.transpose(out_nhwc, (0, 3, 1, 2))            # back to NCHW


# --------------------------------------------------------------------------------------
# Pure-JAX reference (mirrors the PyTorch ops one-by-one, eval-mode BatchNorm)
# --------------------------------------------------------------------------------------
def _reference(x_skip, x_low, params):
    dn = ("NCHW", "OIHW", "NCHW")
    hp = lax.Precision.HIGHEST

    def bn(z, name):
        g, b, m, v = (params[f"{name}_{k}"] for k in ("g", "b", "m", "v"))
        inv = 1.0 / jnp.sqrt(v + _EPS)
        return (z - m[None, :, None, None]) * (g * inv)[None, :, None, None] \
            + b[None, :, None, None]

    # ConvTranspose2d(k=2, s=2) == conv(lhs_dilation=2, pad=k-1, flipped kernel, I/O swapped)
    w_t = jnp.transpose(jnp.flip(params["up_w"], axis=(2, 3)), (1, 0, 2, 3))
    up = lax.conv_general_dilated(x_low, w_t, (1, 1), [(1, 1), (1, 1)],
                                  lhs_dilation=(2, 2), dimension_numbers=dn, precision=hp)
    up = up + params["up_b"][None, :, None, None]
    feat1 = jnp.concatenate([up, x_skip], axis=1)
    Cf = feat1.shape[1]

    def separable(x, pre, dil):
        y = lax.conv_general_dilated(x, params[f"{pre}_dw"], (1, 1),
                                     [(dil, dil), (dil, dil)], rhs_dilation=(dil, dil),
                                     dimension_numbers=dn, feature_group_count=Cf,
                                     precision=hp)
        y = bn(y, f"{pre}_bn1")
        z = lax.conv_general_dilated(y, params[f"{pre}_pw"], (1, 1), [(0, 0), (0, 0)],
                                     dimension_numbers=dn, precision=hp)
        z = bn(z, f"{pre}_bn2")
        return jnp.maximum(z, 0.0)

    feat2 = jnp.concatenate([separable(feat1, "d1", 1), separable(feat1, "d2", 2)], axis=1)
    y = lax.conv_general_dilated(feat2, params["f_w"], (1, 1), [(1, 1), (1, 1)],
                                 dimension_numbers=dn, precision=hp)
    y = bn(y, "f_bn")
    return jnp.maximum(y, 0.0)


# --------------------------------------------------------------------------------------
# Parameter init + demo
# --------------------------------------------------------------------------------------
def init_params(key, in_channels, out_channels):
    Cf, Co = in_channels, out_channels
    Ch = Co // 2
    keys = iter(jax.random.split(key, 32))

    def nrm(shape, scale=0.1):
        return scale * jax.random.normal(next(keys), shape, jnp.float32)

    def bn(name, c, p):
        p[f"{name}_g"] = 1.0 + nrm((c,))
        p[f"{name}_b"] = nrm((c,))
        p[f"{name}_m"] = nrm((c,))
        p[f"{name}_v"] = jax.random.uniform(next(keys), (c,), jnp.float32, 0.5, 1.5)

    p = {
        "up_w": nrm((Cf, Co, 2, 2)),       # ConvTranspose2d weight (in, out, 2, 2)
        "up_b": nrm((Co,)),
        "d1_dw": nrm((Cf, 1, 3, 3)),       # depthwise, dilation 1
        "d1_pw": nrm((Ch, Cf, 1, 1)),
        "d2_dw": nrm((Cf, 1, 3, 3)),       # depthwise, dilation 2
        "d2_pw": nrm((Ch, Cf, 1, 1)),
        "f_w": nrm((Co, Co, 3, 3)),        # final 3x3 conv
    }
    for name, c in (("d1_bn1", Cf), ("d1_bn2", Ch),
                    ("d2_bn1", Cf), ("d2_bn2", Ch), ("f_bn", Co)):
        bn(name, c, p)
    return p


if __name__ == "__main__":
    key = jax.random.PRNGKey(0)
    kx1, kx2, kp = jax.random.split(key, 3)

    N, in_ch, out_ch = 2, 8, 4                        # CLFM1(in_channels=8, out_channels=4)
    H = W = 8                                         # low-res input -> 16x16 output
    x_low = jax.random.normal(kx1, (N, in_ch, H, W), jnp.float32)                     # inputs[-1]
    x_skip = jax.random.normal(kx2, (N, in_ch - out_ch, 2 * H, 2 * W), jnp.float32)   # inputs[-2]
    params = init_params(kp, in_ch, out_ch)

    ref = jax.block_until_ready(_reference(x_skip, x_low, params))

    # f32 MXU path (tight check against the op-by-op reference); row_tile=8 exercises the
    # row-tiled grid (2 tiles x 2 images).
    fwd_f32 = jax.jit(functools.partial(clfm1_forward, matmul_dtype=jnp.float32, row_tile=8))
    out_f32 = jax.block_until_ready(fwd_f32(x_skip, x_low, params))
    assert out_f32.shape == (N, out_ch, 2 * H, 2 * W)
    err32 = float(jnp.max(jnp.abs(out_f32 - ref)))
    assert err32 < 2e-3, f"f32 path max abs diff {err32}"

    # bf16 production path (bf16 operands / scratch, f32 accumulation); loose check.
    fwd_bf16 = jax.jit(functools.partial(clfm1_forward, matmul_dtype=jnp.bfloat16, row_tile=8))
    out_bf16 = jax.block_until_ready(fwd_bf16(x_skip, x_low, params))
    assert out_bf16.shape == (N, out_ch, 2 * H, 2 * W)
    err16 = float(jnp.max(jnp.abs(out_bf16 - ref)))
    assert err16 < 0.15, f"bf16 path max abs diff {err16}"

    print("KERNEL_OK")
</pallas_src>

<mosaic_0001>
module attributes {stable_mosaic.version = 11 : i64} {
  func.func @_clfm1_kernel(%arg0: i32, %arg1: i32, %arg2: memref<1x1x14x20x8xf32, #tpu.memory_space<vmem>>, %arg3: memref<136x4xf32, #tpu.memory_space<vmem>>, %arg4: memref<1x4xf32, #tpu.memory_space<vmem>>, %arg5: memref<36x4xf32, #tpu.memory_space<vmem>>, %arg6: memref<1x4xf32, #tpu.memory_space<vmem>>, %arg7: memref<1x8x16x4xf32, #tpu.memory_space<vmem>>, %arg8: memref<10x16x136xf32, #tpu.memory_space<vmem>>, %arg9: memref<10x18x4xf32, #tpu.memory_space<vmem>>) attributes {dimension_semantics = [#tpu.dimension_semantics<parallel>, #tpu.dimension_semantics<parallel>], iteration_bounds = array<i64: 2, 2>, scalar_prefetch = 0 : i64, scratch_operands = 2 : i64, tpu.core_type = #tpu.core_type<tc>, window_params = [{transform_indices = @transform_0, window_bounds = array<i64: 1, 1, 14, 20, 8>}, {pipeline_mode = #tpu.pipeline_mode<synchronous>, transform_indices = @transform_1, window_bounds = array<i64: 136, 4>}, {pipeline_mode = #tpu.pipeline_mode<synchronous>, transform_indices = @transform_2, window_bounds = array<i64: 1, 4>}, {pipeline_mode = #tpu.pipeline_mode<synchronous>, transform_indices = @transform_3, window_bounds = array<i64: 36, 4>}, {pipeline_mode = #tpu.pipeline_mode<synchronous>, transform_indices = @transform_4, window_bounds = array<i64: 1, 4>}, {transform_indices = @transform_5, window_bounds = array<i64: 1, 8, 16, 4>}]} {
    %c0 = arith.constant 0 : index
    %c0_0 = arith.constant 0 : index
    %c0_1 = arith.constant 0 : index
    %c0_2 = arith.constant 0 : index
    %c0_3 = arith.constant 0 : index
    %0 = vector.load %arg2[%c0, %c0_0, %c0_1, %c0_2, %c0_3] : memref<1x1x14x20x8xf32, #tpu.memory_space<vmem>>, vector<1x1x10x16x8xf32>
    %1 = vector.shape_cast %0 : vector<1x1x10x16x8xf32> to vector<10x16x8xf32>
    %c0_4 = arith.constant 0 : index
    %c0_5 = arith.constant 0 : index
    %c0_6 = arith.constant 0 : index
    %2 = vector.load %arg8[%c0_4, %c0_5, %c0_6] : memref<10x16x136xf32, #tpu.memory_space<vmem>>, vector<10x16x8xf32>
    tpu.vector_store %arg8[%c0_4, %c0_5, %c0_6], %1 {strides = array<i32>} : memref<10x16x136xf32, #tpu.memory_space<vmem>>, vector<10x16x8xf32>,
    %c0_7 = arith.constant 0 : index
    %c0_8 = arith.constant 0 : index
    %c0_9 = arith.constant 0 : index
    %c2 = arith.constant 2 : index
    %c0_10 = arith.constant 0 : index
    %3 = vector.load %arg2[%c0_7, %c0_8, %c0_9, %c2, %c0_10] : memref<1x1x14x20x8xf32, #tpu.memory_space<vmem>>, vector<1x1x10x16x8xf32>
    %4 = vector.shape_cast %3 : vector<1x1x10x16x8xf32> to vector<10x16x8xf32>
    %c0_11 = arith.constant 0 : index
    %c0_12 = arith.constant 0 : index
    %c8 = arith.constant 8 : index
    %5 = vector.load %arg8[%c0_11, %c0_12, %c8] : memref<10x16x136xf32, #tpu.memory_space<vmem>>, vector<10x16x8xf32>
    tpu.vector_store %arg8[%c0_11, %c0_12, %c8], %4 {strides = array<i32>} : memref<10x16x136xf32, #tpu.memory_space<vmem>>, vector<10x16x8xf32>,
    %c0_13 = arith.constant 0 : index
    %c0_14 = arith.constant 0 : index
    %c0_15 = arith.constant 0 : index
    %c4 = arith.constant 4 : index
    %c0_16 = arith.constant 0 : index
    %6 = vector.load %arg2[%c0_13, %c0_14, %c0_15, %c4, %c0_16] : memref<1x1x14x20x8xf32, #tpu.memory_space<vmem>>, vector<1x1x10x16x8xf32>
    %7 = vector.shape_cast %6 : vector<1x1x10x16x8xf32> to vector<10x16x8xf32>
    %c0_17 = arith.constant 0 : index
    %c0_18 = arith.constant 0 : index
    %c16 = arith.constant 16 : index
    %8 = vector.load %arg8[%c0_17, %c0_18, %c16] : memref<10x16x136xf32, #tpu.memory_space<vmem>>, vector<10x16x8xf32>
    tpu.vector_store %arg8[%c0_17, %c0_18, %c16], %7 {strides = array<i32>} : memref<10x16x136xf32, #tpu.memory_space<vmem>>, vector<10x16x8xf32>,
    %c0_19 = arith.constant 0 : index
    %c0_20 = arith.constant 0 : index
    %c1 = arith.constant 1 : index
    %c1_21 = arith.constant 1 : index
    %c0_22 = arith.constant 0 : index
    %9 = vector.load %arg2[%c0_19, %c0_20, %c1, %c1_21, %c0_22] : memref<1x1x14x20x8xf32, #tpu.memory_space<vmem>>, vector<1x1x10x16x8xf32>
    %10 = vector.shape_cast %9 : vector<1x1x10x16x8xf32> to vector<10x16x8xf32>
    %c0_23 = arith.constant 0 : index
    %c0_24 = arith.constant 0 : index
    %c24 = arith.constant 24 : index
    %11 = vector.load %arg8[%c0_23, %c0_24, %c24] : memref<10x16x136xf32, #tpu.memory_space<vmem>>, vector<10x16x8xf32>
    tpu.vector_store %arg8[%c0_23, %c0_24, %c24], %10 {strides = array<i32>} : memref<10x16x136xf32, #tpu.memory_space<vmem>>, vector<10x16x8xf32>,
    %c0_25 = arith.constant 0 : index
    %c0_26 = arith.constant 0 : index
    %c1_27 = arith.constant 1 : index
    %c2_28 = arith.constant 2 : index
    %c0_29 = arith.constant 0 : index
    %12 = vector.load %arg2[%c0_25, %c0_26, %c1_27, %c2_28, %c0_29] : memref<1x1x14x20x8xf32, #tpu.memory_space<vmem>>, vector<1x1x10x16x8xf32>
    %13 = vector.shape_cast %12 : vector<1x1x10x16x8xf32> to vector<10x16x8xf32>
    %c0_30 = arith.constant 0 : index
    %c0_31 = arith.constant 0 : index
    %c32 = arith.constant 32 : index
    %14 = vector.load %arg8[%c0_30, %c0_31, %c32] : memref<10x16x136xf32, #tpu.memory_space<vmem>>, vector<10x16x8xf32>
    tpu.vector_store %arg8[%c0_30, %c0_31, %c32], %13 {strides = array<i32>} : memref<10x16x136xf32, #tpu.memory_space<vmem>>, vector<10x16x8xf32>,
    %c0_32 = arith.constant 0 : index
    %c0_33 = arith.constant 0 : index
    %c1_34 = arith.constant 1 : index
    %c3 = arith.constant 3 : index
    %c0_35 = arith.constant 0 : index
    %15 = vector.load %arg2[%c0_32, %c0_33, %c1_34, %c3, %c0_35] : memref<1x1x14x20x8xf32, #tpu.memory_space<vmem>>, vector<1x1x10x16x8xf32>
    %16 = vector.shape_cast %15 : vector<1x1x10x16x8xf32> to vector<10x16x8xf32>
    %c0_36 = arith.constant 0 : index
    %c0_37 = arith.constant 0 : index
    %c40 = arith.constant 40 : index
    %17 = vector.load %arg8[%c0_36, %c0_37, %c40] : memref<10x16x136xf32, #tpu.memory_space<vmem>>, vector<10x16x8xf32>
    tpu.vector_store %arg8[%c0_36, %c0_37, %c40], %16 {strides = array<i32>} : memref<10x16x136xf32, #tpu.memory_space<vmem>>, vector<10x16x8xf32>,
    %c0_38 = arith.constant 0 : index
    %c0_39 = arith.constant 0 : index
    %c2_40 = arith.constant 2 : index
    %c0_41 = arith.constant 0 : index
    %c0_42 = arith.constant 0 : index
    %18 = vector.load %arg2[%c0_38, %c0_39, %c2_40, %c0_41, %c0_42] : memref<1x1x14x20x8xf32, #tpu.memory_space<vmem>>, vector<1x1x10x16x8xf32>
    %19 = vector.shape_cast %18 : vector<1x1x10x16x8xf32> to vector<10x16x8xf32>
    %c0_43 = arith.constant 0 : index
    %c0_44 = arith.constant 0 : index
    %c48 = arith.constant 48 : index
    %20 = vector.load %arg8[%c0_43, %c0_44, %c48] : memref<10x16x136xf32, #tpu.memory_space<vmem>>, vector<10x16x8xf32>
    tpu.vector_store %arg8[%c0_43, %c0_44, %c48], %19 {strides = array<i32>} : memref<10x16x136xf32, #tpu.memory_space<vmem>>, vector<10x16x8xf32>,
    %c0_45 = arith.constant 0 : index
    %c0_46 = arith.constant 0 : index
    %c2_47 = arith.constant 2 : index
    %c1_48 = arith.constant 1 : index
    %c0_49 = arith.constant 0 : index
    %21 = vector.load %arg2[%c0_45, %c0_46, %c2_47, %c1_48, %c0_49] : memref<1x1x14x20x8xf32, #tpu.memory_space<vmem>>, vector<1x1x10x16x8xf32>
    %22 = vector.shape_cast %21 : vector<1x1x10x16x8xf32> to vector<10x16x8xf32>
    %c0_50 = arith.constant 0 : index
    %c0_51 = arith.constant 0 : index
    %c56 = arith.constant 56 : index
    %23 = vector.load %arg8[%c0_50, %c0_51, %c56] : memref<10x16x136xf32, #tpu.memory_space<vmem>>, vector<10x16x8xf32>
    tpu.vector_store %arg8[%c0_50, %c0_51, %c56], %22 {strides = array<i32>} : memref<10x16x136xf32, #tpu.memory_space<vmem>>, vector<10x16x8xf32>,
    %c0_52 = arith.constant 0 : index
    %c0_53 = arith.constant 0 : index
    %c2_54 = arith.constant 2 : index
    %c2_55 = arith.constant 2 : index
    %c0_56 = arith.constant 0 : index
    %24 = vector.load %arg2[%c0_52, %c0_53, %c2_54, %c2_55, %c0_56] : memref<1x1x14x20x8xf32, #tpu.memory_space<vmem>>, vector<1x1x10x16x8xf32>
    %25 = vector.shape_cast %24 : vector<1x1x10x16x8xf32> to vector<10x16x8xf32>
    %c0_57 = arith.constant 0 : index
    %c0_58 = arith.constant 0 : index
    %c64 = arith.constant 64 : index
    %26 = vector.load %arg8[%c0_57, %c0_58, %c64] : memref<10x16x136xf32, #tpu.memory_space<vmem>>, vector<10x16x8xf32>
    tpu.vector_store %arg8[%c0_57, %c0_58, %c64], %25 {strides = array<i32>} : memref<10x16x136xf32, #tpu.memory_space<vmem>>, vector<10x16x8xf32>,
    %c0_59 = arith.constant 0 : index
    %c0_60 = arith.constant 0 : index
    %c2_61 = arith.constant 2 : index
    %c3_62 = arith.constant 3 : index
    %c0_63 = arith.constant 0 : index
    %27 = vector.load %arg2[%c0_59, %c0_60, %c2_61, %c3_62, %c0_63] : memref<1x1x14x20x8xf32, #tpu.memory_space<vmem>>, vector<1x1x10x16x8xf32>
    %28 = vector.shape_cast %27 : vector<1x1x10x16x8xf32> to vector<10x16x8xf32>
    %c0_64 = arith.constant 0 : index
    %c0_65 = arith.constant 0 : index
    %c72 = arith.constant 72 : index
    %29 = vector.load %arg8[%c0_64, %c0_65, %c72] : memref<10x16x136xf32, #tpu.memory_space<vmem>>, vector<10x16x8xf32>
    tpu.vector_store %arg8[%c0_64, %c0_65, %c72], %28 {strides = array<i32>} : memref<10x16x136xf32, #tpu.memory_space<vmem>>, vector<10x16x8xf32>,
    %c0_66 = arith.constant 0 : index
    %c0_67 = arith.constant 0 : index
    %c2_68 = arith.constant 2 : index
    %c4_69 = arith.constant 4 : index
    %c0_70 = arith.constant 0 : index
    %30 = vector.load %arg2[%c0_66, %c0_67, %c2_68, %c4_69, %c0_70] : memref<1x1x14x20x8xf32, #tpu.memory_space<vmem>>, vector<1x1x10x16x8xf32>
    %31 = vector.shape_cast %30 : vector<1x1x10x16x8xf32> to vector<10x16x8xf32>
    %c0_71 = arith.constant 0 : index
    %c0_72 = arith.constant 0 : index
    %c80 = arith.constant 80 : index
    %32 = vector.load %arg8[%c0_71, %c0_72, %c80] : memref<10x16x136xf32, #tpu.memory_space<vmem>>, vector<10x16x8xf32>
    tpu.vector_store %arg8[%c0_71, %c0_72, %c80], %31 {strides = array<i32>} : memref<10x16x136xf32, #tpu.memory_space<vmem>>, vector<10x16x8xf32>,
    %c0_73 = arith.constant 0 : index
    %c0_74 = arith.constant 0 : index
    %c3_75 = arith.constant 3 : index
    %c1_76 = arith.constant 1 : index
    %c0_77 = arith.constant 0 : index
    %33 = vector.load %arg2[%c0_73, %c0_74, %c3_75, %c1_76, %c0_77] : memref<1x1x14x20x8xf32, #tpu.memory_space<vmem>>, vector<1x1x10x16x8xf32>
    %34 = vector.shape_cast %33 : vector<1x1x10x16x8xf32> to vector<10x16x8xf32>
    %c0_78 = arith.constant 0 : index
    %c0_79 = arith.constant 0 : index
    %c88 = arith.constant 88 : index
    %35 = vector.load %arg8[%c0_78, %c0_79, %c88] : memref<10x16x136xf32, #tpu.memory_space<vmem>>, vector<10x16x8xf32>
    tpu.vector_store %arg8[%c0_78, %c0_79, %c88], %34 {strides = array<i32>} : memref<10x16x136xf32, #tpu.memory_space<vmem>>, vector<10x16x8xf32>,
    %c0_80 = arith.constant 0 : index
    %c0_81 = arith.constant 0 : index
    %c3_82 = arith.constant 3 : index
    %c2_83 = arith.constant 2 : index
    %c0_84 = arith.constant 0 : index
    %36 = vector.load %arg2[%c0_80, %c0_81, %c3_82, %c2_83, %c0_84] : memref<1x1x14x20x8xf32, #tpu.memory_space<vmem>>, vector<1x1x10x16x8xf32>
    %37 = vector.shape_cast %36 : vector<1x1x10x16x8xf32> to vector<10x16x8xf32>
    %c0_85 = arith.constant 0 : index
    %c0_86 = arith.constant 0 : index
    %c96 = arith.constant 96 : index
    %38 = vector.load %arg8[%c0_85, %c0_86, %c96] : memref<10x16x136xf32, #tpu.memory_space<vmem>>, vector<10x16x8xf32>
    tpu.vector_store %arg8[%c0_85, %c0_86, %c96], %37 {strides = array<i32>} : memref<10x16x136xf32, #tpu.memory_space<vmem>>, vector<10x16x8xf32>,
    %c0_87 = arith.constant 0 : index
    %c0_88 = arith.constant 0 : index
    %c3_89 = arith.constant 3 : index
    %c3_90 = arith.constant 3 : index
    %c0_91 = arith.constant 0 : index
    %39 = vector.load %arg2[%c0_87, %c0_88, %c3_89, %c3_90, %c0_91] : memref<1x1x14x20x8xf32, #tpu.memory_space<vmem>>, vector<1x1x10x16x8xf32>
    %40 = vector.shape_cast %39 : vector<1x1x10x16x8xf32> to vector<10x16x8xf32>
    %c0_92 = arith.constant 0 : index
    %c0_93 = arith.constant 0 : index
    %c104 = arith.constant 104 : index
    %41 = vector.load %arg8[%c0_92, %c0_93, %c104] : memref<10x16x136xf32, #tpu.memory_space<vmem>>, vector<10x16x8xf32>
    tpu.vector_store %arg8[%c0_92, %c0_93, %c104], %40 {strides = array<i32>} : memref<10x16x136xf32, #tpu.memory_space<vmem>>, vector<10x16x8xf32>,
    %c0_94 = arith.constant 0 : index
    %c0_95 = arith.constant 0 : index
    %c4_96 = arith.constant 4 : index
    %c0_97 = arith.constant 0 : index
    %c0_98 = arith.constant 0 : index
    %42 = vector.load %arg2[%c0_94, %c0_95, %c4_96, %c0_97, %c0_98] : memref<1x1x14x20x8xf32, #tpu.memory_space<vmem>>, vector<1x1x10x16x8xf32>
    %43 = vector.shape_cast %42 : vector<1x1x10x16x8xf32> to vector<10x16x8xf32>
    %c0_99 = arith.constant 0 : index
    %c0_100 = arith.constant 0 : index
    %c112 = arith.constant 112 : index
    %44 = vector.load %arg8[%c0_99, %c0_100, %c112] : memref<10x16x136xf32, #tpu.memory_space<vmem>>, vector<10x16x8xf32>
    tpu.vector_store %arg8[%c0_99, %c0_100, %c112], %43 {strides = array<i32>} : memref<10x16x136xf32, #tpu.memory_space<vmem>>, vector<10x16x8xf32>,
    %c0_101 = arith.constant 0 : index
    %c0_102 = arith.constant 0 : index
    %c4_103 = arith.constant 4 : index
    %c2_104 = arith.constant 2 : index
    %c0_105 = arith.constant 0 : index
    %45 = vector.load %arg2[%c0_101, %c0_102, %c4_103, %c2_104, %c0_105] : memref<1x1x14x20x8xf32, #tpu.memory_space<vmem>>, vector<1x1x10x16x8xf32>
    %46 = vector.shape_cast %45 : vector<1x1x10x16x8xf32> to vector<10x16x8xf32>
    %c0_106 = arith.constant 0 : index
    %c0_107 = arith.constant 0 : index
    %c120 = arith.constant 120 : index
    %47 = vector.load %arg8[%c0_106, %c0_107, %c120] : memref<10x16x136xf32, #tpu.memory_space<vmem>>, vector<10x16x8xf32>
    tpu.vector_store %arg8[%c0_106, %c0_107, %c120], %46 {strides = array<i32>} : memref<10x16x136xf32, #tpu.memory_space<vmem>>, vector<10x16x8xf32>,
    %c0_108 = arith.constant 0 : index
    %c0_109 = arith.constant 0 : index
    %c4_110 = arith.constant 4 : index
    %c4_111 = arith.constant 4 : index
    %c0_112 = arith.constant 0 : index
    %48 = vector.load %arg2[%c0_108, %c0_109, %c4_110, %c4_111, %c0_112] : memref<1x1x14x20x8xf32, #tpu.memory_space<vmem>>, vector<1x1x10x16x8xf32>
    %49 = vector.shape_cast %48 : vector<1x1x10x16x8xf32> to vector<10x16x8xf32>
    %c0_113 = arith.constant 0 : index
    %c0_114 = arith.constant 0 : index
    %c128 = arith.constant 128 : index
    %50 = vector.load %arg8[%c0_113, %c0_114, %c128] : memref<10x16x136xf32, #tpu.memory_space<vmem>>, vector<10x16x8xf32>
    tpu.vector_store %arg8[%c0_113, %c0_114, %c128], %49 {strides = array<i32>} : memref<10x16x136xf32, #tpu.memory_space<vmem>>, vector<10x16x8xf32>,
    %c0_115 = arith.constant 0 : index
    %c0_116 = arith.constant 0 : index
    %c0_117 = arith.constant 0 : index
    %51 = vector.load %arg8[%c0_115, %c0_116, %c0_117] : memref<10x16x136xf32, #tpu.memory_space<vmem>>, vector<10x16x136xf32>
    %52 = vector.shape_cast %51 : vector<10x16x136xf32> to vector<160x136xf32>
    %c0_118 = arith.constant 0 : index
    %c0_119 = arith.constant 0 : index
    %53 = vector.load %arg3[%c0_118, %c0_119] : memref<136x4xf32, #tpu.memory_space<vmem>>, vector<136x4xf32>
    %cst = arith.constant dense<0.000000e+00> : vector<160x4xf32>
    %54 = tpu.matmul %52, %53, %cst {dimension_numbers = #tpu.dot_dimension_numbers<[1], [0], [0], [1], [0, 0, 1, 1], [], []>} : vector<160x136xf32>, vector<136x4xf32>, vector<160x4xf32> -> vector<160x4xf32>
    %c0_120 = arith.constant 0 : index
    %c0_121 = arith.constant 0 : index
    %55 = vector.load %arg4[%c0_120, %c0_121] : memref<1x4xf32, #tpu.memory_space<vmem>>, vector<1x4xf32>
    %56 = vector.broadcast %55 : vector<1x4xf32> to vector<160x4xf32>
    %57 = arith.addf %54, %56 : vector<160x4xf32>
    %cst_122 = arith.constant 0.000000e+00 : f32
    %58 = vector.broadcast %cst_122 : f32 to vector<160x4xf32>
    %59 = arith.maximumf %57, %58 : vector<160x4xf32>
    %cst_123 = arith.constant 0.000000e+00 : f32
    %60 = vector.broadcast %cst_123 : f32 to vector<10x1x4xf32>
    %c0_124 = arith.constant 0 : index
    %c0_125 = arith.constant 0 : index
    %c0_126 = arith.constant 0 : index
    %61 = vector.load %arg9[%c0_124, %c0_125, %c0_126] : memref<10x18x4xf32, #tpu.memory_space<vmem>>, vector<10x1x4xf32>
    tpu.vector_store %arg9[%c0_124, %c0_125, %c0_126], %60 {strides = array<i32>} : memref<10x18x4xf32, #tpu.memory_space<vmem>>, vector<10x1x4xf32>,
    %cst_127 = arith.constant 0.000000e+00 : f32
    %62 = vector.broadcast %cst_127 : f32 to vector<10x1x4xf32>
    %c0_128 = arith.constant 0 : index
    %c17 = arith.constant 17 : index
    %c0_129 = arith.constant 0 : index
    %63 = vector.load %arg9[%c0_128, %c17, %c0_129] : memref<10x18x4xf32, #tpu.memory_space<vmem>>, vector<10x1x4xf32>
    tpu.vector_store %arg9[%c0_128, %c17, %c0_129], %62 {strides = array<i32>} : memref<10x18x4xf32, #tpu.memory_space<vmem>>, vector<10x1x4xf32>,
    %64 = vector.shape_cast %59 : vector<160x4xf32> to vector<10x16x4xf32>
    %c0_130 = arith.constant 0 : index
    %c1_131 = arith.constant 1 : index
    %c0_132 = arith.constant 0 : index
    %65 = vector.load %arg9[%c0_130, %c1_131, %c0_132] : memref<10x18x4xf32, #tpu.memory_space<vmem>>, vector<10x16x4xf32>
    tpu.vector_store %arg9[%c0_130, %c1_131, %c0_132], %64 {strides = array<i32>} : memref<10x18x4xf32, #tpu.memory_space<vmem>>, vector<10x16x4xf32>,
    %c0_i32 = arith.constant 0 : i32
    %66 = arith.cmpi eq, %arg1, %c0_i32 : i32
    %67 = arith.extui %66 : i1 to i32
    %c0_i32_133 = arith.constant 0 : i32
    %68 = arith.cmpi ne, %67, %c0_i32_133 : i32
    scf.if %68 {
      %cst_193 = arith.constant 0.000000e+00 : f32
      %125 = vector.broadcast %cst_193 : f32 to vector<1x18x4xf32>
      %c0_194 = arith.constant 0 : index
      %c0_195 = arith.constant 0 : index
      %c0_196 = arith.constant 0 : index
      %126 = vector.load %arg9[%c0_194, %c0_195, %c0_196] : memref<10x18x4xf32, #tpu.memory_space<vmem>>, vector<1x18x4xf32>
      tpu.vector_store %arg9[%c0_194, %c0_195, %c0_196], %125 {strides = array<i32>} : memref<10x18x4xf32, #tpu.memory_space<vmem>>, vector<1x18x4xf32>,
    } else {
    }
    %c1_i32 = arith.constant 1 : i32
    %69 = arith.cmpi eq, %arg1, %c1_i32 : i32
    %70 = arith.extui %69 : i1 to i32
    %c0_i32_134 = arith.constant 0 : i32
    %71 = arith.cmpi ne, %70, %c0_i32_134 : i32
    scf.if %71 {
      %cst_193 = arith.constant 0.000000e+00 : f32
      %125 = vector.broadcast %cst_193 : f32 to vector<1x18x4xf32>
      %c9 = arith.constant 9 : index
      %c0_194 = arith.constant 0 : index
      %c0_195 = arith.constant 0 : index
      %126 = vector.load %arg9[%c9, %c0_194, %c0_195] : memref<10x18x4xf32, #tpu.memory_space<vmem>>, vector<1x18x4xf32>
      tpu.vector_store %arg9[%c9, %c0_194, %c0_195], %125 {strides = array<i32>} : memref<10x18x4xf32, #tpu.memory_space<vmem>>, vector<1x18x4xf32>,
    } else {
    }
    %c0_135 = arith.constant 0 : index
    %c0_136 = arith.constant 0 : index
    %c0_137 = arith.constant 0 : index
    %72 = vector.load %arg9[%c0_135, %c0_136, %c0_137] : memref<10x18x4xf32, #tpu.memory_space<vmem>>, vector<8x16x4xf32>
    %73 = vector.shape_cast %72 : vector<8x16x4xf32> to vector<128x4xf32>
    %c0_138 = arith.constant 0 : index
    %c0_139 = arith.constant 0 : index
    %74 = vector.load %arg5[%c0_138, %c0_139] : memref<36x4xf32, #tpu.memory_space<vmem>>, vector<4x4xf32>
    %cst_140 = arith.constant dense<0.000000e+00> : vector<128x4xf32>
    %75 = tpu.matmul %73, %74, %cst_140 {dimension_numbers = #tpu.dot_dimension_numbers<[1], [0], [0], [1], [0, 0, 1, 1], [], []>} : vector<128x4xf32>, vector<4x4xf32>, vector<128x4xf32> -> vector<128x4xf32>
    %c0_141 = arith.constant 0 : index
    %c1_142 = arith.constant 1 : index
    %c0_143 = arith.constant 0 : index
    %76 = vector.load %arg9[%c0_141, %c1_142, %c0_143] : memref<10x18x4xf32, #tpu.memory_space<vmem>>, vector<8x16x4xf32>
    %77 = vector.shape_cast %76 : vector<8x16x4xf32> to vector<128x4xf32>
    %c4_144 = arith.constant 4 : index
    %c0_145 = arith.constant 0 : index
    %78 = vector.load %arg5[%c4_144, %c0_145] : memref<36x4xf32, #tpu.memory_space<vmem>>, vector<4x4xf32>
    %cst_146 = arith.constant dense<0.000000e+00> : vector<128x4xf32>
    %79 = tpu.matmul %77, %78, %cst_146 {dimension_numbers = #tpu.dot_dimension_numbers<[1], [0], [0], [1], [0, 0, 1, 1], [], []>} : vector<128x4xf32>, vector<4x4xf32>, vector<128x4xf32> -> vector<128x4xf32>
    %80 = arith.addf %75, %79 : vector<128x4xf32>
    %c0_147 = arith.constant 0 : index
    %c2_148 = arith.constant 2 : index
    %c0_149 = arith.constant 0 : index
    %81 = vector.load %arg9[%c0_147, %c2_148, %c0_149] : memref<10x18x4xf32, #tpu.memory_space<vmem>>, vector<8x16x4xf32>
    %82 = vector.shape_cast %81 : vector<8x16x4xf32> to vector<128x4xf32>
    %c8_150 = arith.constant 8 : index
    %c0_151 = arith.constant 0 : index
    %83 = vector.load %arg5[%c8_150, %c0_151] : memref<36x4xf32, #tpu.memory_space<vmem>>, vector<4x4xf32>
    %cst_152 = arith.constant dense<0.000000e+00> : vector<128x4xf32>
    %84 = tpu.matmul %82, %83, %cst_152 {dimension_numbers = #tpu.dot_dimension_numbers<[1], [0], [0], [1], [0, 0, 1, 1], [], []>} : vector<128x4xf32>, vector<4x4xf32>, vector<128x4xf32> -> vector<128x4xf32>
    %85 = arith.addf %80, %84 : vector<128x4xf32>
    %c1_153 = arith.constant 1 : index
    %c0_154 = arith.constant 0 : index
    %c0_155 = arith.constant 0 : index
    %86 = vector.load %arg9[%c1_153, %c0_154, %c0_155] : memref<10x18x4xf32, #tpu.memory_space<vmem>>, vector<8x16x4xf32>
    %87 = vector.shape_cast %86 : vector<8x16x4xf32> to vector<128x4xf32>
    %c12 = arith.constant 12 : index
    %c0_156 = arith.constant 0 : index
    %88 = vector.load %arg5[%c12, %c0_156] : memref<36x4xf32, #tpu.memory_space<vmem>>, vector<4x4xf32>
    %cst_157 = arith.constant dense<0.000000e+00> : vector<128x4xf32>
    %89 = tpu.matmul %87, %88, %cst_157 {dimension_numbers = #tpu.dot_dimension_numbers<[1], [0], [0], [1], [0, 0, 1, 1], [], []>} : vector<128x4xf32>, vector<4x4xf32>, vector<128x4xf32> -> vector<128x4xf32>
    %90 = arith.addf %85, %89 : vector<128x4xf32>
    %c1_158 = arith.constant 1 : index
    %c1_159 = arith.constant 1 : index
    %c0_160 = arith.constant 0 : index
    %91 = vector.load %arg9[%c1_158, %c1_159, %c0_160] : memref<10x18x4xf32, #tpu.memory_space<vmem>>, vector<8x16x4xf32>
    %92 = vector.shape_cast %91 : vector<8x16x4xf32> to vector<128x4xf32>
    %c16_161 = arith.constant 16 : index
    %c0_162 = arith.constant 0 : index
    %93 = vector.load %arg5[%c16_161, %c0_162] : memref<36x4xf32, #tpu.memory_space<vmem>>, vector<4x4xf32>
    %cst_163 = arith.constant dense<0.000000e+00> : vector<128x4xf32>
    %94 = tpu.matmul %92, %93, %cst_163 {dimension_numbers = #tpu.dot_dimension_numbers<[1], [0], [0], [1], [0, 0, 1, 1], [], []>} : vector<128x4xf32>, vector<4x4xf32>, vector<128x4xf32> -> vector<128x4xf32>
    %95 = arith.addf %90, %94 : vector<128x4xf32>
    %c1_164 = arith.constant 1 : index
    %c2_165 = arith.constant 2 : index
    %c0_166 = arith.constant 0 : index
    %96 = vector.load %arg9[%c1_164, %c2_165, %c0_166] : memref<10x18x4xf32, #tpu.memory_space<vmem>>, vector<8x16x4xf32>
    %97 = vector.shape_cast %96 : vector<8x16x4xf32> to vector<128x4xf32>
    %c20 = arith.constant 20 : index
    %c0_167 = arith.constant 0 : index
    %98 = vector.load %arg5[%c20, %c0_167] : memref<36x4xf32, #tpu.memory_space<vmem>>, vector<4x4xf32>
    %cst_168 = arith.constant dense<0.000000e+00> : vector<128x4xf32>
    %99 = tpu.matmul %97, %98, %cst_168 {dimension_numbers = #tpu.dot_dimension_numbers<[1], [0], [0], [1], [0, 0, 1, 1], [], []>} : vector<128x4xf32>, vector<4x4xf32>, vector<128x4xf32> -> vector<128x4xf32>
    %100 = arith.addf %95, %99 : vector<128x4xf32>
    %c2_169 = arith.constant 2 : index
    %c0_170 = arith.constant 0 : index
    %c0_171 = arith.constant 0 : index
    %101 = vector.load %arg9[%c2_169, %c0_170, %c0_171] : memref<10x18x4xf32, #tpu.memory_space<vmem>>, vector<8x16x4xf32>
    %102 = vector.shape_cast %101 : vector<8x16x4xf32> to vector<128x4xf32>
    %c24_172 = arith.constant 24 : index
    %c0_173 = arith.constant 0 : index
    %103 = vector.load %arg5[%c24_172, %c0_173] : memref<36x4xf32, #tpu.memory_space<vmem>>, vector<4x4xf32>
    %cst_174 = arith.constant dense<0.000000e+00> : vector<128x4xf32>
    %104 = tpu.matmul %102, %103, %cst_174 {dimension_numbers = #tpu.dot_dimension_numbers<[1], [0], [0], [1], [0, 0, 1, 1], [], []>} : vector<128x4xf32>, vector<4x4xf32>, vector<128x4xf32> -> vector<128x4xf32>
    %105 = arith.addf %100, %104 : vector<128x4xf32>
    %c2_175 = arith.constant 2 : index
    %c1_176 = arith.constant 1 : index
    %c0_177 = arith.constant 0 : index
    %106 = vector.load %arg9[%c2_175, %c1_176, %c0_177] : memref<10x18x4xf32, #tpu.memory_space<vmem>>, vector<8x16x4xf32>
    %107 = vector.shape_cast %106 : vector<8x16x4xf32> to vector<128x4xf32>
    %c28 = arith.constant 28 : index
    %c0_178 = arith.constant 0 : index
    %108 = vector.load %arg5[%c28, %c0_178] : memref<36x4xf32, #tpu.memory_space<vmem>>, vector<4x4xf32>
    %cst_179 = arith.constant dense<0.000000e+00> : vector<128x4xf32>
    %109 = tpu.matmul %107, %108, %cst_179 {dimension_numbers = #tpu.dot_dimension_numbers<[1], [0], [0], [1], [0, 0, 1, 1], [], []>} : vector<128x4xf32>, vector<4x4xf32>, vector<128x4xf32> -> vector<128x4xf32>
    %110 = arith.addf %105, %109 : vector<128x4xf32>
    %c2_180 = arith.constant 2 : index
    %c2_181 = arith.constant 2 : index
    %c0_182 = arith.constant 0 : index
    %111 = vector.load %arg9[%c2_180, %c2_181, %c0_182] : memref<10x18x4xf32, #tpu.memory_space<vmem>>, vector<8x16x4xf32>
    %112 = vector.shape_cast %111 : vector<8x16x4xf32> to vector<128x4xf32>
    %c32_183 = arith.constant 32 : index
    %c0_184 = arith.constant 0 : index
    %113 = vector.load %arg5[%c32_183, %c0_184] : memref<36x4xf32, #tpu.memory_space<vmem>>, vector<4x4xf32>
    %cst_185 = arith.constant dense<0.000000e+00> : vector<128x4xf32>
    %114 = tpu.matmul %112, %113, %cst_185 {dimension_numbers = #tpu.dot_dimension_numbers<[1], [0], [0], [1], [0, 0, 1, 1], [], []>} : vector<128x4xf32>, vector<4x4xf32>, vector<128x4xf32> -> vector<128x4xf32>
    %115 = arith.addf %110, %114 : vector<128x4xf32>
    %c0_186 = arith.constant 0 : index
    %c0_187 = arith.constant 0 : index
    %116 = vector.load %arg6[%c0_186, %c0_187] : memref<1x4xf32, #tpu.memory_space<vmem>>, vector<1x4xf32>
    %117 = vector.broadcast %116 : vector<1x4xf32> to vector<128x4xf32>
    %118 = arith.addf %115, %117 : vector<128x4xf32>
    %cst_188 = arith.constant 0.000000e+00 : f32
    %119 = vector.broadcast %cst_188 : f32 to vector<128x4xf32>
    %120 = arith.maximumf %118, %119 : vector<128x4xf32>
    %121 = vector.shape_cast %120 : vector<128x4xf32> to vector<8x16x4xf32>
    %c0_189 = arith.constant 0 : index
    %c0_190 = arith.constant 0 : index
    %c0_191 = arith.constant 0 : index
    %c0_192 = arith.constant 0 : index
    %122 = vector.load %arg7[%c0_189, %c0_190, %c0_191, %c0_192] : memref<1x8x16x4xf32, #tpu.memory_space<vmem>>, vector<1x8x16x4xf32>
    %123 = vector.shape_cast %122 : vector<1x8x16x4xf32> to vector<8x16x4xf32>
    %124 = vector.shape_cast %121 : vector<8x16x4xf32> to vector<1x8x16x4xf32>
    tpu.vector_store %arg7[%c0_189, %c0_190, %c0_191, %c0_192], %124 {strides = array<i32>} : memref<1x8x16x4xf32, #tpu.memory_space<vmem>>, vector<1x8x16x4xf32>,
    return
  }
  func.func @transform_0(%arg0: i32, %arg1: i32) -> (i32, i32, i32, i32, i32) {
    %c0_i32 = arith.constant 0 : i32
    %c0_i32_0 = arith.constant 0 : i32
    %c0_i32_1 = arith.constant 0 : i32
    %c0_i32_2 = arith.constant 0 : i32
    return %arg0, %arg1, %c0_i32, %c0_i32_0, %c0_i32_1 : i32, i32, i32, i32, i32
  }
  func.func @transform_1(%arg0: i32, %arg1: i32) -> (i32, i32) {
    %c0_i32 = arith.constant 0 : i32
    %c0_i32_0 = arith.constant 0 : i32
    %c0_i32_1 = arith.constant 0 : i32
    return %c0_i32, %c0_i32_0 : i32, i32
  }
  func.func @transform_2(%arg0: i32, %arg1: i32) -> (i32, i32) {
    %c0_i32 = arith.constant 0 : i32
    %c0_i32_0 = arith.constant 0 : i32
    %c0_i32_1 = arith.constant 0 : i32
    return %c0_i32, %c0_i32_0 : i32, i32
  }
  func.func @transform_3(%arg0: i32, %arg1: i32) -> (i32, i32) {
    %c0_i32 = arith.constant 0 : i32
    %c0_i32_0 = arith.constant 0 : i32
    %c0_i32_1 = arith.constant 0 : i32
    return %c0_i32, %c0_i32_0 : i32, i32
  }
  func.func @transform_4(%arg0: i32, %arg1: i32) -> (i32, i32) {
    %c0_i32 = arith.constant 0 : i32
    %c0_i32_0 = arith.constant 0 : i32
    %c0_i32_1 = arith.constant 0 : i32
    return %c0_i32, %c0_i32_0 : i32, i32
  }
  func.func @transform_5(%arg0: i32, %arg1: i32) -> (i32, i32, i32, i32) {
    %c0_i32 = arith.constant 0 : i32
    %c0_i32_0 = arith.constant 0 : i32
    %c0_i32_1 = arith.constant 0 : i32
    return %arg0, %arg1, %c0_i32, %c0_i32_0 : i32, i32, i32, i32
  }
}

</mosaic_0001>

<bundles_post_ra>
// kernel: clfm1_forward.1
= control target key start
LH: loop header
LB: loop body
LE: loop exit
PB: predicated region body
PF: predicated region fallthrough
CT: control target
= control target key end

     0   :  { %s4601_s18 = smov 0   ;;  %s4603_s19 = smov 0   ;;  %s6573_s0 = inlined_call_operand.vmem [shape: f32[2,2,14,20,8], index: 0, kind: input, shape index: {}]   ;;  %s6574_s1 = inlined_call_operand.vmem [shape: f32[136,4], index: 1, kind: input, shape index: {}]   ;;  %s6575_s2 = inlined_call_operand.vmem [shape: f32[1,4], index: 2, kind: input, shape index: {}]   ;;  %s6576_s3 = inlined_call_operand.vmem [shape: f32[36,4], index: 3, kind: input, shape index: {}]   ;;  %s6577_s4 = inlined_call_operand.vmem [shape: f32[1,4], index: 4, kind: input, shape index: {}]   ;;  %s6578_s5 = inlined_call_operand.vmem [shape: f32[2,16,16,4], index: 5, kind: output, shape index: {}]  }
   0x1   :  { %s4605_s20 = smov 0   ;;  %s4607_s21 = smov 0  }
   0x2   :  { %s4609_s22 = smov 0  }
   0x3 LB: > { %s24_s23 = sadd.s32 1, %s4543_s20  ;;  %s27_s24 = sadd.s32 1, %s4547_s21  ;;  %s4551_s22 = sphi %s4609_s22, %s15_s22   ;;  %s4547_s21 = sphi %s4607_s21, %s6594_s21   ;;  %s4543_s20 = sphi %s4605_s20, %s6593_s20   ;;  %s4539_s19 = sphi %s4603_s19, %s6592_s19   ;;  %s4535_s18 = sphi %s4601_s18, %s6591_s18  }
   0x4   : > { %p25_p0 = scmp.ge.s32.totalorder %s24_s23, 2  ;;  %p3985_p1 = scmp.ge.s32.totalorder %s4551_s22, 1 }
   0x5   : > { %p207_p2 = scmp.lt.s32.totalorder %s4551_s22, 5 }
   0x6   : > { %s6596_s23 = smov (%p25_p0, %s24_s23), 0  ;;  %s6598_s24 = smov (!%p25_p0, %s27_s24), %s4547_s21 }
   0x7   : > { %p208_p3 = pnand %p3985_p1, %p207_p2  ;;  %p29_p4 = scmp.ge.s32.totalorder %s6598_s24, 2 }
   0x9   : > { %s6600_s24 = smov (%p29_p4, %s6598_s24), 0  ;;  %211 = sbr.rel (%p208_p3) target bundleno = 1641 (0x669), region = 40 }
   0xe   : > { %p244_p5 = scmp.lt.s32.totalorder %s4539_s19, 1  ;;  %p246_p6 = scmp.lt.s32.totalorder %s4535_s18, 1  ;;  %vm284_vm0 = vcmask 64512   ;;  %vm405_vm1 = vcmask 130112   ;;  %vm526_vm2 = vcmask 195712   ;;  %vm648_vm3 = vcmask 261312  }
   0xf   : > { %s3987_s25 = sshll.u32 %s4535_s18, 3  ;;  %s4553_s16 = smov 8   ;;  %vm769_vm4 = vcmask 326912   ;;  %vm890_vm5 = vcmask 392512   ;;  %vm1012_vm6 = vcmask 458112   ;;  %vm1133_vm7 = vcmask 523712  }
  0x10   : > { %s6602_s19 = smov (!%p244_p5, %s4539_s19), 1  ;;  %p256_p7 = scmp.lt.s32.totalorder %s3987_s25, 15  ;;  %vm1254_vm8 = vcmask 589312   ;;  %vm1375_vm9 = vcmask 654912   ;;  %vm1496_vm10 = vcmask 720512   ;;  %vm1618_vm11 = vcmask 786112  }
  0x11   : > { %s247_s26 = scalar_select %p246_p6, %s4535_s18, 1  ;;  %vm1739_vm12 = vcmask 851712   ;;  %vm1860_vm13 = vcmask 917312   ;;  %vm1982_vm14 = vcmask 982912   ;;  %vm2103_vm15 = vcmask 1048512  }
  0x12   : > { %s4452_s27 = smul.u32 84, %s6602_s19  ;;  %s3989_s29 = sshll.u32 %s6602_s19, 5 }
  0x13   : > { %s4451_s28 = smul.u32 42, %s247_s26  ;;  %s6604_s25 = smov (!%p256_p7, %s3987_s25), 15 }
  0x14   : > { %s3988_s7 = sshll.u32 %s6604_s25, 1  ;;  %s4554_s17 = smov 16  }
  0x15   : > { %s250_s30 = sadd.s32 %s4452_s27, %s4451_s28  ;;  %s260_s11 = sadd.s32 %s3989_s29, %s3988_s7 }
  0x16   : > { %s3986_s6 = sshll.u32 %s250_s30, 3  ;;  %s3990_s12 = sshll.u32 %s260_s11, 3 }
  0x17   : > { %s4639_s10 = scalar_lea.vmem %s6573_s0, %s3986_s6  ;;  %s4648_s15 = scalar_lea.vmem %s6578_s5, %s3990_s12 }
  0x18   : > { %v305_v0 = vld [vmem:[%s4639_s10 + $0x2] sm:$0xff]  ;;  %v4643_v1 = vld [vmem:[%s4639_s10 + $0x1a] sm:$0xff]  ;;  %v4654_v2 = vld [vmem:[%s4639_s10 + $0x32] sm:$0xff]  ;;  %s4555_s19 = smov 24   ;;  %s4556_s25 = smov 32  }
  0x19   : > { %345 = vrot.lane.b32.xlu0 %v305_v0, %s4553_s16  ;;  %349 = vrot.lane.b32.xlu1 %v4643_v1, %s4553_s16  ;;  %v306_v3 = vld [vmem:[%s4639_s10 + $0xa] sm:$0xff]  ;;  %v4660_v4 = vld [vmem:[%s4639_s10 + $0x22] sm:$0xff]  ;;  %s4557_s26 = smov 40   ;;  %s4558_s27 = smov 48  }
  0x1a   : > { %353 = vrot.lane.b32.xlu2 %v4654_v2, %s4553_s16  ;;  %v4666_v5 = vld [vmem:[%s4639_s10 + $0x3a] sm:$0xff]  ;;  %v4671_v6 = vld [vmem:[%s4639_s10 + $0x4a] sm:$0xff]  ;;  %v4674_v7 = vld [vmem:[%s4639_s10 + $0x52] sm:$0xff]  ;;  %s4559_s28 = smov 56   ;;  %s4560_s29 = smov 64  }
  0x1b   : > { %v4681_v8 = vld [vmem:[%s4639_s10 + $0x62] sm:$0xff]  ;;  %v4686_v9 = vld [vmem:[%s4639_s10 + $0x6a] sm:$0xff]  ;;  %v4689_v10 = vld [vmem:[%s4639_s10 + $0x7a] sm:$0xff]  ;;  %s4561_s30 = smov 72   ;;  %s4562_s6 = smov 80  }
  0x1c   : > { %v4696_v11 = vld [vmem:[%s4639_s10 + $0x82] sm:$0xff]  ;;  %v4701_v12 = vld [vmem:[%s4639_s10 + $0x92] sm:$0xff]  ;;  %v4704_v13 = vld [vmem:[%s4639_s10 + $0x9a] sm:$0xff]  ;;  %s4563_s7 = smov 88   ;;  %s4564_s8 = smov 96  }
  0x1d   : > { %v4711_v14 = vld [vmem:[%s4639_s10 + $0xaa] sm:$0xff]  ;;  %v4716_v15 = vld [vmem:[%s4639_s10 + $0xb2] sm:$0xff]  ;;  %v4719_v16 = vld [vmem:[%s4639_s10 + $0xc2] sm:$0xff]  ;;  %s4565_s9 = smov 104   ;;  %s4566_s11 = smov 112  }
  0x1e   : > { %v4726_v17 = vld [vmem:[%s4639_s10 + $0xca] sm:$0xff]  ;;  %v4731_v18 = vld [vmem:[%s4639_s10 + $0xda] sm:$0xff]  ;;  %v4734_v19 = vld [vmem:[%s4639_s10 + $0xe2] sm:$0xff]  ;;  %s4567_s12 = smov 120   ;;  %p4291_p8 = scmp.ne.s32.totalorder %s4535_s18, 0 }
  0x1f   : > { %v426_v20 = vld [vmem:[%s4639_s10 + $0x4] sm:$0xff]  ;;  %v427_v21 = vld [vmem:[%s4639_s10 + $0xc] sm:$0xff]  ;;  %v428_v22 = vld [vmem:[%s4639_s10 + $0x1c] sm:$0xff] }
  0x20   : > { %v429_v23 = vld [vmem:[%s4639_s10 + $0x24] sm:$0xff]  ;;  %v430_v24 = vld [vmem:[%s4639_s10 + $0x34] sm:$0xff]  ;;  %v431_v25 = vld [vmem:[%s4639_s10 + $0x3c] sm:$0xff] }
  0x21   : > { %347 = vrot.lane.b32.xlu0 %v306_v3, %s4553_s16  ;;  %351 = vrot.lane.b32.xlu1 %v4660_v4, %s4553_s16  ;;  %v432_v26 = vld [vmem:[%s4639_s10 + $0x4c] sm:$0xff]  ;;  %v433_v27 = vld [vmem:[%s4639_s10 + $0x54] sm:$0xff] }
  0x22   : > { %355 = vrot.lane.b32.xlu2 %v4666_v5, %s4553_s16  ;;  %v434_v28 = vld [vmem:[%s4639_s10 + $0x64] sm:$0xff]  ;;  %v435_v29 = vld [vmem:[%s4639_s10 + $0x6c] sm:$0xff]  ;;  %v436_v30 = vld [vmem:[%s4639_s10 + $0x7c] sm:$0xff] }
  0x23   : > { %v437_v31 = vld [vmem:[%s4639_s10 + $0x84] sm:$0xff]  ;;  %v438_v32 = vld [vmem:[%s4639_s10 + $0x94] sm:$0xff]  ;;  %v439_v36 = vld [vmem:[%s4639_s10 + $0x9c] sm:$0xff] }
  0x24   : > { %v264_v33 = vld [vmem:[%s4639_s10] sm:$0xff]  ;;  %v266_v34 = vld [vmem:[%s4639_s10 + $0x18] sm:$0xff]  ;;  %v4771_v35 = vld [vmem:[%s4639_s10 + $0x30] sm:$0xff] }
  0x25   : > { %285 = vst.msk [vmem:[#allocation2] sm:$0xff] %vm284_vm0, %v264_v33  ;;  %v440_v37 = vld [vmem:[%s4639_s10 + $0xac] sm:$0xff]  ;;  %v441_v38 = vld [vmem:[%s4639_s10 + $0xb4] sm:$0xff]  ;;  %v267_v40 = vld [vmem:[%s4639_s10 + $0x20] sm:$0xff] }
  0x26   : > { %287 = vst.msk [vmem:[#allocation2 + $0x20] sm:$0xff] %vm284_vm0, %v266_v34  ;;  %v265_v39 = vld [vmem:[%s4639_s10 + $0x8] sm:$0xff]  ;;  %v4786_v41 = vld [vmem:[%s4639_s10 + $0x38] sm:$0xff]  ;;  %v4802_v47 = vld [vmem:[%s4639_s10 + $0x50] sm:$0xff] }
  0x27   : > { %289 = vst.msk [vmem:[#allocation2 + $0x40] sm:$0xff] %vm284_vm0, %v4771_v35  ;;  %v442_v42 = vld [vmem:[%s4639_s10 + $0xc4] sm:$0xff]  ;;  %v443_v43 = vld [vmem:[%s4639_s10 + $0xcc] sm:$0xff]  ;;  %v444_v45 = vld [vmem:[%s4639_s10 + $0xdc] sm:$0xff] }
  0x28   : > { %286 = vst.msk [vmem:[#allocation2 + $0x10] sm:$0xff] %vm284_vm0, %v265_v39  ;;  %v4797_v46 = vld [vmem:[%s4639_s10 + $0x48] sm:$0xff]  ;;  %v4808_v48 = vld [vmem:[%s4639_s10 + $0x60] sm:$0xff]  ;;  %v4824_v54 = vld [vmem:[%s4639_s10 + $0x78] sm:$0xff] }
  0x29   : > { %357 = vrot.lane.b32.xlu0 %v4671_v6, %s4553_s16  ;;  %359 = vrot.lane.b32.xlu1 %v4674_v7, %s4553_s16  ;;  %288 = vst.msk [vmem:[#allocation2 + $0x30] sm:$0xff] %vm284_vm0, %v267_v40  ;;  %v445_v49 = vld [vmem:[%s4639_s10 + $0xe4] sm:$0xff]  ;;  %v3991_v50 = vld [vmem:[%s4639_s10 + $0x19] sm:$0xff] }
  0x2a   : > { %361 = vrot.lane.b32.xlu2 %v4681_v8, %s4553_s16  ;;  %290 = vst.msk [vmem:[#allocation2 + $0x50] sm:$0xff] %vm284_vm0, %v4786_v41  ;;  %v3992_v52 = vld [vmem:[%s4639_s10 + $0x21] sm:$0xff]  ;;  %v4835_v56 = vld [vmem:[%s4639_s10 + $0x31] sm:$0xff]  ;;  %v4838_v57 = vld [vmem:[%s4639_s10 + $0x39] sm:$0xff] }
  0x2b   : > { %291 = vst.msk [vmem:[#allocation2 + $0x60] sm:$0xff] %vm284_vm0, %v4797_v46  ;;  %v4819_v53 = vld [vmem:[%s4639_s10 + $0x68] sm:$0xff]  ;;  %v4830_v55 = vld [vmem:[%s4639_s10 + $0x80] sm:$0xff]  ;;  %v4849_v60 = vld [vmem:[%s4639_s10 + $0x90] sm:$0xff] }
  0x2c   : > { %292 = vst.msk [vmem:[#allocation2 + $0x70] sm:$0xff] %vm284_vm0, %v4802_v47  ;;  %v4846_v59 = vld [vmem:[%s4639_s10 + $0x49] sm:$0xff]  ;;  %v4854_v63 = vld [vmem:[%s4639_s10 + $0x98] sm:$0xff] }
  0x2d   : > { %293 = vst.msk [vmem:[#allocation2 + $0x80] sm:$0xff] %vm284_vm0, %v4808_v48  ;;  %v4861_v0 = vld [vmem:[%s4639_s10 + $0xa8] sm:$0xff]  ;;  %v4864_v3 = vld [vmem:[%s4639_s10 + $0x51] sm:$0xff] }
  0x2e   : > { %294 = vst.msk [vmem:[#allocation2 + $0x90] sm:$0xff] %vm284_vm0, %v4819_v53  ;;  %v4940_v40 = vld [vmem:[%s4639_s10 + $0xb1] sm:$0xff] }
  0x2f   : > { %295 = vst.msk [vmem:[#allocation2 + $0xa0] sm:$0xff] %vm284_vm0, %v4824_v54 }
  0x30   : > { %296 = vst.msk [vmem:[#allocation2 + $0xb0] sm:$0xff] %vm284_vm0, %v4830_v55 }
  0x31   : > { %363 = vrot.lane.b32.xlu0 %v4686_v9, %s4553_s16  ;;  %365 = vrot.lane.b32.xlu1 %v4689_v10, %s4553_s16  ;;  %297 = vst.msk [vmem:[#allocation2 + $0xc0] sm:$0xff] %vm284_vm0, %v4849_v60 }
  0x32   : > { %367 = vrot.lane.b32.xlu2 %v4696_v11, %s4553_s16  ;;  %298 = vst.msk [vmem:[#allocation2 + $0xd0] sm:$0xff] %vm284_vm0, %v4854_v63 }
  0x33   : > { %299 = vst.msk [vmem:[#allocation2 + $0xe0] sm:$0xff] %vm284_vm0, %v4861_v0 }
  0x39   : > { %369 = vrot.lane.b32.xlu0 %v4701_v12, %s4553_s16  ;;  %371 = vrot.lane.b32.xlu1 %v4704_v13, %s4553_s16 }
  0x3a   : > { %373 = vrot.lane.b32.xlu2 %v4711_v14, %s4553_s16 }
  0x41   : > { %375 = vrot.lane.b32.xlu0 %v4716_v15, %s4553_s16  ;;  %377 = vrot.lane.b32.xlu1 %v4719_v16, %s4553_s16 }
  0x42   : > { %379 = vrot.lane.b32.xlu2 %v4726_v17, %s4553_s16 }
  0x49   : > { %381 = vrot.lane.b32.xlu0 %v4731_v18, %s4553_s16  ;;  %383 = vrot.lane.b32.xlu1 %v4734_v19, %s4553_s16 }
  0x4a   : > { %466 = vrot.lane.b32.xlu2 %v426_v20, %s4554_s17  ;;  %v4867_v20 = vld [vmem:[%s4639_s10 + $0x61] sm:$0xff] }
  0x51   : > { %468 = vrot.lane.b32.xlu0 %v427_v21, %s4554_s17  ;;  %470 = vrot.lane.b32.xlu1 %v428_v22, %s4554_s17  ;;  %v4879_v22 = vld [vmem:[%s4639_s10 + $0x69] sm:$0xff] }
  0x52   : > { %472 = vrot.lane.b32.xlu2 %v429_v23, %s4554_s17  ;;  %v4882_v23 = vld [vmem:[%s4639_s10 + $0xb0] sm:$0xff] }
  0x53   : > { %300 = vst.msk [vmem:[#allocation2 + $0xf0] sm:$0xff] %vm284_vm0, %v4882_v23 }
  0x59   : > { %474 = vrot.lane.b32.xlu0 %v430_v24, %s4554_s17  ;;  %476 = vrot.lane.b32.xlu1 %v431_v25, %s4554_s17 }
  0x5a   : > { %478 = vrot.lane.b32.xlu2 %v432_v26, %s4554_s17  ;;  %v4887_v26 = vld [vmem:[%s4639_s10 + $0xc0] sm:$0xff] }
  0x5b   : > { %301 = vst.msk [vmem:[#allocation2 + $0x100] sm:$0xff] %vm284_vm0, %v4887_v26 }
  0x61   : > { %480 = vrot.lane.b32.xlu0 %v433_v27, %s4554_s17  ;;  %482 = vrot.lane.b32.xlu1 %v434_v28, %s4554_s17  ;;  %v4894_v27 = vld [vmem:[%s4639_s10 + $0xc8] sm:$0xff]  ;;  %v4897_v28 = vld [vmem:[%s4639_s10 + $0x79] sm:$0xff] }
  0x62   : > { %484 = vrot.lane.b32.xlu2 %v435_v29, %s4554_s17  ;;  %v4900_v29 = vld [vmem:[%s4639_s10 + $0x81] sm:$0xff]  ;;  %302 = vst.msk [vmem:[#allocation2 + $0x110] sm:$0xff] %vm284_vm0, %v4894_v27 }
  0x69   : > { %486 = vrot.lane.b32.xlu0 %v436_v30, %s4554_s17  ;;  %488 = vrot.lane.b32.xlu1 %v437_v31, %s4554_s17  ;;  %v4912_v31 = vld [vmem:[%s4639_s10 + $0x91] sm:$0xff] }
  0x6a   : > { %490 = vrot.lane.b32.xlu2 %v438_v32, %s4554_s17  ;;  %v4915_v32 = vld [vmem:[%s4639_s10 + $0xd8] sm:$0xff] }
  0x6b   : > { %303 = vst.msk [vmem:[#allocation2 + $0x120] sm:$0xff] %vm284_vm0, %v4915_v32 }
  0x71   : > { %492 = vrot.lane.b32.xlu0 %v439_v36, %s4554_s17  ;;  %494 = vrot.lane.b32.xlu1 %v440_v37, %s4554_s17  ;;  %v4920_v36 = vld [vmem:[%s4639_s10 + $0xe0] sm:$0xff] }
  0x72   : > { %496 = vrot.lane.b32.xlu2 %v441_v38, %s4554_s17  ;;  %v4927_v37 = vld [vmem:[%s4639_s10 + $0x99] sm:$0xff]  ;;  %v4930_v38 = vld [vmem:[%s4639_s10 + $0xa9] sm:$0xff]  ;;  %304 = vst.msk [vmem:[#allocation2 + $0x130] sm:$0xff] %vm284_vm0, %v4920_v36 }
  0x74   : > { %v354_v44 = vpop.permute.xlu2 %353 }
  0x75   : > { %410 = vst.msk [vmem:[#allocation2 + $0x40] sm:$0xff] %vm405_vm1, %v354_v44  ;;  %v4947_v44 = vld [vmem:[%s4639_s10 + $0xc1] sm:$0xff] }
  0x79   : > { %498 = vrot.lane.b32.xlu0 %v442_v42, %s4554_s17  ;;  %500 = vrot.lane.b32.xlu1 %v443_v43, %s4554_s17 }
  0x7a   : > { %502 = vrot.lane.b32.xlu2 %v444_v45, %s4554_s17  ;;  %v4950_v45 = vld [vmem:[%s4639_s10 + $0xc9] sm:$0xff] }
  0x7c   : > { %v356_v51 = vpop.permute.xlu2 %355 }
  0x7d   : > { %411 = vst.msk [vmem:[#allocation2 + $0x50] sm:$0xff] %vm405_vm1, %v356_v51 }
  0x81   : > { %504 = vrot.lane.b32.xlu0 %v445_v49, %s4554_s17  ;;  %588 = vrot.lane.b32.xlu1 %v3991_v50, %s4555_s19  ;;  %v4958_v50 = vld [vmem:[%s4639_s10 + $0xd9] sm:$0xff] }
  0x82   : > { %590 = vrot.lane.b32.xlu2 %v3992_v52, %s4555_s19 }
  0x84   : > { %v362_v58 = vpop.permute.xlu2 %361 }
  0x85   : > { %414 = vst.msk [vmem:[#allocation2 + $0x80] sm:$0xff] %vm405_vm1, %v362_v58  ;;  %v4965_v58 = vld [vmem:[%s4639_s10 + $0xe1] sm:$0xff] }
  0x89   : > { %592 = vrot.lane.b32.xlu0 %v4835_v56, %s4555_s19  ;;  %594 = vrot.lane.b32.xlu1 %v4838_v57, %s4555_s19 }
  0x8a   : > { %596 = vrot.lane.b32.xlu2 %v4846_v59, %s4555_s19 }
  0x8b   : > { %v346_v61 = vpop.permute.xlu0 %345  ;;  %v350_v62 = vpop.permute.xlu1 %349 }
  0x8c   : > { %406 = vst.msk [vmem:[#allocation2] sm:$0xff] %vm405_vm1, %v346_v61  ;;  %v368_v21 = vpop.permute.xlu2 %367  ;;  %v4968_v61 = vld [vmem:[%s4639_s10 + $0xf1] sm:$0xff] }
  0x8d   : > { %408 = vst.msk [vmem:[#allocation2 + $0x20] sm:$0xff] %vm405_vm1, %v350_v62 }
  0x8e   : > { %417 = vst.msk [vmem:[#allocation2 + $0xb0] sm:$0xff] %vm405_vm1, %v368_v21  ;;  %v4976_v21 = vld [vmem:[%s4639_s10 + $0xf9] sm:$0xff] }
  0x91   : > { %598 = vrot.lane.b32.xlu0 %v4864_v3, %s4555_s19  ;;  %600 = vrot.lane.b32.xlu1 %v4867_v20, %s4555_s19 }
  0x92   : > { %602 = vrot.lane.b32.xlu2 %v4879_v22, %s4555_s19 }
  0x93   : > { %v348_v24 = vpop.permute.xlu0 %347  ;;  %v352_v25 = vpop.permute.xlu1 %351 }
  0x94   : > { %407 = vst.msk [vmem:[#allocation2 + $0x10] sm:$0xff] %vm405_vm1, %v348_v24  ;;  %v374_v30 = vpop.permute.xlu2 %373 }
  0x95   : > { %409 = vst.msk [vmem:[#allocation2 + $0x30] sm:$0xff] %vm405_vm1, %v352_v25 }
  0x96   : > { %420 = vst.msk [vmem:[#allocation2 + $0xe0] sm:$0xff] %vm405_vm1, %v374_v30 }
  0x99   : > { %604 = vrot.lane.b32.xlu0 %v4897_v28, %s4555_s19  ;;  %606 = vrot.lane.b32.xlu1 %v4900_v29, %s4555_s19 }
  0x9a   : > { %608 = vrot.lane.b32.xlu2 %v4912_v31, %s4555_s19 }
  0x9b   : > { %v358_v33 = vpop.permute.xlu0 %357  ;;  %v360_v34 = vpop.permute.xlu1 %359 }
  0x9c   : > { %412 = vst.msk [vmem:[#allocation2 + $0x60] sm:$0xff] %vm405_vm1, %v358_v33  ;;  %v380_v39 = vpop.permute.xlu2 %379 }
  0x9d   : > { %413 = vst.msk [vmem:[#allocation2 + $0x70] sm:$0xff] %vm405_vm1, %v360_v34 }
  0x9e   : > { %423 = vst.msk [vmem:[#allocation2 + $0x110] sm:$0xff] %vm405_vm1, %v380_v39 }
  0xa1   : > { %610 = vrot.lane.b32.xlu0 %v4927_v37, %s4555_s19  ;;  %612 = vrot.lane.b32.xlu1 %v4930_v38, %s4555_s19 }
  0xa2   : > { %614 = vrot.lane.b32.xlu2 %v4940_v40, %s4555_s19 }
  0xa3   : > { %v364_v42 = vpop.permute.xlu0 %363  ;;  %v366_v43 = vpop.permute.xlu1 %365 }
  0xa4   : > { %415 = vst.msk [vmem:[#allocation2 + $0x90] sm:$0xff] %vm405_vm1, %v364_v42  ;;  %v467_v49 = vpop.permute.xlu2 %466 }
  0xa5   : > { %416 = vst.msk [vmem:[#allocation2 + $0xa0] sm:$0xff] %vm405_vm1, %v366_v43 }
  0xa6   : > { %527 = vst.msk [vmem:[#allocation2] sm:$0xff] %vm526_vm2, %v467_v49  ;;  %v5040_v49 = vld [vmem:[%s4639_s10 + $0xfa] sm:$0xff] }
  0xa9   : > { %616 = vrot.lane.b32.xlu0 %v4947_v44, %s4555_s19  ;;  %618 = vrot.lane.b32.xlu1 %v4950_v45, %s4555_s19 }
  0xaa   : > { %620 = vrot.lane.b32.xlu2 %v4958_v50, %s4555_s19 }
  0xab   : > { %v370_v51 = vpop.permute.xlu0 %369  ;;  %v372_v52 = vpop.permute.xlu1 %371 }
  0xac   : > { %418 = vst.msk [vmem:[#allocation2 + $0xc0] sm:$0xff] %vm405_vm1, %v370_v51  ;;  %v473_v62 = vpop.permute.xlu2 %472 }
  0xad   : > { %419 = vst.msk [vmem:[#allocation2 + $0xd0] sm:$0xff] %vm405_vm1, %v372_v52  ;;  %v4032_v52 = vld [vmem:[%s4639_s10 + $0x23] sm:$0xff] }
  0xae   : > { %530 = vst.msk [vmem:[#allocation2 + $0x30] sm:$0xff] %vm526_vm2, %v473_v62  ;;  %v5053_v62 = vld [vmem:[%s4639_s10 + $0x33] sm:$0xff] }
  0xb1   : > { %622 = vrot.lane.b32.xlu0 %v4965_v58, %s4555_s19  ;;  %624 = vrot.lane.b32.xlu1 %v4968_v61, %s4555_s19 }
  0xb2   : > { %626 = vrot.lane.b32.xlu2 %v4976_v21, %s4555_s19 }
  0xb3   : > { %v376_v24 = vpop.permute.xlu0 %375  ;;  %v378_v25 = vpop.permute.xlu1 %377 }
  0xb4   : > { %421 = vst.msk [vmem:[#allocation2 + $0xf0] sm:$0xff] %vm405_vm1, %v376_v24  ;;  %v479_v30 = vpop.permute.xlu2 %478 }
  0xb5   : > { %422 = vst.msk [vmem:[#allocation2 + $0x100] sm:$0xff] %vm405_vm1, %v378_v25  ;;  %v5060_v25 = vld [vmem:[%s4639_s10 + $0x3b] sm:$0xff] }
  0xb6   : > { %533 = vst.msk [vmem:[#allocation2 + $0x60] sm:$0xff] %vm526_vm2, %v479_v30 }
  0xb9   : > { %709 = vrot.lane.b32.xlu0 %v4643_v1, %s4556_s25  ;;  %711 = vrot.lane.b32.xlu1 %v4660_v4, %s4556_s25 }
  0xba   : > { %713 = vrot.lane.b32.xlu2 %v4654_v2, %s4556_s25 }
  0xbb   : > { %v382_v33 = vpop.permute.xlu0 %381  ;;  %v384_v34 = vpop.permute.xlu1 %383 }
  0xbc   : > { %424 = vst.msk [vmem:[#allocation2 + $0x120] sm:$0xff] %vm405_vm1, %v382_v33  ;;  %v485_v39 = vpop.permute.xlu2 %484 }
  0xbd   : > { %425 = vst.msk [vmem:[#allocation2 + $0x130] sm:$0xff] %vm405_vm1, %v384_v34  ;;  %v5067_v34 = vld [vmem:[%s4639_s10 + $0x4b] sm:$0xff]  ;;  %vm2480_vm1 = vcmask 31744  }
  0xbe   : > { %536 = vst.msk [vmem:[#allocation2 + $0x90] sm:$0xff] %vm526_vm2, %v485_v39  ;;  %v5070_v39 = vld [vmem:[%s4639_s10 + $0x53] sm:$0xff] }
  0xc1   : > { %715 = vrot.lane.b32.xlu0 %v4666_v5, %s4556_s25  ;;  %717 = vrot.lane.b32.xlu1 %v4671_v6, %s4556_s25 }
  0xc2   : > { %719 = vrot.lane.b32.xlu2 %v4674_v7, %s4556_s25 }
  0xc3   : > { %v469_v1 = vpop.permute.xlu0 %468  ;;  %v471_v4 = vpop.permute.xlu1 %470 }
  0xc4   : > { %528 = vst.msk [vmem:[#allocation2 + $0x10] sm:$0xff] %vm526_vm2, %v469_v1  ;;  %v491_v2 = vpop.permute.xlu2 %490 }
  0xc5   : > { %529 = vst.msk [vmem:[#allocation2 + $0x20] sm:$0xff] %vm526_vm2, %v471_v4  ;;  %v5078_v4 = vld [vmem:[%s4639_s10 + $0x63] sm:$0xff] }
  0xc6   : > { %539 = vst.msk [vmem:[#allocation2 + $0xc0] sm:$0xff] %vm526_vm2, %v491_v2 }
  0xc9   : > { %721 = vrot.lane.b32.xlu0 %v4681_v8, %s4556_s25  ;;  %723 = vrot.lane.b32.xlu1 %v4686_v9, %s4556_s25 }
  0xca   : > { %725 = vrot.lane.b32.xlu2 %v4689_v10, %s4556_s25 }
  0xcb   : > { %v475_v42 = vpop.permute.xlu0 %474  ;;  %v477_v6 = vpop.permute.xlu1 %476 }
  0xcc   : > { %531 = vst.msk [vmem:[#allocation2 + $0x40] sm:$0xff] %vm526_vm2, %v475_v42  ;;  %v497_v7 = vpop.permute.xlu2 %496 }
  0xcd   : > { %532 = vst.msk [vmem:[#allocation2 + $0x50] sm:$0xff] %vm526_vm2, %v477_v6  ;;  %v5085_v6 = vld [vmem:[%s4639_s10 + $0x6b] sm:$0xff] }
  0xce   : > { %542 = vst.msk [vmem:[#allocation2 + $0xf0] sm:$0xff] %vm526_vm2, %v497_v7  ;;  %v5088_v7 = vld [vmem:[%s4639_s10 + $0x7b] sm:$0xff] }
  0xd1   : > { %727 = vrot.lane.b32.xlu0 %v4696_v11, %s4556_s25  ;;  %729 = vrot.lane.b32.xlu1 %v4701_v12, %s4556_s25 }
  0xd2   : > { %731 = vrot.lane.b32.xlu2 %v4704_v13, %s4556_s25 }
  0xd3   : > { %v481_v43 = vpop.permute.xlu0 %480  ;;  %v483_v9 = vpop.permute.xlu1 %482 }
  0xd4   : > { %534 = vst.msk [vmem:[#allocation2 + $0x70] sm:$0xff] %vm526_vm2, %v481_v43  ;;  %v503_v10 = vpop.permute.xlu2 %502 }
  0xd5   : > { %535 = vst.msk [vmem:[#allocation2 + $0x80] sm:$0xff] %vm526_vm2, %v483_v9  ;;  %v5096_v9 = vld [vmem:[%s4639_s10 + $0x83] sm:$0xff] }
  0xd6   : > { %545 = vst.msk [vmem:[#allocation2 + $0x120] sm:$0xff] %vm526_vm2, %v503_v10 }
  0xd9   : > { %733 = vrot.lane.b32.xlu0 %v4711_v14, %s4556_s25  ;;  %735 = vrot.lane.b32.xlu1 %v4716_v15, %s4556_s25 }
  0xda   : > { %737 = vrot.lane.b32.xlu2 %v4719_v16, %s4556_s25  ;;  %v5037_v16 = vld [vmem:[%s4639_s10 + $0xf2] sm:$0xff] }
  0xdb   : > { %v487_v11 = vpop.permute.xlu0 %486  ;;  %v489_v12 = vpop.permute.xlu1 %488 }
  0xdc   : > { %537 = vst.msk [vmem:[#allocation2 + $0xa0] sm:$0xff] %vm526_vm2, %v487_v11  ;;  %v591_v13 = vpop.permute.xlu2 %590 }
  0xdd   : > { %538 = vst.msk [vmem:[#allocation2 + $0xb0] sm:$0xff] %vm526_vm2, %v489_v12  ;;  %v5103_v12 = vld [vmem:[%s4639_s10 + $0x93] sm:$0xff] }
  0xde   : > { %650 = vst.msk [vmem:[#allocation2 + $0x10] sm:$0xff] %vm648_vm3, %v591_v13  ;;  %v5106_v13 = vld [vmem:[%s4639_s10 + $0x9b] sm:$0xff] }
  0xe1   : > { %739 = vrot.lane.b32.xlu0 %v4726_v17, %s4556_s25  ;;  %741 = vrot.lane.b32.xlu1 %v4731_v18, %s4556_s25  ;;  %v4031_v17 = vld [vmem:[%s4639_s10 + $0x1b] sm:$0xff] }
  0xe2   : > { %743 = vrot.lane.b32.xlu2 %v4734_v19, %s4556_s25 }
  0xe3   : > { %v493_v14 = vpop.permute.xlu0 %492  ;;  %v495_v15 = vpop.permute.xlu1 %494 }
  0xe4   : > { %540 = vst.msk [vmem:[#allocation2 + $0xd0] sm:$0xff] %vm526_vm2, %v493_v14  ;;  %v597_v51 = vpop.permute.xlu2 %596 }
  0xe5   : > { %541 = vst.msk [vmem:[#allocation2 + $0xe0] sm:$0xff] %vm526_vm2, %v495_v15  ;;  %v5114_v15 = vld [vmem:[%s4639_s10 + $0xab] sm:$0xff] }
  0xe6   : > { %653 = vst.msk [vmem:[#allocation2 + $0x40] sm:$0xff] %vm648_vm3, %v597_v51 }
  0xe9   : > { %745 = vrot.lane.b32.xlu0 %v5037_v16, %s4556_s25  ;;  %747 = vrot.lane.b32.xlu1 %v5040_v49, %s4556_s25 }
  0xea   : > { %830 = vrot.lane.b32.xlu2 %v4031_v17, %s4557_s26 }
  0xeb   : > { %v499_v18 = vpop.permute.xlu0 %498  ;;  %v501_v19 = vpop.permute.xlu1 %500 }
  0xec   : > { %543 = vst.msk [vmem:[#allocation2 + $0x100] sm:$0xff] %vm526_vm2, %v499_v18  ;;  %v603_v24 = vpop.permute.xlu2 %602  ;;  %v5121_v18 = vld [vmem:[%s4639_s10 + $0xb3] sm:$0xff] }
  0xed   : > { %544 = vst.msk [vmem:[#allocation2 + $0x110] sm:$0xff] %vm526_vm2, %v501_v19  ;;  %v5124_v19 = vld [vmem:[%s4639_s10 + $0xc3] sm:$0xff] }
  0xee   : > { %656 = vst.msk [vmem:[#allocation2 + $0x70] sm:$0xff] %vm648_vm3, %v603_v24  ;;  %v5132_v24 = vld [vmem:[%s4639_s10 + $0xcb] sm:$0xff] }
  0xf1   : > { %832 = vrot.lane.b32.xlu0 %v4032_v52, %s4557_s26  ;;  %834 = vrot.lane.b32.xlu1 %v5053_v62, %s4557_s26 }
  0xf2   : > { %836 = vrot.lane.b32.xlu2 %v5060_v25, %s4557_s26 }
  0xf3   : > { %v505_v30 = vpop.permute.xlu0 %504  ;;  %v589_v33 = vpop.permute.xlu1 %588 }
  0xf4   : > { %546 = vst.msk [vmem:[#allocation2 + $0x130] sm:$0xff] %vm526_vm2, %v505_v30  ;;  %v609_v1 = vpop.permute.xlu2 %608 }
  0xf5   : > { %649 = vst.msk [vmem:[#allocation2] sm:$0xff] %vm648_vm3, %v589_v33 }
  0xf6   : > { %659 = vst.msk [vmem:[#allocation2 + $0xa0] sm:$0xff] %vm648_vm3, %v609_v1  ;;  %v5139_v1 = vld [vmem:[%s4639_s10 + $0xdb] sm:$0xff] }
  0xf9   : > { %838 = vrot.lane.b32.xlu0 %v5067_v34, %s4557_s26  ;;  %840 = vrot.lane.b32.xlu1 %v5070_v39, %s4557_s26 }
  0xfa   : > { %842 = vrot.lane.b32.xlu2 %v5078_v4, %s4557_s26 }
  0xfb   : > { %v593_v2 = vpop.permute.xlu0 %592  ;;  %v595_v42 = vpop.permute.xlu1 %594 }
  0xfc   : > { %651 = vst.msk [vmem:[#allocation2 + $0x20] sm:$0xff] %vm648_vm3, %v593_v2  ;;  %v615_v43 = vpop.permute.xlu2 %614  ;;  %v5142_v2 = vld [vmem:[%s4639_s10 + $0xe3] sm:$0xff] }
  0xfd   : > { %652 = vst.msk [vmem:[#allocation2 + $0x30] sm:$0xff] %vm648_vm3, %v595_v42 }
  0xfe   : > { %662 = vst.msk [vmem:[#allocation2 + $0xd0] sm:$0xff] %vm648_vm3, %v615_v43  ;;  %v4049_v43 = vld [vmem:[%s4639_s10 + $0xf3] sm:$0xff] }
 0x101   : > { %844 = vrot.lane.b32.xlu0 %v5085_v6, %s4557_s26  ;;  %846 = vrot.lane.b32.xlu1 %v5088_v7, %s4557_s26 }
 0x102   : > { %848 = vrot.lane.b32.xlu2 %v5096_v9, %s4557_s26 }
 0x103   : > { %v599_v10 = vpop.permute.xlu0 %598  ;;  %v601_v11 = vpop.permute.xlu1 %600 }
 0x104   : > { %654 = vst.msk [vmem:[#allocation2 + $0x50] sm:$0xff] %vm648_vm3, %v599_v10  ;;  %v621_v14 = vpop.permute.xlu2 %620 }
 0x105   : > { %655 = vst.msk [vmem:[#allocation2 + $0x60] sm:$0xff] %vm648_vm3, %v601_v11 }
 0x106   : > { %665 = vst.msk [vmem:[#allocation2 + $0x100] sm:$0xff] %vm648_vm3, %v621_v14  ;;  %v4050_v14 = vld [vmem:[%s4639_s10 + $0xfb] sm:$0xff] }
 0x109   : > { %850 = vrot.lane.b32.xlu0 %v5103_v12, %s4557_s26  ;;  %852 = vrot.lane.b32.xlu1 %v5106_v13, %s4557_s26 }
 0x10a   : > { %854 = vrot.lane.b32.xlu2 %v5114_v15, %s4557_s26 }
 0x10b   : > { %v605_v51 = vpop.permute.xlu0 %604  ;;  %v607_v17 = vpop.permute.xlu1 %606 }
 0x10c   : > { %657 = vst.msk [vmem:[#allocation2 + $0x80] sm:$0xff] %vm648_vm3, %v605_v51  ;;  %v627_v52 = vpop.permute.xlu2 %626 }
 0x10d   : > { %658 = vst.msk [vmem:[#allocation2 + $0x90] sm:$0xff] %vm648_vm3, %v607_v17 }
 0x10e   : > { %668 = vst.msk [vmem:[#allocation2 + $0x130] sm:$0xff] %vm648_vm3, %v627_v52 }
 0x111   : > { %856 = vrot.lane.b32.xlu0 %v5121_v18, %s4557_s26  ;;  %858 = vrot.lane.b32.xlu1 %v5124_v19, %s4557_s26 }
 0x112   : > { %860 = vrot.lane.b32.xlu2 %v5132_v24, %s4557_s26 }
 0x113   : > { %v611_v30 = vpop.permute.xlu0 %610  ;;  %v613_v33 = vpop.permute.xlu1 %612 }
 0x114   : > { %660 = vst.msk [vmem:[#allocation2 + $0xb0] sm:$0xff] %vm648_vm3, %v611_v30  ;;  %v714_v42 = vpop.permute.xlu2 %713 }
 0x115   : > { %661 = vst.msk [vmem:[#allocation2 + $0xc0] sm:$0xff] %vm648_vm3, %v613_v33 }
 0x116   : > { %772 = vst.msk [vmem:[#allocation2 + $0x20] sm:$0xff] %vm769_vm4, %v714_v42 }
 0x119   : > { %862 = vrot.lane.b32.xlu0 %v5139_v1, %s4557_s26  ;;  %864 = vrot.lane.b32.xlu1 %v5142_v2, %s4557_s26 }
 0x11a   : > { %866 = vrot.lane.b32.xlu2 %v4049_v43, %s4557_s26  ;;  %v4069_v43 = vld [vmem:[%s4639_s10 + $0x108] sm:$0xff] }
 0x11b   : > { %v617_v10 = vpop.permute.xlu0 %616  ;;  %v619_v11 = vpop.permute.xlu1 %618 }
 0x11c   : > { %663 = vst.msk [vmem:[#allocation2 + $0xe0] sm:$0xff] %vm648_vm3, %v617_v10  ;;  %v720_v51 = vpop.permute.xlu2 %719 }
 0x11d   : > { %664 = vst.msk [vmem:[#allocation2 + $0xf0] sm:$0xff] %vm648_vm3, %v619_v11 }
 0x11e   : > { %775 = vst.msk [vmem:[#allocation2 + $0x50] sm:$0xff] %vm769_vm4, %v720_v51 }
 0x121   : > { %868 = vrot.lane.b32.xlu0 %v4050_v14, %s4557_s26  ;;  %952 = vrot.lane.b32.xlu1 %v4771_v35, %s4558_s27 }
 0x122   : > { %954 = vrot.lane.b32.xlu2 %v4786_v41, %s4558_s27 }
 0x123   : > { %v623_v17 = vpop.permute.xlu0 %622  ;;  %v625_v52 = vpop.permute.xlu1 %624 }
 0x124   : > { %666 = vst.msk [vmem:[#allocation2 + $0x110] sm:$0xff] %vm648_vm3, %v623_v17  ;;  %v726_v30 = vpop.permute.xlu2 %725 }
 0x125   : > { %667 = vst.msk [vmem:[#allocation2 + $0x120] sm:$0xff] %vm648_vm3, %v625_v52 }
 0x126   : > { %778 = vst.msk [vmem:[#allocation2 + $0x80] sm:$0xff] %vm769_vm4, %v726_v30  ;;  %v4090_v30 = vld [vmem:[%s4639_s10 + $0x111] sm:$0xff] }
 0x129   : > { %956 = vrot.lane.b32.xlu0 %v4797_v46, %s4558_s27  ;;  %958 = vrot.lane.b32.xlu1 %v4802_v47, %s4558_s27 }
 0x12a   : > { %960 = vrot.lane.b32.xlu2 %v4808_v48, %s4558_s27 }
 0x12b   : > { %v710_v33 = vpop.permute.xlu0 %709  ;;  %v712_v35 = vpop.permute.xlu1 %711 }
 0x12c   : > { %770 = vst.msk [vmem:[#allocation2] sm:$0xff] %vm769_vm4, %v710_v33  ;;  %v732_v41 = vpop.permute.xlu2 %731 }
 0x12d   : > { %771 = vst.msk [vmem:[#allocation2 + $0x10] sm:$0xff] %vm769_vm4, %v712_v35 }
 0x12e   : > { %781 = vst.msk [vmem:[#allocation2 + $0xb0] sm:$0xff] %vm769_vm4, %v732_v41 }
 0x131   : > { %962 = vrot.lane.b32.xlu0 %v4819_v53, %s4558_s27  ;;  %964 = vrot.lane.b32.xlu1 %v4824_v54, %s4558_s27 }
 0x132   : > { %966 = vrot.lane.b32.xlu2 %v4830_v55, %s4558_s27 }
 0x133   : > { %v716_v46 = vpop.permute.xlu0 %715  ;;  %v718_v47 = vpop.permute.xlu1 %717 }
 0x134   : > { %773 = vst.msk [vmem:[#allocation2 + $0x30] sm:$0xff] %vm769_vm4, %v716_v46  ;;  %v738_v48 = vpop.permute.xlu2 %737  ;;  %v5288_v46 = vld [vmem:[%s4639_s10 + $0x52] sm:$0xff] }
 0x135   : > { %774 = vst.msk [vmem:[#allocation2 + $0x40] sm:$0xff] %vm769_vm4, %v718_v47 }
 0x136   : > { %784 = vst.msk [vmem:[#allocation2 + $0xe0] sm:$0xff] %vm769_vm4, %v738_v48 }
 0x139   : > { %968 = vrot.lane.b32.xlu0 %v4849_v60, %s4558_s27  ;;  %970 = vrot.lane.b32.xlu1 %v4854_v63, %s4558_s27 }
 0x13a   : > { %972 = vrot.lane.b32.xlu2 %v4861_v0, %s4558_s27 }
 0x13b   : > { %v722_v53 = vpop.permute.xlu0 %721  ;;  %v724_v54 = vpop.permute.xlu1 %723 }
 0x13c   : > { %776 = vst.msk [vmem:[#allocation2 + $0x60] sm:$0xff] %vm769_vm4, %v722_v53  ;;  %v744_v55 = vpop.permute.xlu2 %743  ;;  %v5295_v53 = vld [vmem:[%s4639_s10 + $0x6a] sm:$0xff] }
 0x13d   : > { %777 = vst.msk [vmem:[#allocation2 + $0x70] sm:$0xff] %vm769_vm4, %v724_v54 }
 0x13e   : > { %787 = vst.msk [vmem:[#allocation2 + $0x110] sm:$0xff] %vm769_vm4, %v744_v55 }
 0x141   : > { %974 = vrot.lane.b32.xlu0 %v4882_v23, %s4558_s27  ;;  %976 = vrot.lane.b32.xlu1 %v4887_v26, %s4558_s27  ;;  %v4067_v23 = vld [vmem:[%s4639_s10 + $0xf0] sm:$0xff] }
 0x142   : > { %978 = vrot.lane.b32.xlu2 %v4894_v27, %s4558_s27  ;;  %v4068_v27 = vld [vmem:[%s4639_s10 + $0xf8] sm:$0xff] }
 0x143   : > { %v728_v60 = vpop.permute.xlu0 %727  ;;  %v730_v63 = vpop.permute.xlu1 %729 }
 0x144   : > { %779 = vst.msk [vmem:[#allocation2 + $0x90] sm:$0xff] %vm769_vm4, %v728_v60  ;;  %v831_v0 = vpop.permute.xlu2 %830 }
 0x145   : > { %780 = vst.msk [vmem:[#allocation2 + $0xa0] sm:$0xff] %vm769_vm4, %v730_v63  ;;  %v5310_v63 = vld [vmem:[%s4639_s10 + $0x82] sm:$0xff] }
 0x146   : > { %891 = vst.msk [vmem:[#allocation2] sm:$0xff] %vm890_vm5, %v831_v0  ;;  %v5313_v0 = vld [vmem:[%s4639_s10 + $0x92] sm:$0xff] }
 0x149   : > { %980 = vrot.lane.b32.xlu0 %v4915_v32, %s4558_s27  ;;  %982 = vrot.lane.b32.xlu1 %v4920_v36, %s4558_s27  ;;  %v4070_v32 = vld [vmem:[%s4639_s10 + $0x110] sm:$0xff] }
 0x14a   : > { %984 = vrot.lane.b32.xlu2 %v4067_v23, %s4558_s27  ;;  %v5321_v23 = vld [vmem:[%s4639_s10 + $0x9a] sm:$0xff] }
 0x14b   : > { %v734_v26 = vpop.permute.xlu0 %733  ;;  %v736_v42 = vpop.permute.xlu1 %735 }
 0x14c   : > { %782 = vst.msk [vmem:[#allocation2 + $0xc0] sm:$0xff] %vm769_vm4, %v734_v26  ;;  %v837_v10 = vpop.permute.xlu2 %836 }
 0x14d   : > { %783 = vst.msk [vmem:[#allocation2 + $0xd0] sm:$0xff] %vm769_vm4, %v736_v42 }
 0x14e   : > { %894 = vst.msk [vmem:[#allocation2 + $0x30] sm:$0xff] %vm890_vm5, %v837_v10 }
 0x151   : > { %986 = vrot.lane.b32.xlu0 %v4068_v27, %s4558_s27  ;;  %988 = vrot.lane.b32.xlu1 %v4069_v43, %s4558_s27  ;;  %v5328_v27 = vld [vmem:[%s4639_s10 + $0xaa] sm:$0xff]  ;;  %v5331_v43 = vld [vmem:[%s4639_s10 + $0xb2] sm:$0xff] }
 0x152   : > { %990 = vrot.lane.b32.xlu2 %v4070_v32, %s4558_s27  ;;  %v5339_v32 = vld [vmem:[%s4639_s10 + $0xc2] sm:$0xff] }
 0x153   : > { %v740_v36 = vpop.permute.xlu0 %739  ;;  %v742_v11 = vpop.permute.xlu1 %741 }
 0x154   : > { %785 = vst.msk [vmem:[#allocation2 + $0xf0] sm:$0xff] %vm769_vm4, %v740_v36  ;;  %v843_v14 = vpop.permute.xlu2 %842 }
 0x155   : > { %786 = vst.msk [vmem:[#allocation2 + $0x100] sm:$0xff] %vm769_vm4, %v742_v11 }
 0x156   : > { %897 = vst.msk [vmem:[#allocation2 + $0x60] sm:$0xff] %vm890_vm5, %v843_v14  ;;  %v5346_v14 = vld [vmem:[%s4639_s10 + $0xca] sm:$0xff] }
 0x159   : > { %1073 = vrot.lane.b32.xlu0 %v4835_v56, %s4559_s28  ;;  %1075 = vrot.lane.b32.xlu1 %v4838_v57, %s4559_s28 }
 0x15a   : > { %1077 = vrot.lane.b32.xlu2 %v4846_v59, %s4559_s28 }
 0x15b   : > { %v746_v51 = vpop.permute.xlu0 %745  ;;  %v748_v17 = vpop.permute.xlu1 %747 }
 0x15c   : > { %788 = vst.msk [vmem:[#allocation2 + $0x120] sm:$0xff] %vm769_vm4, %v746_v51  ;;  %v849_v52 = vpop.permute.xlu2 %848  ;;  %v5349_v51 = vld [vmem:[%s4639_s10 + $0xda] sm:$0xff] }
 0x15d   : > { %789 = vst.msk [vmem:[#allocation2 + $0x130] sm:$0xff] %vm769_vm4, %v748_v17 }
 0x15e   : > { %900 = vst.msk [vmem:[#allocation2 + $0x90] sm:$0xff] %vm890_vm5, %v849_v52  ;;  %v5357_v52 = vld [vmem:[%s4639_s10 + $0xe2] sm:$0xff] }
 0x161   : > { %1079 = vrot.lane.b32.xlu0 %v4864_v3, %s4559_s28  ;;  %1081 = vrot.lane.b32.xlu1 %v4867_v20, %s4559_s28 }
 0x162   : > { %1083 = vrot.lane.b32.xlu2 %v4879_v22, %s4559_s28 }
 0x163   : > { %v833_v56 = vpop.permute.xlu0 %832  ;;  %v835_v57 = vpop.permute.xlu1 %834 }
 0x164   : > { %892 = vst.msk [vmem:[#allocation2 + $0x10] sm:$0xff] %vm890_vm5, %v833_v56  ;;  %v855_v59 = vpop.permute.xlu2 %854 }
 0x165   : > { %893 = vst.msk [vmem:[#allocation2 + $0x20] sm:$0xff] %vm890_vm5, %v835_v57 }
 0x166   : > { %903 = vst.msk [vmem:[#allocation2 + $0xc0] sm:$0xff] %vm890_vm5, %v855_v59 }
 0x169   : > { %1085 = vrot.lane.b32.xlu0 %v4897_v28, %s4559_s28  ;;  %1087 = vrot.lane.b32.xlu1 %v4900_v29, %s4559_s28 }
 0x16a   : > { %1089 = vrot.lane.b32.xlu2 %v4912_v31, %s4559_s28 }
 0x16b   : > { %v839_v3 = vpop.permute.xlu0 %838  ;;  %v841_v20 = vpop.permute.xlu1 %840 }
 0x16c   : > { %895 = vst.msk [vmem:[#allocation2 + $0x40] sm:$0xff] %vm890_vm5, %v839_v3  ;;  %v861_v22 = vpop.permute.xlu2 %860  ;;  %v5369_v3 = vld [vmem:[%s4639_s10 + $0x10a] sm:$0xff] }
 0x16d   : > { %896 = vst.msk [vmem:[#allocation2 + $0x50] sm:$0xff] %vm890_vm5, %v841_v20 }
 0x16e   : > { %906 = vst.msk [vmem:[#allocation2 + $0xf0] sm:$0xff] %vm890_vm5, %v861_v22 }
 0x171   : > { %1091 = vrot.lane.b32.xlu0 %v4927_v37, %s4559_s28  ;;  %1093 = vrot.lane.b32.xlu1 %v4930_v38, %s4559_s28 }
 0x172   : > { %1095 = vrot.lane.b32.xlu2 %v4940_v40, %s4559_s28 }
 0x173   : > { %v845_v28 = vpop.permute.xlu0 %844  ;;  %v847_v29 = vpop.permute.xlu1 %846 }
 0x174   : > { %898 = vst.msk [vmem:[#allocation2 + $0x70] sm:$0xff] %vm890_vm5, %v845_v28  ;;  %v867_v31 = vpop.permute.xlu2 %866  ;;  %v4110_v28 = vld [vmem:[%s4639_s10 + $0x112] sm:$0xff] }
 0x175   : > { %899 = vst.msk [vmem:[#allocation2 + $0x80] sm:$0xff] %vm890_vm5, %v847_v29 }
 0x176   : > { %909 = vst.msk [vmem:[#allocation2 + $0x120] sm:$0xff] %vm890_vm5, %v867_v31 }
 0x179   : > { %1097 = vrot.lane.b32.xlu0 %v4947_v44, %s4559_s28  ;;  %1099 = vrot.lane.b32.xlu1 %v4950_v45, %s4559_s28 }
 0x17a   : > { %1101 = vrot.lane.b32.xlu2 %v4958_v50, %s4559_s28  ;;  %v4089_v50 = vld [vmem:[%s4639_s10 + $0x109] sm:$0xff] }
 0x17b   : > { %v851_v37 = vpop.permute.xlu0 %850  ;;  %v853_v38 = vpop.permute.xlu1 %852 }
 0x17c   : > { %901 = vst.msk [vmem:[#allocation2 + $0xa0] sm:$0xff] %vm890_vm5, %v851_v37  ;;  %v955_v40 = vpop.permute.xlu2 %954 }
 0x17d   : > { %902 = vst.msk [vmem:[#allocation2 + $0xb0] sm:$0xff] %vm890_vm5, %v853_v38 }
 0x17e   : > { %1014 = vst.msk [vmem:[#allocation2 + $0x10] sm:$0xff] %vm1012_vm6, %v955_v40 }
 0x181   : > { %1103 = vrot.lane.b32.xlu0 %v4965_v58, %s4559_s28  ;;  %1105 = vrot.lane.b32.xlu1 %v4968_v61, %s4559_s28  ;;  %v4091_v58 = vld [vmem:[%s4639_s10 + $0x32] sm:$0xff] }
 0x182   : > { %1107 = vrot.lane.b32.xlu2 %v4976_v21, %s4559_s28  ;;  %v5280_v21 = vld [vmem:[%s4639_s10 + $0x4a] sm:$0xff] }
 0x183   : > { %v857_v44 = vpop.permute.xlu0 %856  ;;  %v859_v45 = vpop.permute.xlu1 %858 }
 0x184   : > { %904 = vst.msk [vmem:[#allocation2 + $0xd0] sm:$0xff] %vm890_vm5, %v857_v44  ;;  %v961_v33 = vpop.permute.xlu2 %960 }
 0x185   : > { %905 = vst.msk [vmem:[#allocation2 + $0xe0] sm:$0xff] %vm890_vm5, %v859_v45 }
 0x186   : > { %1017 = vst.msk [vmem:[#allocation2 + $0x40] sm:$0xff] %vm1012_vm6, %v961_v33 }
 0x189   : > { %1109 = vrot.lane.b32.xlu0 %v4089_v50, %s4559_s28  ;;  %1111 = vrot.lane.b32.xlu1 %v4090_v30, %s4559_s28 }
 0x18a   : > { %1194 = vrot.lane.b32.xlu2 %v4091_v58, %s4560_s29 }
 0x18b   : > { %v863_v61 = vpop.permute.xlu0 %862  ;;  %v865_v35 = vpop.permute.xlu1 %864 }
 0x18c   : > { %907 = vst.msk [vmem:[#allocation2 + $0x100] sm:$0xff] %vm890_vm5, %v863_v61  ;;  %v967_v41 = vpop.permute.xlu2 %966  ;;  %v4211_v61 = vld [vmem:[%s4639_s10 + $0x60] sm:$0xff] }
 0x18d   : > { %908 = vst.msk [vmem:[#allocation2 + $0x110] sm:$0xff] %vm890_vm5, %v865_v35  ;;  %v4231_v35 = vld [vmem:[%s4639_s10 + $0x62] sm:$0xff] }
 0x18e   : > { %1020 = vst.msk [vmem:[#allocation2 + $0x70] sm:$0xff] %vm1012_vm6, %v967_v41 }
 0x191   : > { %1196 = vrot.lane.b32.xlu0 %v4666_v5, %s4560_s29  ;;  %1198 = vrot.lane.b32.xlu1 %v5280_v21, %s4560_s29  ;;  %v5303_v5 = vld [vmem:[%s4639_s10 + $0x7a] sm:$0xff] }
 0x192   : > { %1200 = vrot.lane.b32.xlu2 %v5288_v46, %s4560_s29 }
 0x193   : > { %v869_v47 = vpop.permute.xlu0 %868  ;;  %v953_v48 = vpop.permute.xlu1 %952 }
 0x194   : > { %910 = vst.msk [vmem:[#allocation2 + $0x130] sm:$0xff] %vm890_vm5, %v869_v47  ;;  %v973_v54 = vpop.permute.xlu2 %972 }
 0x195   : > { %1013 = vst.msk [vmem:[#allocation2] sm:$0xff] %vm1012_vm6, %v953_v48 }
 0x196   : > { %1023 = vst.msk [vmem:[#allocation2 + $0xa0] sm:$0xff] %vm1012_vm6, %v973_v54 }
 0x199   : > { %1202 = vrot.lane.b32.xlu0 %v4681_v8, %s4560_s29  ;;  %1204 = vrot.lane.b32.xlu1 %v5295_v53, %s4560_s29 }
 0x19a   : > { %1206 = vrot.lane.b32.xlu2 %v5303_v5, %s4560_s29 }
 0x19b   : > { %v957_v55 = vpop.permute.xlu0 %956  ;;  %v959_v60 = vpop.permute.xlu1 %958 }
 0x19c   : > { %1015 = vst.msk [vmem:[#allocation2 + $0x20] sm:$0xff] %vm1012_vm6, %v957_v55  ;;  %v979_v8 = vpop.permute.xlu2 %978 }
 0x19d   : > { %1016 = vst.msk [vmem:[#allocation2 + $0x30] sm:$0xff] %vm1012_vm6, %v959_v60 }
 0x19e   : > { %1026 = vst.msk [vmem:[#allocation2 + $0xd0] sm:$0xff] %vm1012_vm6, %v979_v8  ;;  %v4212_v8 = vld [vmem:[%s4639_s10 + $0x68] sm:$0xff] }
 0x1a1   : > { %1208 = vrot.lane.b32.xlu0 %v5310_v63, %s4560_s29  ;;  %1210 = vrot.lane.b32.xlu1 %v5313_v0, %s4560_s29 }
 0x1a2   : > { %1212 = vrot.lane.b32.xlu2 %v5321_v23, %s4560_s29 }
 0x1a3   : > { %v963_v26 = vpop.permute.xlu0 %962  ;;  %v965_v42 = vpop.permute.xlu1 %964 }
 0x1a4   : > { %1018 = vst.msk [vmem:[#allocation2 + $0x50] sm:$0xff] %vm1012_vm6, %v963_v26  ;;  %v985_v10 = vpop.permute.xlu2 %984 }
 0x1a5   : > { %1019 = vst.msk [vmem:[#allocation2 + $0x60] sm:$0xff] %vm1012_vm6, %v965_v42 }
 0x1a6   : > { %1029 = vst.msk [vmem:[#allocation2 + $0x100] sm:$0xff] %vm1012_vm6, %v985_v10 }
 0x1a9   : > { %1214 = vrot.lane.b32.xlu0 %v5328_v27, %s4560_s29  ;;  %1216 = vrot.lane.b32.xlu1 %v5331_v43, %s4560_s29 }
 0x1aa   : > { %1218 = vrot.lane.b32.xlu2 %v5339_v32, %s4560_s29 }
 0x1ab   : > { %v969_v36 = vpop.permute.xlu0 %968  ;;  %v971_v11 = vpop.permute.xlu1 %970 }
 0x1ac   : > { %1021 = vst.msk [vmem:[#allocation2 + $0x80] sm:$0xff] %vm1012_vm6, %v969_v36  ;;  %v991_v17 = vpop.permute.xlu2 %990 }
 0x1ad   : > { %1022 = vst.msk [vmem:[#allocation2 + $0x90] sm:$0xff] %vm1012_vm6, %v971_v11 }
 0x1ae   : > { %1032 = vst.msk [vmem:[#allocation2 + $0x130] sm:$0xff] %vm1012_vm6, %v991_v17 }
 0x1b1   : > { %1220 = vrot.lane.b32.xlu0 %v5346_v14, %s4560_s29  ;;  %1222 = vrot.lane.b32.xlu1 %v5349_v51, %s4560_s29 }
 0x1b2   : > { %1224 = vrot.lane.b32.xlu2 %v5357_v52, %s4560_s29 }
 0x1b3   : > { %v975_v56 = vpop.permute.xlu0 %974  ;;  %v977_v57 = vpop.permute.xlu1 %976 }
 0x1b4   : > { %1024 = vst.msk [vmem:[#allocation2 + $0xb0] sm:$0xff] %vm1012_vm6, %v975_v56  ;;  %v1078_v59 = vpop.permute.xlu2 %1077  ;;  %v4213_v56 = vld [vmem:[%s4639_s10 + $0x78] sm:$0xff] }
 0x1b5   : > { %1025 = vst.msk [vmem:[#allocation2 + $0xc0] sm:$0xff] %vm1012_vm6, %v977_v57 }
 0x1b6   : > { %1136 = vst.msk [vmem:[#allocation2 + $0x20] sm:$0xff] %vm1133_vm7, %v1078_v59  ;;  %v4134_v59 = vld [vmem:[%s4639_s10 + $0x54] sm:$0xff] }
 0x1b9   : > { %1226 = vrot.lane.b32.xlu0 %v5037_v16, %s4560_s29  ;;  %1228 = vrot.lane.b32.xlu1 %v5040_v49, %s4560_s29 }
 0x1ba   : > { %1230 = vrot.lane.b32.xlu2 %v5369_v3, %s4560_s29 }
 0x1bb   : > { %v981_v20 = vpop.permute.xlu0 %980  ;;  %v983_v22 = vpop.permute.xlu1 %982 }
 0x1bc   : > { %1027 = vst.msk [vmem:[#allocation2 + $0xe0] sm:$0xff] %vm1012_vm6, %v981_v20  ;;  %v1084_v29 = vpop.permute.xlu2 %1083 }
 0x1bd   : > { %1028 = vst.msk [vmem:[#allocation2 + $0xf0] sm:$0xff] %vm1012_vm6, %v983_v22 }
 0x1be   : > { %1139 = vst.msk [vmem:[#allocation2 + $0x50] sm:$0xff] %vm1133_vm7, %v1084_v29 }
 0x1c1   : > { %1232 = vrot.lane.b32.xlu0 %v4110_v28, %s4560_s29  ;;  %1315 = vrot.lane.b32.xlu1 %v5053_v62, %s4561_s30 }
 0x1c2   : > { %1317 = vrot.lane.b32.xlu2 %v5060_v25, %s4561_s30 }
 0x1c3   : > { %v987_v16 = vpop.permute.xlu0 %986  ;;  %v989_v49 = vpop.permute.xlu1 %988 }
 0x1c4   : > { %1030 = vst.msk [vmem:[#allocation2 + $0x110] sm:$0xff] %vm1012_vm6, %v987_v16  ;;  %v1090_v31 = vpop.permute.xlu2 %1089 }
 0x1c5   : > { %1031 = vst.msk [vmem:[#allocation2 + $0x120] sm:$0xff] %vm1012_vm6, %v989_v49  ;;  %v4214_v49 = vld [vmem:[%s4639_s10 + $0x80] sm:$0xff] }
 0x1c6   : > { %1142 = vst.msk [vmem:[#allocation2 + $0x80] sm:$0xff] %vm1133_vm7, %v1090_v31 }
 0x1c9   : > { %1319 = vrot.lane.b32.xlu0 %v5067_v34, %s4561_s30  ;;  %1321 = vrot.lane.b32.xlu1 %v5070_v39, %s4561_s30 }
 0x1ca   : > { %1323 = vrot.lane.b32.xlu2 %v5078_v4, %s4561_s30 }
 0x1cb   : > { %v1074_v37 = vpop.permute.xlu0 %1073  ;;  %v1076_v62 = vpop.permute.xlu1 %1075 }
 0x1cc   : > { %1134 = vst.msk [vmem:[#allocation2] sm:$0xff] %vm1133_vm7, %v1074_v37  ;;  %v1096_v25 = vpop.permute.xlu2 %1095 }
 0x1cd   : > { %1135 = vst.msk [vmem:[#allocation2 + $0x10] sm:$0xff] %vm1133_vm7, %v1076_v62 }
 0x1ce   : > { %1145 = vst.msk [vmem:[#allocation2 + $0xb0] sm:$0xff] %vm1133_vm7, %v1096_v25 }
 0x1d1   : > { %1325 = vrot.lane.b32.xlu0 %v5085_v6, %s4561_s30  ;;  %1327 = vrot.lane.b32.xlu1 %v5088_v7, %s4561_s30 }
 0x1d2   : > { %1329 = vrot.lane.b32.xlu2 %v5096_v9, %s4561_s30 }
 0x1d3   : > { %v1080_v38 = vpop.permute.xlu0 %1079  ;;  %v1082_v40 = vpop.permute.xlu1 %1081 }
 0x1d4   : > { %1137 = vst.msk [vmem:[#allocation2 + $0x30] sm:$0xff] %vm1133_vm7, %v1080_v38  ;;  %v1102_v44 = vpop.permute.xlu2 %1101 }
 0x1d5   : > { %1138 = vst.msk [vmem:[#allocation2 + $0x40] sm:$0xff] %vm1133_vm7, %v1082_v40 }
 0x1d6   : > { %1148 = vst.msk [vmem:[#allocation2 + $0xe0] sm:$0xff] %vm1133_vm7, %v1102_v44  ;;  %v2219_v44 = vld [vmem:[%s6574_s1 + $0x78] sm:$0xff] }
 0x1d7   : > { %2285 = vmatpush.msra.mxu0 %v2219_v44 }
 0x1d9   : > { %1331 = vrot.lane.b32.xlu0 %v5103_v12, %s4561_s30  ;;  %1333 = vrot.lane.b32.xlu1 %v5106_v13, %s4561_s30 }
 0x1da   : > { %1335 = vrot.lane.b32.xlu2 %v5114_v15, %s4561_s30 }
 0x1db   : > { %v1086_v45 = vpop.permute.xlu0 %1085  ;;  %v1088_v50 = vpop.permute.xlu1 %1087 }
 0x1dc   : > { %1140 = vst.msk [vmem:[#allocation2 + $0x60] sm:$0xff] %vm1133_vm7, %v1086_v45  ;;  %v1108_v30 = vpop.permute.xlu2 %1107  ;;  %v2218_v45 = vld [vmem:[%s6574_s1 + $0x70] sm:$0xff] }
 0x1dd   : > { %1141 = vst.msk [vmem:[#allocation2 + $0x70] sm:$0xff] %vm1133_vm7, %v1088_v50  ;;  %v4215_v50 = vld [vmem:[%s4639_s10 + $0x90] sm:$0xff]  ;;  %2286 = vmatpush.msra.mxu0 %v2218_v45 }
 0x1de   : > { %1151 = vst.msk [vmem:[#allocation2 + $0x110] sm:$0xff] %vm1133_vm7, %v1108_v30 }
 0x1e1   : > { %1337 = vrot.lane.b32.xlu0 %v5121_v18, %s4561_s30  ;;  %1339 = vrot.lane.b32.xlu1 %v5124_v19, %s4561_s30  ;;  %v4131_v18 = vld [vmem:[%s4639_s10 + $0x34] sm:$0xff] }
 0x1e2   : > { %1341 = vrot.lane.b32.xlu2 %v5132_v24, %s4561_s30  ;;  %v4151_v24 = vld [vmem:[%s4639_s10 + $0x49] sm:$0xff] }
 0x1e3   : > { %v1092_v12 = vpop.permute.xlu0 %1091  ;;  %v1094_v13 = vpop.permute.xlu1 %1093 }
 0x1e4   : > { %1143 = vst.msk [vmem:[#allocation2 + $0x90] sm:$0xff] %vm1133_vm7, %v1092_v12  ;;  %v1195_v15 = vpop.permute.xlu2 %1194 }
 0x1e5   : > { %1144 = vst.msk [vmem:[#allocation2 + $0xa0] sm:$0xff] %vm1133_vm7, %v1094_v13 }
 0x1e6   : > { %1255 = vst.msk [vmem:[#allocation2] sm:$0xff] %vm1254_vm8, %v1195_v15  ;;  %v2216_v15 = vld [vmem:[%s6574_s1 + $0x60] sm:$0xff] }
 0x1e9   : > { %1343 = vrot.lane.b32.xlu0 %v5139_v1, %s4561_s30  ;;  %1345 = vrot.lane.b32.xlu1 %v5142_v2, %s4561_s30 }
 0x1ea   : > { %1436 = vrot.lane.b32.xlu2 %v4131_v18, %s4562_s6  ;;  %v2215_v18 = vld [vmem:[%s6574_s1 + $0x58] sm:$0xff] }
 0x1eb   : > { %v1098_v19 = vpop.permute.xlu0 %1097  ;;  %v1100_v33 = vpop.permute.xlu1 %1099 }
 0x1ec   : > { %1146 = vst.msk [vmem:[#allocation2 + $0xc0] sm:$0xff] %vm1133_vm7, %v1098_v19  ;;  %v1201_v58 = vpop.permute.xlu2 %1200  ;;  %v2214_v19 = vld [vmem:[%s6574_s1 + $0x50] sm:$0xff] }
 0x1ed   : > { %1147 = vst.msk [vmem:[#allocation2 + $0xd0] sm:$0xff] %vm1133_vm7, %v1100_v33  ;;  %v4156_v33 = vld [vmem:[%s4639_s10 + $0x81] sm:$0xff] }
 0x1ee   : > { %1258 = vst.msk [vmem:[#allocation2 + $0x30] sm:$0xff] %vm1254_vm8, %v1201_v58  ;;  %v2213_v58 = vld [vmem:[%s6574_s1 + $0x48] sm:$0xff] }
 0x1f1   : > { %1558 = vrot.lane.b32.xlu0 %v4151_v24, %s4563_s7  ;;  %1679 = vrot.lane.b32.xlu1 %v5280_v21, %s4564_s8  ;;  %v4132_v21 = vld [vmem:[%s4639_s10 + $0x3c] sm:$0xff] }
 0x1f2   : > { %1800 = vrot.lane.b32.xlu2 %v5067_v34, %s4565_s9  ;;  %v4152_v34 = vld [vmem:[%s4639_s10 + $0x51] sm:$0xff] }
 0x1f3   : > { %v1104_v1 = vpop.permute.xlu0 %1103  ;;  %v1106_v2 = vpop.permute.xlu1 %1105 }
 0x1f4   : > { %1149 = vst.msk [vmem:[#allocation2 + $0xf0] sm:$0xff] %vm1133_vm7, %v1104_v1  ;;  %v1207_v41 = vpop.permute.xlu2 %1206 }
 0x1f5   : > { %1150 = vst.msk [vmem:[#allocation2 + $0x100] sm:$0xff] %vm1133_vm7, %v1106_v2 }
 0x1f6   : > { %1261 = vst.msk [vmem:[#allocation2 + $0x60] sm:$0xff] %vm1254_vm8, %v1207_v41 }
 0x1f9   : > { %1922 = vrot.lane.b32.xlu0 %v4211_v61, %s4566_s11  ;;  %2043 = vrot.lane.b32.xlu1 %v4231_v35, %s4567_s12  ;;  %v2212_v61 = vld [vmem:[%s6574_s1 + $0x40] sm:$0xff] }
 0x1fa   : > { %1438 = vrot.lane.b32.xlu2 %v4132_v21, %s4562_s6  ;;  %v2210_v21 = vld [vmem:[%s6574_s1 + $0x30] sm:$0xff] }
 0x1fb   : > { %v1110_v47 = vpop.permute.xlu0 %1109  ;;  %v1112_v48 = vpop.permute.xlu1 %1111 }
 0x1fc   : > { %1152 = vst.msk [vmem:[#allocation2 + $0x120] sm:$0xff] %vm1133_vm7, %v1110_v47  ;;  %v1213_v54 = vpop.permute.xlu2 %1212  ;;  %v2209_v47 = vld [vmem:[%s6574_s1 + $0x28] sm:$0xff] }
 0x1fd   : > { %1153 = vst.msk [vmem:[#allocation2 + $0x130] sm:$0xff] %vm1133_vm7, %v1112_v48 }
 0x1fe   : > { %1264 = vst.msk [vmem:[#allocation2 + $0x90] sm:$0xff] %vm1254_vm8, %v1213_v54  ;;  %v2208_v54 = vld [vmem:[%s6574_s1 + $0x20] sm:$0xff] }
 0x201   : > { %1560 = vrot.lane.b32.xlu0 %v4152_v34, %s4563_s7  ;;  %1681 = vrot.lane.b32.xlu1 %v5288_v46, %s4564_s8  ;;  %v4133_v46 = vld [vmem:[%s4639_s10 + $0x4c] sm:$0xff] }
 0x202   : > { %1802 = vrot.lane.b32.xlu2 %v5070_v39, %s4565_s9  ;;  %v4153_v39 = vld [vmem:[%s4639_s10 + $0x61] sm:$0xff] }
 0x203   : > { %v1197_v55 = vpop.permute.xlu0 %1196  ;;  %v1199_v60 = vpop.permute.xlu1 %1198 }
 0x204   : > { %1256 = vst.msk [vmem:[#allocation2 + $0x10] sm:$0xff] %vm1254_vm8, %v1197_v55  ;;  %v1219_v26 = vpop.permute.xlu2 %1218  ;;  %v2207_v55 = vld [vmem:[%s6574_s1 + $0x18] sm:$0xff] }
 0x205   : > { %1257 = vst.msk [vmem:[#allocation2 + $0x20] sm:$0xff] %vm1254_vm8, %v1199_v60  ;;  %v2206_v60 = vld [vmem:[%s6574_s1 + $0x10] sm:$0xff] }
 0x206   : > { %1267 = vst.msk [vmem:[#allocation2 + $0xc0] sm:$0xff] %vm1254_vm8, %v1219_v26 }
 0x209   : > { %1924 = vrot.lane.b32.xlu0 %v4212_v8, %s4566_s11  ;;  %2045 = vrot.lane.b32.xlu1 %v5295_v53, %s4567_s12  ;;  %v4157_v8 = vld [vmem:[%s4639_s10 + $0x91] sm:$0xff] }
 0x20a   : > { %1440 = vrot.lane.b32.xlu2 %v4133_v46, %s4562_s6  ;;  %v4197_v46 = vld [vmem:[%s4639_s10 + $0x93] sm:$0xff] }
 0x20b   : > { %v1203_v42 = vpop.permute.xlu0 %1202  ;;  %v1205_v10 = vpop.permute.xlu1 %1204 }
 0x20c   : > { %1259 = vst.msk [vmem:[#allocation2 + $0x40] sm:$0xff] %vm1254_vm8, %v1203_v42  ;;  %v1225_v36 = vpop.permute.xlu2 %1224  ;;  %v2205_v42 = vld [vmem:[%s6574_s1 + $0x8] sm:$0xff] }
 0x20d   : > { %1260 = vst.msk [vmem:[#allocation2 + $0x50] sm:$0xff] %vm1254_vm8, %v1205_v10 }
 0x20e   : > { %1270 = vst.msk [vmem:[#allocation2 + $0xf0] sm:$0xff] %vm1254_vm8, %v1225_v36  ;;  %v2204_v36 = vld [vmem:[%s6574_s1] sm:$0xff] }
 0x211   : > { %1562 = vrot.lane.b32.xlu0 %v4153_v39, %s4563_s7  ;;  %1683 = vrot.lane.b32.xlu1 %v4231_v35, %s4564_s8  ;;  %v4216_v35 = vld [vmem:[%s4639_s10 + $0x98] sm:$0xff] }
 0x212   : > { %1804 = vrot.lane.b32.xlu2 %v5078_v4, %s4565_s9  ;;  %v4154_v4 = vld [vmem:[%s4639_s10 + $0x69] sm:$0xff] }
 0x213   : > { %v1209_v11 = vpop.permute.xlu0 %1208  ;;  %v1211_v17 = vpop.permute.xlu1 %1210 }
 0x214   : > { %1262 = vst.msk [vmem:[#allocation2 + $0x70] sm:$0xff] %vm1254_vm8, %v1209_v11  ;;  %v1231_v57 = vpop.permute.xlu2 %1230 }
 0x215   : > { %1263 = vst.msk [vmem:[#allocation2 + $0x80] sm:$0xff] %vm1254_vm8, %v1211_v17  ;;  %v4138_v17 = vld [vmem:[%s4639_s10 + $0x84] sm:$0xff] }
 0x216   : > { %1273 = vst.msk [vmem:[#allocation2 + $0x120] sm:$0xff] %vm1254_vm8, %v1231_v57 }
 0x219   : > { %1926 = vrot.lane.b32.xlu0 %v4213_v56, %s4566_s11  ;;  %2047 = vrot.lane.b32.xlu1 %v5303_v5, %s4567_s12 }
 0x21a   : > { %1442 = vrot.lane.b32.xlu2 %v4134_v59, %s4562_s6  ;;  %v4158_v59 = vld [vmem:[%s4639_s10 + $0x99] sm:$0xff] }
 0x21b   : > { %v1215_v20 = vpop.permute.xlu0 %1214  ;;  %v1217_v22 = vpop.permute.xlu1 %1216 }
 0x21c   : > { %1265 = vst.msk [vmem:[#allocation2 + $0xa0] sm:$0xff] %vm1254_vm8, %v1215_v20  ;;  %v1318_v28 = vpop.permute.xlu2 %1317 }
 0x21d   : > { %1266 = vst.msk [vmem:[#allocation2 + $0xb0] sm:$0xff] %vm1254_vm8, %v1217_v22  ;;  %v4198_v22 = vld [vmem:[%s4639_s10 + $0x9b] sm:$0xff] }
 0x21e   : > { %1377 = vst.msk [vmem:[#allocation2 + $0x10] sm:$0xff] %vm1375_vm9, %v1318_v28 }
 0x221   : > { %1564 = vrot.lane.b32.xlu0 %v4154_v4, %s4563_s7  ;;  %1685 = vrot.lane.b32.xlu1 %v5295_v53, %s4564_s8  ;;  %v4135_v53 = vld [vmem:[%s4639_s10 + $0x64] sm:$0xff] }
 0x222   : > { %1806 = vrot.lane.b32.xlu2 %v5085_v6, %s4565_s9  ;;  %v4155_v6 = vld [vmem:[%s4639_s10 + $0x79] sm:$0xff] }
 0x223   : > { %v1221_v29 = vpop.permute.xlu0 %1220  ;;  %v1223_v16 = vpop.permute.xlu1 %1222 }
 0x224   : > { %1268 = vst.msk [vmem:[#allocation2 + $0xd0] sm:$0xff] %vm1254_vm8, %v1221_v29  ;;  %v1324_v31 = vpop.permute.xlu2 %1323  ;;  %v4218_v29 = vld [vmem:[%s4639_s10 + $0xb0] sm:$0xff] }
 0x225   : > { %1269 = vst.msk [vmem:[#allocation2 + $0xe0] sm:$0xff] %vm1254_vm8, %v1223_v16 }
 0x226   : > { %1380 = vst.msk [vmem:[#allocation2 + $0x40] sm:$0xff] %vm1375_vm9, %v1324_v31 }
 0x229   : > { %1928 = vrot.lane.b32.xlu0 %v4214_v49, %s4566_s11  ;;  %2049 = vrot.lane.b32.xlu1 %v5310_v63, %s4567_s12 }
 0x22a   : > { %1444 = vrot.lane.b32.xlu2 %v4135_v53, %s4562_s6  ;;  %v4159_v53 = vld [vmem:[%s4639_s10 + $0xa9] sm:$0xff] }
 0x22b   : > { %v1227_v37 = vpop.permute.xlu0 %1226  ;;  %v1229_v62 = vpop.permute.xlu1 %1228 }
 0x22c   : > { %1271 = vst.msk [vmem:[#allocation2 + $0x100] sm:$0xff] %vm1254_vm8, %v1227_v37  ;;  %v1330_v25 = vpop.permute.xlu2 %1329 }
 0x22d   : > { %1272 = vst.msk [vmem:[#allocation2 + $0x110] sm:$0xff] %vm1254_vm8, %v1229_v62  ;;  %v4199_v62 = vld [vmem:[%s4639_s10 + $0xab] sm:$0xff] }
 0x22e   : > { %1383 = vst.msk [vmem:[#allocation2 + $0x70] sm:$0xff] %vm1375_vm9, %v1330_v25 }
 0x231   : > { %1566 = vrot.lane.b32.xlu0 %v4155_v6, %s4563_s7  ;;  %1687 = vrot.lane.b32.xlu1 %v5303_v5, %s4564_s8  ;;  %v2217_v5 = vld [vmem:[%s6574_s1 + $0x68] sm:$0xff]  ;;  %v4140_v6 = vld [vmem:[%s4639_s10 + $0x9c] sm:$0xff] }
 0x232   : > { %1808 = vrot.lane.b32.xlu2 %v5088_v7, %s4565_s9  ;;  %v4136_v7 = vld [vmem:[%s4639_s10 + $0x6c] sm:$0xff]  ;;  %2287 = vmatpush.msra.mxu0 %v2217_v5  ;;  %2149 = vst.msk [vmem:[#allocation2 + $0x58] sm:$0xff] %vm284_vm0, %v4140_v6 }
 0x233   : > { %v1233_v38 = vpop.permute.xlu0 %1232  ;;  %v1316_v40 = vpop.permute.xlu1 %1315  ;;  %v4200_v5 = vld [vmem:[%s4639_s10 + $0xb3] sm:$0xff] }
 0x234   : > { %1274 = vst.msk [vmem:[#allocation2 + $0x130] sm:$0xff] %vm1254_vm8, %v1233_v38  ;;  %v1336_v30 = vpop.permute.xlu2 %1335  ;;  %2288 = vmatpush.msra.mxu0 %v2216_v15 }
 0x235   : > { %1376 = vst.msk [vmem:[#allocation2] sm:$0xff] %vm1375_vm9, %v1316_v40 }
 0x236   : > { %1386 = vst.msk [vmem:[#allocation2 + $0xa0] sm:$0xff] %vm1375_vm9, %v1336_v30  ;;  %2289 = vmatpush.msra.mxu0 %v2215_v18  ;;  %v4160_v30 = vld [vmem:[%s4639_s10 + $0xb1] sm:$0xff] }
 0x238   : > { %2290 = vmatpush.msra.mxu0 %v2214_v19 }
 0x239   : > { %1930 = vrot.lane.b32.xlu0 %v4215_v50, %s4566_s11  ;;  %2051 = vrot.lane.b32.xlu1 %v5313_v0, %s4567_s12 }
 0x23a   : > { %1446 = vrot.lane.b32.xlu2 %v4136_v7, %s4562_s6  ;;  %2291 = vmatpush.msra.mxu0 %v2213_v58  ;;  %v4161_v58 = vld [vmem:[%s4639_s10 + $0xc1] sm:$0xff] }
 0x23b   : > { %v1320_v12 = vpop.permute.xlu0 %1319  ;;  %v1322_v13 = vpop.permute.xlu1 %1321 }
 0x23c   : > { %1378 = vst.msk [vmem:[#allocation2 + $0x20] sm:$0xff] %vm1375_vm9, %v1320_v12  ;;  %v1342_v24 = vpop.permute.xlu2 %1341  ;;  %2292 = vmatpush.msra.mxu0 %v2212_v61  ;;  %v4141_v12 = vld [vmem:[%s4639_s10 + $0xac] sm:$0xff]  ;;  %v4142_v61 = vld [vmem:[%s4639_s10 + $0xb4] sm:$0xff] }
 0x23d   : > { %1379 = vst.msk [vmem:[#allocation2 + $0x30] sm:$0xff] %vm1375_vm9, %v1322_v13 }
 0x23e   : > { %1389 = vst.msk [vmem:[#allocation2 + $0xd0] sm:$0xff] %vm1375_vm9, %v1342_v24 }
 0x23f   : > { %2150 = vst.msk [vmem:[#allocation2 + $0x68] sm:$0xff] %vm284_vm0, %v4141_v12 }
 0x240   : > { %2151 = vst.msk [vmem:[#allocation2 + $0x78] sm:$0xff] %vm284_vm0, %v4142_v61 }
 0x241   : > { %1568 = vrot.lane.b32.xlu0 %v4156_v33, %s4563_s7  ;;  %1689 = vrot.lane.b32.xlu1 %v5310_v63, %s4564_s8  ;;  %v2211_v63 = vld [vmem:[%s6574_s1 + $0x38] sm:$0xff] }
 0x242   : > { %1810 = vrot.lane.b32.xlu2 %v5096_v9, %s4565_s9  ;;  %2293 = vmatpush.msra.mxu0 %v2211_v63  ;;  %v4137_v9 = vld [vmem:[%s4639_s10 + $0x7c] sm:$0xff] }
 0x243   : > { %v1326_v1 = vpop.permute.xlu0 %1325  ;;  %v1328_v2 = vpop.permute.xlu1 %1327 }
 0x244   : > { %1381 = vst.msk [vmem:[#allocation2 + $0x50] sm:$0xff] %vm1375_vm9, %v1326_v1  ;;  %v1437_v41 = vpop.permute.xlu2 %1436  ;;  %2294 = vmatpush.msra.mxu0 %v2210_v21 }
 0x245   : > { %1382 = vst.msk [vmem:[#allocation2 + $0x60] sm:$0xff] %vm1375_vm9, %v1328_v2  ;;  %v4201_v2 = vld [vmem:[%s4639_s10 + $0xc3] sm:$0xff] }
 0x246   : > { %1497 = vst.msk [vmem:[#allocation2] sm:$0xff] %vm1496_vm10, %v1437_v41  ;;  %2295 = vmatpush.msra.mxu0 %v2209_v47 }
 0x248   : > { %2296 = vmatpush.msra.mxu0 %v2208_v54  ;;  %v4202_v54 = vld [vmem:[%s4639_s10 + $0xcb] sm:$0xff] }
 0x249   : > { %1932 = vrot.lane.b32.xlu0 %v4216_v35, %s4566_s11  ;;  %2053 = vrot.lane.b32.xlu1 %v5321_v23, %s4567_s12 }
 0x24a   : > { %1448 = vrot.lane.b32.xlu2 %v4137_v9, %s4562_s6  ;;  %2297 = vmatpush.msra.mxu0 %v2207_v55  ;;  %v4143_v55 = vld [vmem:[%s4639_s10 + $0xc4] sm:$0xff] }
 0x24b   : > { %v1332_v48 = vpop.permute.xlu0 %1331  ;;  %v1334_v34 = vpop.permute.xlu1 %1333  ;;  %2152 = vst.msk [vmem:[#allocation2 + $0x88] sm:$0xff] %vm284_vm0, %v4143_v55 }
 0x24c   : > { %1384 = vst.msk [vmem:[#allocation2 + $0x80] sm:$0xff] %vm1375_vm9, %v1332_v48  ;;  %v1801_v26 = vpop.permute.xlu2 %1800  ;;  %2298 = vmatpush.msra.mxu0 %v2206_v60  ;;  %v4162_v48 = vld [vmem:[%s4639_s10 + $0xc9] sm:$0xff] }
 0x24d   : > { %1385 = vst.msk [vmem:[#allocation2 + $0x90] sm:$0xff] %vm1375_vm9, %v1334_v34 }
 0x24e   : > { %2299 = vmatpush.msra.mxu0 %v2205_v42 }
 0x250   : > { %2300 = vmatpush.msra.mxu0 %v2204_v36 }
 0x251   : > { %1570 = vrot.lane.b32.xlu0 %v4157_v8, %s4563_s7  ;;  %1691 = vrot.lane.b32.xlu1 %v5313_v0, %s4564_s8  ;;  %v4217_v0 = vld [vmem:[%s4639_s10 + $0xa8] sm:$0xff] }
 0x252   : > { %1812 = vrot.lane.b32.xlu2 %v4197_v46, %s4565_s9  ;;  %v2220_v46 = vld [vmem:[%s6574_s1 + $0x80] sm:$0xff] }
 0x253   : > { %v1338_v10 = vpop.permute.xlu0 %1337  ;;  %v1340_v39 = vpop.permute.xlu1 %1339  ;;  %4448 = vmatpush.msra.mxu1 %v2220_v46  ;;  %2377 = vmatpush.msrb.mxu0 %v2220_v46  ;;  %v4207_v46 = vld [vmem:[%s4639_s10 + $0x10b] sm:$0xff] }
 0x254   : > { %1387 = vst.msk [vmem:[#allocation2 + $0xb0] sm:$0xff] %vm1375_vm9, %v1338_v10  ;;  %v1439_v11 = vpop.permute.xlu2 %1438  ;;  %v2175_v10 = vld [vmem:[#allocation2 + $0x58] sm:$0xff] }
 0x255   : > { %1388 = vst.msk [vmem:[#allocation2 + $0xc0] sm:$0xff] %vm1375_vm9, %v1340_v39  ;;  %4276 = vmatmul.msk.f32.vlgmr.msra.gmra.mxu1 %vm284_vm0, %v2175_v10 }
 0x256   : > { %1498 = vst.msk [vmem:[#allocation2 + $0x10] sm:$0xff] %vm1496_vm10, %v1439_v11 }
 0x259   : > { %1934 = vrot.lane.b32.xlu0 %v4217_v0, %s4566_s11  ;;  %2055 = vrot.lane.b32.xlu1 %v5328_v27, %s4567_s12  ;;  %v4163_v0 = vld [vmem:[%s4639_s10 + $0xd9] sm:$0xff] }
 0x25a   : > { %1450 = vrot.lane.b32.xlu2 %v4138_v17, %s4562_s6  ;;  %v4203_v17 = vld [vmem:[%s4639_s10 + $0xdb] sm:$0xff] }
 0x25b   : > { %v1344_v56 = vpop.permute.xlu0 %1343  ;;  %v1346_v57 = vpop.permute.xlu1 %1345 }
 0x25c   : > { %1390 = vst.msk [vmem:[#allocation2 + $0xe0] sm:$0xff] %vm1375_vm9, %v1344_v56  ;;  %v1803_v20 = vpop.permute.xlu2 %1802  ;;  %v4144_v56 = vld [vmem:[%s4639_s10 + $0xcc] sm:$0xff] }
 0x25d   : > { %1391 = vst.msk [vmem:[#allocation2 + $0xf0] sm:$0xff] %vm1375_vm9, %v1346_v57 }
 0x25e   : > { %2153 = vst.msk [vmem:[#allocation2 + $0x98] sm:$0xff] %vm284_vm0, %v4144_v56 }
 0x261   : > { %1572 = vrot.lane.b32.xlu0 %v4158_v59, %s4563_s7  ;;  %1693 = vrot.lane.b32.xlu1 %v5321_v23, %s4564_s8  ;;  %v4139_v23 = vld [vmem:[%s4639_s10 + $0x94] sm:$0xff] }
 0x262   : > { %1814 = vrot.lane.b32.xlu2 %v4198_v22, %s4565_s9  ;;  %v4223_v22 = vld [vmem:[%s4639_s10 + $0xf0] sm:$0xff] }
 0x263   : > { %v1559_v4 = vpop.permute.xlu0 %1558  ;;  %v1680_v28 = vpop.permute.xlu1 %1679 }
 0x264   : > { %1619 = vst.msk [vmem:[#allocation2] sm:$0xff] %vm1618_vm11, %v1559_v4  ;;  %v1441_v16 = vpop.permute.xlu2 %1440  ;;  %v4243_v4 = vld [vmem:[%s4639_s10 + $0xf2] sm:$0xff] }
 0x265   : > { %1740 = vst.msk [vmem:[#allocation2] sm:$0xff] %vm1739_vm12, %v1680_v28  ;;  %v2177_v28 = vld [vmem:[#allocation2 + $0x68] sm:$0xff] }
 0x266   : > { %1861 = vst.msk [vmem:[#allocation2] sm:$0xff] %vm1860_vm13, %v1801_v26  ;;  %4277 = vmatmul.msk.f32.gmra.mxu1 %vm284_vm0, %v2177_v28  ;;  %v4228_v28 = vld [vmem:[%s4639_s10 + $0x128] sm:$0xff] }
 0x267   : > { %1499 = vst.msk [vmem:[#allocation2 + $0x20] sm:$0xff] %vm1496_vm10, %v1441_v16 }
 0x269   : > { %1936 = vrot.lane.b32.xlu0 %v4218_v29, %s4566_s11  ;;  %2057 = vrot.lane.b32.xlu1 %v5331_v43, %s4567_s12 }
 0x26a   : > { %1452 = vrot.lane.b32.xlu2 %v4139_v23, %s4562_s6  ;;  %v4164_v23 = vld [vmem:[%s4639_s10 + $0xe1] sm:$0xff] }
 0x26b   : > { %v1923_v49 = vpop.permute.xlu0 %1922  ;;  %v2044_v31 = vpop.permute.xlu1 %2043 }
 0x26c   : > { %1983 = vst.msk [vmem:[#allocation2] sm:$0xff] %vm1982_vm14, %v1923_v49  ;;  %v1805_v37 = vpop.permute.xlu2 %1804 }
 0x26d   : > { %2104 = vst.msk [vmem:[#allocation2] sm:$0xff] %vm2103_vm15, %v2044_v31  ;;  %v4204_v31 = vld [vmem:[%s4639_s10 + $0xe3] sm:$0xff] }
 0x271   : > { %1574 = vrot.lane.b32.xlu0 %v4159_v53, %s4563_s7  ;;  %1695 = vrot.lane.b32.xlu1 %v5328_v27, %s4564_s8  ;;  %v4219_v27 = vld [vmem:[%s4639_s10 + $0xc0] sm:$0xff] }
 0x272   : > { %1816 = vrot.lane.b32.xlu2 %v4199_v62, %s4565_s9  ;;  %v4145_v53 = vld [vmem:[%s4639_s10 + $0xdc] sm:$0xff] }
 0x273   : > { %v1561_v25 = vpop.permute.xlu0 %1560  ;;  %v1682_v38 = vpop.permute.xlu1 %1681  ;;  %2154 = vst.msk [vmem:[#allocation2 + $0xa8] sm:$0xff] %vm284_vm0, %v4145_v53 }
 0x274   : > { %1620 = vst.msk [vmem:[#allocation2 + $0x10] sm:$0xff] %vm1618_vm11, %v1561_v25  ;;  %v2164_v40 = vld [vmem:[#allocation2] sm:$0xff]  ;;  %v1443_v44 = vpop.permute.xlu2 %1442  ;;  %v4224_v25 = vld [vmem:[%s4639_s10 + $0xf8] sm:$0xff] }
 0x275   : > { %1741 = vst.msk [vmem:[#allocation2 + $0x10] sm:$0xff] %vm1739_vm12, %v1682_v38  ;;  %2301 = vmatmul.f32.vlgmr.msra.gmra.mxu0 %v2164_v40  ;;  %v2179_v40 = vld [vmem:[#allocation2 + $0x78] sm:$0xff] }
 0x276   : > { %1862 = vst.msk [vmem:[#allocation2 + $0x10] sm:$0xff] %vm1860_vm13, %v1803_v20  ;;  %4278 = vmatmul.msk.f32.gmra.mxu1 %vm284_vm0, %v2179_v40 }
 0x277   : > { %1500 = vst.msk [vmem:[#allocation2 + $0x30] sm:$0xff] %vm1496_vm10, %v1443_v44 }
 0x279   : > { %1938 = vrot.lane.b32.xlu0 %v4219_v27, %s4566_s11  ;;  %2059 = vrot.lane.b32.xlu1 %v5339_v32, %s4567_s12 }
 0x27a   : > { %1454 = vrot.lane.b32.xlu2 %v4140_v6, %s4562_s6  ;;  %v2185_v10 = vld [vmem:[#allocation2 + $0xa8] sm:$0xff] }
 0x27b   : > { %v1925_v45 = vpop.permute.xlu0 %1924  ;;  %v2046_v50 = vpop.permute.xlu1 %2045 }
 0x27c   : > { %1984 = vst.msk [vmem:[#allocation2 + $0x10] sm:$0xff] %vm1982_vm14, %v1925_v45  ;;  %v1807_v7 = vpop.permute.xlu2 %1806  ;;  %v4147_v45 = vld [vmem:[%s4639_s10 + $0xf4] sm:$0xff] }
 0x27d   : > { %2105 = vst.msk [vmem:[#allocation2 + $0x10] sm:$0xff] %vm2103_vm15, %v2046_v50  ;;  %v4165_v50 = vld [vmem:[%s4639_s10 + $0xf1] sm:$0xff] }
 0x27e   : > { %2156 = vst.msk [vmem:[#allocation2 + $0xc8] sm:$0xff] %vm284_vm0, %v4147_v45 }
 0x281   : > { %1576 = vrot.lane.b32.xlu0 %v4160_v30, %s4563_s7  ;;  %1697 = vrot.lane.b32.xlu1 %v5331_v43, %s4564_s8  ;;  %v4220_v43 = vld [vmem:[%s4639_s10 + $0xc8] sm:$0xff] }
 0x282   : > { %1818 = vrot.lane.b32.xlu2 %v4200_v5, %s4565_s9  ;;  %v4146_v5 = vld [vmem:[%s4639_s10 + $0xe4] sm:$0xff] }
 0x283   : > { %v1563_v13 = vpop.permute.xlu0 %1562  ;;  %v1684_v15 = vpop.permute.xlu1 %1683  ;;  %2155 = vst.msk [vmem:[#allocation2 + $0xb8] sm:$0xff] %vm284_vm0, %v4146_v5 }
 0x284   : > { %1621 = vst.msk [vmem:[#allocation2 + $0x20] sm:$0xff] %vm1618_vm11, %v1563_v13  ;;  %v2166_v18 = vld [vmem:[#allocation2 + $0x10] sm:$0xff]  ;;  %v1445_v19 = vpop.permute.xlu2 %1444 }
 0x285   : > { %1742 = vst.msk [vmem:[#allocation2 + $0x20] sm:$0xff] %vm1739_vm12, %v1684_v15  ;;  %2304 = vmatmul.f32.gmra.mxu0 %v2166_v18  ;;  %v4225_v18 = vld [vmem:[%s4639_s10 + $0x108] sm:$0xff] }
 0x286   : > { %1863 = vst.msk [vmem:[#allocation2 + $0x20] sm:$0xff] %vm1860_vm13, %v1805_v37 }
 0x287   : > { %1501 = vst.msk [vmem:[#allocation2 + $0x40] sm:$0xff] %vm1496_vm10, %v1445_v19  ;;  %v2181_v19 = vld [vmem:[#allocation2 + $0x88] sm:$0xff] }
 0x288   : > { %4279 = vmatmul.msk.f32.gmra.mxu1 %vm284_vm0, %v2181_v19 }
 0x289   : > { %1940 = vrot.lane.b32.xlu0 %v4220_v43, %s4566_s11  ;;  %2061 = vrot.lane.b32.xlu1 %v5346_v14, %s4567_s12 }
 0x28a   : > { %1456 = vrot.lane.b32.xlu2 %v4141_v12, %s4562_s6 }
 0x28b   : > { %v1927_v33 = vpop.permute.xlu0 %1926  ;;  %v2048_v24 = vpop.permute.xlu1 %2047 }
 0x28c   : > { %1985 = vst.msk [vmem:[#allocation2 + $0x20] sm:$0xff] %vm1982_vm14, %v1927_v33  ;;  %v1809_v1 = vpop.permute.xlu2 %1808 }
 0x28d   : > { %2106 = vst.msk [vmem:[#allocation2 + $0x20] sm:$0xff] %vm2103_vm15, %v2048_v24 }
 0x291   : > { %1578 = vrot.lane.b32.xlu0 %v4161_v58, %s4563_s7  ;;  %1699 = vrot.lane.b32.xlu1 %v5339_v32, %s4564_s8  ;;  %v4221_v32 = vld [vmem:[%s4639_s10 + $0xd8] sm:$0xff] }
 0x292   : > { %1820 = vrot.lane.b32.xlu2 %v4201_v2, %s4565_s9  ;;  %v4166_v58 = vld [vmem:[%s4639_s10 + $0xf9] sm:$0xff] }
 0x293   : > { %v1565_v63 = vpop.permute.xlu0 %1564  ;;  %v1686_v35 = vpop.permute.xlu1 %1685  ;;  %v4206_v2 = vld [vmem:[%s4639_s10 + $0xfb] sm:$0xff] }
 0x294   : > { %1622 = vst.msk [vmem:[#allocation2 + $0x30] sm:$0xff] %vm1618_vm11, %v1565_v63  ;;  %v2168_v41 = vld [vmem:[#allocation2 + $0x20] sm:$0xff]  ;;  %v1447_v21 = vpop.permute.xlu2 %1446 }
 0x295   : > { %1743 = vst.msk [vmem:[#allocation2 + $0x30] sm:$0xff] %vm1739_vm12, %v1686_v35  ;;  %2307 = vmatmul.f32.gmra.mxu0 %v2168_v41  ;;  %v4226_v41 = vld [vmem:[%s4639_s10 + $0x110] sm:$0xff] }
 0x296   : > { %1864 = vst.msk [vmem:[#allocation2 + $0x30] sm:$0xff] %vm1860_vm13, %v1807_v7  ;;  %v4205_v7 = vld [vmem:[%s4639_s10 + $0xf3] sm:$0xff] }
 0x297   : > { %1502 = vst.msk [vmem:[#allocation2 + $0x50] sm:$0xff] %vm1496_vm10, %v1447_v21 }
 0x299   : > { %1942 = vrot.lane.b32.xlu0 %v4221_v32, %s4566_s11  ;;  %2063 = vrot.lane.b32.xlu1 %v5349_v51, %s4567_s12  ;;  %v4246_v32 = vld [vmem:[%s4639_s10 + $0x112] sm:$0xff] }
 0x29a   : > { %1458 = vrot.lane.b32.xlu2 %v4142_v61, %s4562_s6  ;;  %v4148_v61 = vld [vmem:[%s4639_s10 + $0xfc] sm:$0xff] }
 0x29b   : > { %v1929_v9 = vpop.permute.xlu0 %1928  ;;  %v2050_v47 = vpop.permute.xlu1 %2049  ;;  %2157 = vst.msk [vmem:[#allocation2 + $0xd8] sm:$0xff] %vm284_vm0, %v4148_v61 }
 0x29c   : > { %1986 = vst.msk [vmem:[#allocation2 + $0x30] sm:$0xff] %vm1982_vm14, %v1929_v9  ;;  %v1811_v34 = vpop.permute.xlu2 %1810  ;;  %v2183_v9 = vld [vmem:[#allocation2 + $0x98] sm:$0xff] }
 0x29d   : > { %2107 = vst.msk [vmem:[#allocation2 + $0x30] sm:$0xff] %vm2103_vm15, %v2050_v47  ;;  %4280 = vmatmul.msk.f32.gmra.mxu1 %vm284_vm0, %v2183_v9 }
 0x2a1   : > { %1580 = vrot.lane.b32.xlu0 %v4162_v48, %s4563_s7  ;;  %1701 = vrot.lane.b32.xlu1 %v5346_v14, %s4564_s8  ;;  %v4222_v14 = vld [vmem:[%s4639_s10 + $0xe0] sm:$0xff] }
 0x2a2   : > { %1822 = vrot.lane.b32.xlu2 %v4202_v54, %s4565_s9 }
 0x2a3   : > { %v1567_v60 = vpop.permute.xlu0 %1566  ;;  %v1688_v8 = vpop.permute.xlu1 %1687 }
 0x2a4   : > { %1623 = vst.msk [vmem:[#allocation2 + $0x40] sm:$0xff] %vm1618_vm11, %v1567_v60  ;;  %v2170_v26 = vld [vmem:[#allocation2 + $0x30] sm:$0xff]  ;;  %v1449_v42 = vpop.permute.xlu2 %1448 }
 0x2a5   : > { %1744 = vst.msk [vmem:[#allocation2 + $0x40] sm:$0xff] %vm1739_vm12, %v1688_v8  ;;  %2310 = vmatmul.f32.gmra.mxu0 %v2170_v26  ;;  %4281 = vmatmul.msk.f32.gmra.mxu1 %vm284_vm0, %v2185_v10 }
 0x2a6   : > { %1865 = vst.msk [vmem:[#allocation2 + $0x40] sm:$0xff] %vm1860_vm13, %v1809_v1 }
 0x2a7   : > { %1503 = vst.msk [vmem:[#allocation2 + $0x60] sm:$0xff] %vm1496_vm10, %v1449_v42 }
 0x2a9   : > { %1944 = vrot.lane.b32.xlu0 %v4222_v14, %s4566_s11  ;;  %2065 = vrot.lane.b32.xlu1 %v5357_v52, %s4567_s12  ;;  %v4227_v14 = vld [vmem:[%s4639_s10 + $0x120] sm:$0xff] }
 0x2aa   : > { %1460 = vrot.lane.b32.xlu2 %v4143_v55, %s4562_s6  ;;  %v4187_v55 = vld [vmem:[%s4639_s10 + $0x10a] sm:$0xff] }
 0x2ab   : > { %v1931_v39 = vpop.permute.xlu0 %1930  ;;  %v2052_v36 = vpop.permute.xlu1 %2051 }
 0x2ac   : > { %1987 = vst.msk [vmem:[#allocation2 + $0x40] sm:$0xff] %vm1982_vm14, %v1931_v39  ;;  %v1813_v11 = vpop.permute.xlu2 %1812  ;;  %v4247_v39 = vld [vmem:[%s4639_s10 + $0x122] sm:$0xff] }
 0x2ad   : > { %2108 = vst.msk [vmem:[#allocation2 + $0x40] sm:$0xff] %vm2103_vm15, %v2052_v36 }
 0x2b1   : > { %1582 = vrot.lane.b32.xlu0 %v4163_v0, %s4563_s7  ;;  %1703 = vrot.lane.b32.xlu1 %v5349_v51, %s4564_s8 }
 0x2b2   : > { %1824 = vrot.lane.b32.xlu2 %v4203_v17, %s4565_s9  ;;  %v4168_v17 = vld [vmem:[%s4639_s10 + $0x111] sm:$0xff] }
 0x2b3   : > { %v1569_v57 = vpop.permute.xlu0 %1568  ;;  %v1690_v59 = vpop.permute.xlu1 %1689 }
 0x2b4   : > { %1624 = vst.msk [vmem:[#allocation2 + $0x50] sm:$0xff] %vm1618_vm11, %v1569_v57  ;;  %v2172_v20 = vld [vmem:[#allocation2 + $0x40] sm:$0xff]  ;;  %v1451_v51 = vpop.permute.xlu2 %1450 }
 0x2b5   : > { %1745 = vst.msk [vmem:[#allocation2 + $0x50] sm:$0xff] %vm1739_vm12, %v1690_v59  ;;  %2313 = vmatmul.f32.gmra.mxu0 %v2172_v20  ;;  %v4208_v20 = vld [vmem:[%s4639_s10 + $0x113] sm:$0xff] }
 0x2b6   : > { %1866 = vst.msk [vmem:[#allocation2 + $0x50] sm:$0xff] %vm1860_vm13, %v1811_v34  ;;  %v4167_v34 = vld [vmem:[%s4639_s10 + $0x109] sm:$0xff] }
 0x2b7   : > { %1504 = vst.msk [vmem:[#allocation2 + $0x70] sm:$0xff] %vm1496_vm10, %v1451_v51  ;;  %v4150_v51 = vld [vmem:[%s4639_s10 + $0x114] sm:$0xff] }
 0x2b8   : > { %2159 = vst.msk [vmem:[#allocation2 + $0xf8] sm:$0xff] %vm284_vm0, %v4150_v51 }
 0x2b9   : > { %1946 = vrot.lane.b32.xlu0 %v4223_v22, %s4566_s11  ;;  %2067 = vrot.lane.b32.xlu1 %v4243_v4, %s4567_s12 }
 0x2ba   : > { %1462 = vrot.lane.b32.xlu2 %v4144_v56, %s4562_s6 }
 0x2bb   : > { %v1933_v29 = vpop.permute.xlu0 %1932  ;;  %v2054_v16 = vpop.permute.xlu1 %2053 }
 0x2bc   : > { %1988 = vst.msk [vmem:[#allocation2 + $0x50] sm:$0xff] %vm1982_vm14, %v1933_v29  ;;  %v1815_v49 = vpop.permute.xlu2 %1814  ;;  %v4149_v29 = vld [vmem:[%s4639_s10 + $0x10c] sm:$0xff] }
 0x2bd   : > { %2109 = vst.msk [vmem:[#allocation2 + $0x50] sm:$0xff] %vm2103_vm15, %v2054_v16 }
 0x2be   : > { %2158 = vst.msk [vmem:[#allocation2 + $0xe8] sm:$0xff] %vm284_vm0, %v4149_v29 }
 0x2c1   : > { %1584 = vrot.lane.b32.xlu0 %v4164_v23, %s4563_s7  ;;  %1705 = vrot.lane.b32.xlu1 %v5357_v52, %s4564_s8  ;;  %v4244_v52 = vld [vmem:[%s4639_s10 + $0xfa] sm:$0xff] }
 0x2c2   : > { %1826 = vrot.lane.b32.xlu2 %v4204_v31, %s4565_s9 }
 0x2c3   : > { %v1571_v37 = vpop.permute.xlu0 %1570  ;;  %v1692_v62 = vpop.permute.xlu1 %1691 }
 0x2c4   : > { %1625 = vst.msk [vmem:[#allocation2 + $0x60] sm:$0xff] %vm1618_vm11, %v1571_v37  ;;  %v2174_v6 = vld [vmem:[#allocation2 + $0x50] sm:$0xff]  ;;  %v1453_v38 = vpop.permute.xlu2 %1452 }
 0x2c5   : > { %1746 = vst.msk [vmem:[#allocation2 + $0x60] sm:$0xff] %vm1739_vm12, %v1692_v62  ;;  %2316 = vmatmul.f32.gmra.mxu0 %v2174_v6  ;;  %v4169_v6 = vld [vmem:[%s4639_s10 + $0x121] sm:$0xff] }
 0x2c6   : > { %1867 = vst.msk [vmem:[#allocation2 + $0x60] sm:$0xff] %vm1860_vm13, %v1813_v11 }
 0x2c7   : > { %1505 = vst.msk [vmem:[#allocation2 + $0x80] sm:$0xff] %vm1496_vm10, %v1453_v38  ;;  %v4209_v38 = vld [vmem:[%s4639_s10 + $0x123] sm:$0xff] }
 0x2c9   : > { %1948 = vrot.lane.b32.xlu0 %v4224_v25, %s4566_s11  ;;  %2069 = vrot.lane.b32.xlu1 %v4244_v52, %s4567_s12 }
 0x2ca   : > { %1464 = vrot.lane.b32.xlu2 %v4145_v53, %s4562_s6 }
 0x2cb   : > { %v1935_v27 = vpop.permute.xlu0 %1934  ;;  %v2056_v44 = vpop.permute.xlu1 %2055 }
 0x2cc   : > { %1989 = vst.msk [vmem:[#allocation2 + $0x60] sm:$0xff] %vm1982_vm14, %v1935_v27  ;;  %v1817_v30 = vpop.permute.xlu2 %1816 }
 0x2cd   : > { %2110 = vst.msk [vmem:[#allocation2 + $0x60] sm:$0xff] %vm2103_vm15, %v2056_v44 }
 0x2d1   : > { %1586 = vrot.lane.b32.xlu0 %v4165_v50, %s4563_s7  ;;  %1707 = vrot.lane.b32.xlu1 %v4243_v4, %s4564_s8  ;;  %v2187_v4 = vld [vmem:[#allocation2 + $0xb8] sm:$0xff] }
 0x2d2   : > { %1828 = vrot.lane.b32.xlu2 %v4205_v7, %s4565_s9  ;;  %4282 = vmatmul.msk.f32.gmra.mxu1 %vm284_vm0, %v2187_v4  ;;  %v4249_v50 = vld [vmem:[%s4639_s10 + $0x13a] sm:$0xff] }
 0x2d3   : > { %v1573_v12 = vpop.permute.xlu0 %1572  ;;  %v1694_v13 = vpop.permute.xlu1 %1693 }
 0x2d4   : > { %1626 = vst.msk [vmem:[#allocation2 + $0x70] sm:$0xff] %vm1618_vm11, %v1573_v12  ;;  %v2176_v15 = vld [vmem:[#allocation2 + $0x60] sm:$0xff]  ;;  %v1455_v43 = vpop.permute.xlu2 %1454 }
 0x2d5   : > { %1747 = vst.msk [vmem:[#allocation2 + $0x70] sm:$0xff] %vm1739_vm12, %v1694_v13  ;;  %2319 = vmatmul.f32.gmra.mxu0 %v2176_v15  ;;  %v4170_v15 = vld [vmem:[%s4639_s10 + $0x129] sm:$0xff] }
 0x2d6   : > { %1868 = vst.msk [vmem:[#allocation2 + $0x70] sm:$0xff] %vm1860_vm13, %v1815_v49  ;;  %v4248_v49 = vld [vmem:[%s4639_s10 + $0x12a] sm:$0xff] }
 0x2d7   : > { %1506 = vst.msk [vmem:[#allocation2 + $0x90] sm:$0xff] %vm1496_vm10, %v1455_v43  ;;  %v2191_v43 = vld [vmem:[#allocation2 + $0xd8] sm:$0xff] }
 0x2d9   : > { %1950 = vrot.lane.b32.xlu0 %v4225_v18, %s4566_s11  ;;  %2071 = vrot.lane.b32.xlu1 %v5369_v3, %s4567_s12 }
 0x2da   : > { %1466 = vrot.lane.b32.xlu2 %v4146_v5, %s4562_s6 }
 0x2db   : > { %v1937_v33 = vpop.permute.xlu0 %1936  ;;  %v2058_v24 = vpop.permute.xlu1 %2057 }
 0x2dc   : > { %1990 = vst.msk [vmem:[#allocation2 + $0x70] sm:$0xff] %vm1982_vm14, %v1937_v33  ;;  %v1819_v1 = vpop.permute.xlu2 %1818 }
 0x2dd   : > { %2111 = vst.msk [vmem:[#allocation2 + $0x70] sm:$0xff] %vm2103_vm15, %v2058_v24 }
 0x2e1   : > { %1588 = vrot.lane.b32.xlu0 %v4166_v58, %s4563_s7  ;;  %1709 = vrot.lane.b32.xlu1 %v4244_v52, %s4564_s8  ;;  %v2189_v52 = vld [vmem:[#allocation2 + $0xc8] sm:$0xff] }
 0x2e2   : > { %1830 = vrot.lane.b32.xlu2 %v4206_v2, %s4565_s9  ;;  %4283 = vmatmul.msk.f32.gmra.mxu1 %vm284_vm0, %v2189_v52  ;;  %v4210_v58 = vld [vmem:[%s4639_s10 + $0x12b] sm:$0xff] }
 0x2e3   : > { %v1575_v3 = vpop.permute.xlu0 %1574  ;;  %v1696_v63 = vpop.permute.xlu1 %1695 }
 0x2e4   : > { %1627 = vst.msk [vmem:[#allocation2 + $0x80] sm:$0xff] %vm1618_vm11, %v1575_v3  ;;  %v2178_v35 = vld [vmem:[#allocation2 + $0x70] sm:$0xff]  ;;  %v1457_v21 = vpop.permute.xlu2 %1456 }
 0x2e5   : > { %1748 = vst.msk [vmem:[#allocation2 + $0x80] sm:$0xff] %vm1739_vm12, %v1696_v63  ;;  %2322 = vmatmul.f32.gmra.mxu0 %v2178_v35 }
 0x2e6   : > { %1869 = vst.msk [vmem:[#allocation2 + $0x80] sm:$0xff] %vm1860_vm13, %v1817_v30 }
 0x2e7   : > { %1507 = vst.msk [vmem:[#allocation2 + $0xa0] sm:$0xff] %vm1496_vm10, %v1457_v21  ;;  %v2193_v21 = vld [vmem:[#allocation2 + $0xe8] sm:$0xff] }
 0x2e9   : > { %1952 = vrot.lane.b32.xlu0 %v4226_v41, %s4566_s11  ;;  %2073 = vrot.lane.b32.xlu1 %v4246_v32, %s4567_s12 }
 0x2ea   : > { %1347 = vrot.lane.b32.xlu2 %v4205_v7, %s4561_s30  ;;  %4284 = vmatmul.msk.f32.gmra.mxu1 %vm284_vm0, %v2191_v43 }
 0x2eb   : > { %v1939_v47 = vpop.permute.xlu0 %1938  ;;  %v2060_v48 = vpop.permute.xlu1 %2059 }
 0x2ec   : > { %1991 = vst.msk [vmem:[#allocation2 + $0x80] sm:$0xff] %vm1982_vm14, %v1939_v47  ;;  %v1821_v54 = vpop.permute.xlu2 %1820 }
 0x2ed   : > { %2112 = vst.msk [vmem:[#allocation2 + $0x80] sm:$0xff] %vm2103_vm15, %v2060_v48 }
 0x2f1   : > { %1468 = vrot.lane.b32.xlu0 %v4147_v45, %s4562_s6  ;;  %1590 = vrot.lane.b32.xlu1 %v4167_v34, %s4563_s7  ;;  %v4229_v45 = vld [vmem:[%s4639_s10 + $0x138] sm:$0xff] }
 0x2f2   : > { %1711 = vrot.lane.b32.xlu2 %v4187_v55, %s4564_s8  ;;  %v5830_v40 = vpop.f32.mrf.mxu0  ;;  %4285 = vmatmul.msk.f32.gmra.mxu1 %vm284_vm0, %v2193_v21 }
 0x2f3   : > { %v1577_v60 = vpop.permute.xlu0 %1576  ;;  %v1698_v8 = vpop.permute.xlu1 %1697 }
 0x2f4   : > { %1628 = vst.msk [vmem:[#allocation2 + $0x90] sm:$0xff] %vm1618_vm11, %v1577_v60  ;;  %v2180_v26 = vld [vmem:[#allocation2 + $0x80] sm:$0xff]  ;;  %v1459_v42 = vpop.permute.xlu2 %1458  ;;  %v2394_v60 = vpop.f32.mrf.mxu1 }
 0x2f5   : > { %1749 = vst.msk [vmem:[#allocation2 + $0x90] sm:$0xff] %vm1739_vm12, %v1698_v8  ;;  %2325 = vmatmul.f32.gmra.mxu0 %v2180_v26 }
 0x2f6   : > { %1870 = vst.msk [vmem:[#allocation2 + $0x90] sm:$0xff] %vm1860_vm13, %v1819_v1  ;;  %v4230_v1 = vld [vmem:[%s4639_s10 + $0x140] sm:$0xff] }
 0x2f7   : > { %1508 = vst.msk [vmem:[#allocation2 + $0xb0] sm:$0xff] %vm1496_vm10, %v1459_v42 }
 0x2f9   : > { %1832 = vrot.lane.b32.xlu0 %v4207_v46, %s4565_s9  ;;  %1954 = vrot.lane.b32.xlu1 %v4227_v14, %s4566_s11 }
 0x2fa   : > { %2075 = vrot.lane.b32.xlu2 %v4247_v39, %s4567_s12 }
 0x2fb   : > { %v1941_v36 = vpop.permute.xlu0 %1940  ;;  %v2062_v0 = vpop.permute.xlu1 %2061 }
 0x2fc   : > { %1992 = vst.msk [vmem:[#allocation2 + $0x90] sm:$0xff] %vm1982_vm14, %v1941_v36  ;;  %v1823_v11 = vpop.permute.xlu2 %1822 }
 0x2fd   : > { %2113 = vst.msk [vmem:[#allocation2 + $0x90] sm:$0xff] %vm2103_vm15, %v2062_v0 }
 0x301   : > { %1349 = vrot.lane.b32.xlu0 %v4206_v2, %s4561_s30  ;;  %1470 = vrot.lane.b32.xlu1 %v4148_v61, %s4562_s6  ;;  %v4250_v61 = vld [vmem:[%s4639_s10 + $0x142] sm:$0xff] }
 0x302   : > { %1592 = vrot.lane.b32.xlu2 %v4168_v17, %s4563_s7  ;;  %v5839_v7 = vpop.f32.mrf.mxu0 }
 0x303   : > { %v1579_v56 = vpop.permute.xlu0 %1578  ;;  %v1700_v57 = vpop.permute.xlu1 %1699 }
 0x304   : > { %1629 = vst.msk [vmem:[#allocation2 + $0xa0] sm:$0xff] %vm1618_vm11, %v1579_v56  ;;  %v2182_v59 = vld [vmem:[#allocation2 + $0x90] sm:$0xff]  ;;  %v1461_v22 = vpop.permute.xlu2 %1460  ;;  %v4267_v56 = vld [vmem:[%s4639_s10 + $0x124] sm:$0xff] }
 0x305   : > { %1750 = vst.msk [vmem:[#allocation2 + $0xa0] sm:$0xff] %vm1739_vm12, %v1700_v57  ;;  %2328 = vmatmul.f32.gmra.mxu0 %v2182_v59  ;;  %v2397_v59 = vpop.f32.mrf.mxu1 }
 0x306   : > { %1871 = vst.msk [vmem:[#allocation2 + $0xa0] sm:$0xff] %vm1860_vm13, %v1821_v54  ;;  %v5875_v54 = vld [vmem:[%s6575_s2] ss:$0 sm:$0xff] }
 0x307   : > { %1509 = vst.msk [vmem:[#allocation2 + $0xc0] sm:$0xff] %vm1496_vm10, %v1461_v22 }
 0x308   : > { %2160 = vst.msk [vmem:[#allocation2 + $0x108] sm:$0xff] %vm284_vm0, %v4267_v56 }
 0x309   : > { %1713 = vrot.lane.b32.xlu0 %v4246_v32, %s4564_s8  ;;  %1834 = vrot.lane.b32.xlu1 %v4208_v20, %s4565_s9 }
 0x30a   : > { %1956 = vrot.lane.b32.xlu2 %v4228_v28, %s4566_s11 }
 0x30b   : > { %v1943_v16 = vpop.permute.xlu0 %1942  ;;  %v2064_v23 = vpop.permute.xlu1 %2063 }
 0x30c   : > { %1993 = vst.msk [vmem:[#allocation2 + $0xa0] sm:$0xff] %vm1982_vm14, %v1943_v16  ;;  %v1825_v31 = vpop.permute.xlu2 %1824 }
 0x30d   : > { %2114 = vst.msk [vmem:[#allocation2 + $0xa0] sm:$0xff] %vm2103_vm15, %v2064_v23 }
 0x30f   : > { %v2197_v23 = vld [vmem:[#allocation2 + $0x108] sm:$0xff] }
 0x311   : > { %2077 = vrot.lane.b32.xlu0 %v4248_v49, %s4567_s12  ;;  %1351 = vrot.lane.b32.xlu1 %v4207_v46, %s4561_s30 }
 0x312   : > { %1472 = vrot.lane.b32.xlu2 %v4149_v29, %s4562_s6  ;;  %v5850_v19 = vpop.f32.mrf.mxu0 }
 0x313   : > { %v1581_v53 = vpop.permute.xlu0 %1580  ;;  %v1702_v37 = vpop.permute.xlu1 %1701 }
 0x314   : > { %1630 = vst.msk [vmem:[#allocation2 + $0xb0] sm:$0xff] %vm1618_vm11, %v1581_v53  ;;  %v2184_v62 = vld [vmem:[#allocation2 + $0xa0] sm:$0xff]  ;;  %v1463_v25 = vpop.permute.xlu2 %1462 }
 0x315   : > { %1751 = vst.msk [vmem:[#allocation2 + $0xb0] sm:$0xff] %vm1739_vm12, %v1702_v37  ;;  %2331 = vmatmul.f32.gmra.mxu0 %v2184_v62  ;;  %v2400_v62 = vpop.f32.mrf.mxu1 }
 0x316   : > { %1872 = vst.msk [vmem:[#allocation2 + $0xb0] sm:$0xff] %vm1860_vm13, %v1823_v11 }
 0x317   : > { %1510 = vst.msk [vmem:[#allocation2 + $0xd0] sm:$0xff] %vm1496_vm10, %v1463_v25 }
 0x319   : > { %1594 = vrot.lane.b32.xlu0 %v4169_v6, %s4563_s7  ;;  %1715 = vrot.lane.b32.xlu1 %v4247_v39, %s4564_s8  ;;  %v2195_v39 = vld [vmem:[#allocation2 + $0xf8] sm:$0xff] }
 0x31a   : > { %1836 = vrot.lane.b32.xlu2 %v4209_v38, %s4565_s9  ;;  %4286 = vmatmul.msk.f32.gmra.mxu1 %vm284_vm0, %v2195_v39  ;;  %v4251_v39 = vld [vmem:[%s4639_s10 + $0x64] sm:$0xff] }
 0x31b   : > { %v1945_v27 = vpop.permute.xlu0 %1944  ;;  %v2066_v44 = vpop.permute.xlu1 %2065  ;;  %2144 = vst.msk [vmem:[#allocation2 + $0x8] sm:$0xff] %vm284_vm0, %v4251_v39 }
 0x31c   : > { %1994 = vst.msk [vmem:[#allocation2 + $0xb0] sm:$0xff] %vm1982_vm14, %v1945_v27  ;;  %v1827_v30 = vpop.permute.xlu2 %1826 }
 0x31d   : > { %2115 = vst.msk [vmem:[#allocation2 + $0xb0] sm:$0xff] %vm2103_vm15, %v2066_v44  ;;  %v4268_v44 = vld [vmem:[%s4639_s10 + $0x12c] sm:$0xff] }
 0x31e   : > { %2161 = vst.msk [vmem:[#allocation2 + $0x118] sm:$0xff] %vm284_vm0, %v4268_v44 }
 0x321   : > { %1958 = vrot.lane.b32.xlu0 %v4229_v45, %s4566_s11  ;;  %2079 = vrot.lane.b32.xlu1 %v4249_v50, %s4567_s12 }
 0x322   : > { %1353 = vrot.lane.b32.xlu2 %v4208_v20, %s4561_s30  ;;  %v5860_v3 = vpop.f32.mrf.mxu0  ;;  %4287 = vmatmul.msk.f32.gmra.mxu1 %vm284_vm0, %v2197_v23 }
 0x323   : > { %v1583_v5 = vpop.permute.xlu0 %1582  ;;  %v1704_v12 = vpop.permute.xlu1 %1703 }
 0x324   : > { %1631 = vst.msk [vmem:[#allocation2 + $0xc0] sm:$0xff] %vm1618_vm11, %v1583_v5  ;;  %v2186_v13 = vld [vmem:[#allocation2 + $0xb0] sm:$0xff]  ;;  %v1465_v18 = vpop.permute.xlu2 %1464 }
 0x325   : > { %1752 = vst.msk [vmem:[#allocation2 + $0xc0] sm:$0xff] %vm1739_vm12, %v1704_v12  ;;  %2334 = vmatmul.f32.gmra.mxu0 %v2186_v13  ;;  %v2199_v13 = vld [vmem:[#allocation2 + $0x118] sm:$0xff] }
 0x326   : > { %1873 = vst.msk [vmem:[#allocation2 + $0xc0] sm:$0xff] %vm1860_vm13, %v1825_v31 }
 0x327   : > { %1511 = vst.msk [vmem:[#allocation2 + $0xe0] sm:$0xff] %vm1496_vm10, %v1465_v18  ;;  %v2403_v18 = vpop.f32.mrf.mxu1 }
 0x329   : > { %1474 = vrot.lane.b32.xlu0 %v4150_v51, %s4562_s6  ;;  %1596 = vrot.lane.b32.xlu1 %v4170_v15, %s4563_s7 }
 0x32a   : > { %1717 = vrot.lane.b32.xlu2 %v4248_v49, %s4564_s8  ;;  %4288 = vmatmul.msk.f32.gmra.mxu1 %vm284_vm0, %v2199_v13 }
 0x32b   : > { %v1947_v33 = vpop.permute.xlu0 %1946  ;;  %v2068_v24 = vpop.permute.xlu1 %2067 }
 0x32c   : > { %1995 = vst.msk [vmem:[#allocation2 + $0xc0] sm:$0xff] %vm1982_vm14, %v1947_v33  ;;  %v1829_v2 = vpop.permute.xlu2 %1828 }
 0x32d   : > { %2116 = vst.msk [vmem:[#allocation2 + $0xc0] sm:$0xff] %vm2103_vm15, %v2068_v24 }
 0x331   : > { %1838 = vrot.lane.b32.xlu0 %v4210_v58, %s4565_s9  ;;  %1960 = vrot.lane.b32.xlu1 %v4230_v1, %s4566_s11 }
 0x332   : > { %2081 = vrot.lane.b32.xlu2 %v4250_v61, %s4567_s12  ;;  %v5868_v9 = vpop.f32.mrf.mxu0  ;;  %v4269_v61 = vld [vmem:[%s4639_s10 + $0x13c] sm:$0xff] }
 0x333   : > { %v1585_v63 = vpop.permute.xlu0 %1584  ;;  %v1706_v35 = vpop.permute.xlu1 %1705  ;;  %2162 = vst.msk [vmem:[#allocation2 + $0x128] sm:$0xff] %vm284_vm0, %v4269_v61 }
 0x334   : > { %1632 = vst.msk [vmem:[#allocation2 + $0xd0] sm:$0xff] %vm1618_vm11, %v1585_v63  ;;  %v2188_v41 = vld [vmem:[#allocation2 + $0xc0] sm:$0xff]  ;;  %v1467_v32 = vpop.permute.xlu2 %1466 }
 0x335   : > { %1753 = vst.msk [vmem:[#allocation2 + $0xd0] sm:$0xff] %vm1739_vm12, %v1706_v35  ;;  %2337 = vmatmul.f32.gmra.mxu0 %v2188_v41 }
 0x336   : > { %1874 = vst.msk [vmem:[#allocation2 + $0xd0] sm:$0xff] %vm1860_vm13, %v1827_v30 }
 0x337   : > { %1512 = vst.msk [vmem:[#allocation2 + $0xf0] sm:$0xff] %vm1496_vm10, %v1467_v32 }
 0x33a   : > { %v2201_v21 = vld [vmem:[#allocation2 + $0x128] sm:$0xff] }
 0x33b   : > { %v1949_v47 = vpop.permute.xlu0 %1948  ;;  %v2070_v48 = vpop.permute.xlu1 %2069  ;;  %4289 = vmatmul.msk.f32.gmra.mxu1 %vm284_vm0, %v2201_v21 }
 0x33c   : > { %1996 = vst.msk [vmem:[#allocation2 + $0xd0] sm:$0xff] %vm1982_vm14, %v1949_v47  ;;  %v1831_v34 = vpop.permute.xlu2 %1830 }
 0x33d   : > { %2117 = vst.msk [vmem:[#allocation2 + $0xd0] sm:$0xff] %vm2103_vm15, %v2070_v48  ;;  %v2406_v48 = vpop.f32.mrf.mxu1 }
 0x342   : > { %v2317_v55 = vpop.f32.mrf.mxu0 }
 0x343   : > { %v2318_v8 = vadd.f32 %v5875_v54, %v2317_v55  ;;  %v1587_v26 = vpop.permute.xlu0 %1586  ;;  %v1708_v46 = vpop.permute.xlu1 %1707 }
 0x344   : > { %1633 = vst.msk [vmem:[#allocation2 + $0xe0] sm:$0xff] %vm1618_vm11, %v1587_v26  ;;  %v2190_v14 = vld [vmem:[#allocation2 + $0xd0] sm:$0xff]  ;;  %v1348_v10 = vpop.permute.xlu2 %1347 }
 0x345   : > { %v2395_v42 = vadd.f32 %v2394_v60, %v2318_v8  ;;  %1754 = vst.msk [vmem:[#allocation2 + $0xe0] sm:$0xff] %vm1739_vm12, %v1708_v46  ;;  %2340 = vmatmul.f32.gmra.mxu0 %v2190_v14  ;;  %v4270_v46 = vld [vmem:[%s4639_s10 + $0x144] sm:$0xff] }
 0x346   : > { %1875 = vst.msk [vmem:[#allocation2 + $0xe0] sm:$0xff] %vm1860_vm13, %v1829_v2 }
 0x347   : > { %v2444_v36 = vmax.f32 %v2395_v42, 0.0  ;;  %1392 = vst.msk [vmem:[#allocation2 + $0x100] sm:$0xff] %vm1375_vm9, %v1348_v10 }
 0x348   : > { %2163 = vst.msk [vmem:[#allocation2 + $0x138] sm:$0xff] %vm284_vm0, %v4270_v46 }
 0x349   : > { %2486 = vst.msk [vmem:[#allocation3 + $0x39] sm:$0xff] %vm2480_vm1, %v2444_v36 }
 0x34b   : > { %v1951_v0 = vpop.permute.xlu0 %1950  ;;  %v2072_v11 = vpop.permute.xlu1 %2071 }
 0x34c   : > { %1997 = vst.msk [vmem:[#allocation2 + $0xe0] sm:$0xff] %vm1982_vm14, %v1951_v0  ;;  %v1712_v17 = vpop.permute.xlu2 %1711 }
 0x34d   : > { %2118 = vst.msk [vmem:[#allocation2 + $0xe0] sm:$0xff] %vm2103_vm15, %v2072_v11  ;;  %v2409_v11 = vpop.f32.mrf.mxu1 }
 0x34f   : > { %v2203_v36 = vld [vmem:[#allocation2 + $0x138] sm:$0xff] }
 0x350   : > { %4290 = vmatmul.msk.f32.gmra.mxu1 %vm284_vm0, %v2203_v36 }
 0x352   : > { %v2320_v57 = vpop.f32.mrf.mxu0 }
 0x353   : > { %v2321_v20 = vadd.f32 %v5875_v54, %v2320_v57  ;;  %v1589_v22 = vpop.permute.xlu0 %1588  ;;  %v1710_v4 = vpop.permute.xlu1 %1709 }
 0x354   : > { %1634 = vst.msk [vmem:[#allocation2 + $0xf0] sm:$0xff] %vm1618_vm11, %v1589_v22  ;;  %v2192_v51 = vld [vmem:[#allocation2 + $0xe0] sm:$0xff]  ;;  %v2076_v29 = vpop.permute.xlu2 %2075 }
 0x355   : > { %v2398_v28 = vadd.f32 %v2397_v59, %v2321_v20  ;;  %1755 = vst.msk [vmem:[#allocation2 + $0xf0] sm:$0xff] %vm1739_vm12, %v1710_v4  ;;  %2343 = vmatmul.f32.gmra.mxu0 %v2192_v51  ;;  %v4252_v20 = vld [vmem:[%s4639_s10 + $0x6c] sm:$0xff]  ;;  %v2412_v23 = vpop.f32.mrf.mxu1 }
 0x356   : > { %1876 = vst.msk [vmem:[#allocation2 + $0xf0] sm:$0xff] %vm1860_vm13, %v1831_v34 }
 0x357   : > { %v2445_v16 = vmax.f32 %v2398_v28, 0.0  ;;  %2145 = vst.msk [vmem:[#allocation2 + $0x18] sm:$0xff] %vm284_vm0, %v4252_v20 }
 0x359   : > { %2487 = vst.msk [vmem:[#allocation3 + $0x49] sm:$0xff] %vm2480_vm1, %v2445_v16  ;;  %v4253_v16 = vld [vmem:[%s4639_s10 + $0x7c] sm:$0xff] }
 0x35a   : > { %2146 = vst.msk [vmem:[#allocation2 + $0x28] sm:$0xff] %vm284_vm0, %v4253_v16 }
 0x35b   : > { %v1953_v49 = vpop.permute.xlu0 %1952  ;;  %v2074_v31 = vpop.permute.xlu1 %2073 }
 0x35c   : > { %1998 = vst.msk [vmem:[#allocation2 + $0xf0] sm:$0xff] %vm1982_vm14, %v1953_v49  ;;  %v1593_v53 = vpop.permute.xlu2 %1592 }
 0x35d   : > { %2119 = vst.msk [vmem:[#allocation2 + $0xf0] sm:$0xff] %vm2103_vm15, %v2074_v31 }
 0x35e   : > { %v2167_v13 = vld [vmem:[#allocation2 + $0x18] sm:$0xff] }
 0x362   : > { %v2323_v37 = vpop.f32.mrf.mxu0 }
 0x363   : > { %v2324_v6 = vadd.f32 %v5875_v54, %v2323_v37  ;;  %v1469_v25 = vpop.permute.xlu0 %1468  ;;  %v1591_v52 = vpop.permute.xlu1 %1590 }
 0x364   : > { %1513 = vst.msk [vmem:[#allocation2 + $0x100] sm:$0xff] %vm1496_vm10, %v1469_v25  ;;  %v2194_v38 = vld [vmem:[#allocation2 + $0xf0] sm:$0xff]  ;;  %v1957_v45 = vpop.permute.xlu2 %1956  ;;  %v4254_v25 = vld [vmem:[%s4639_s10 + $0x84] sm:$0xff] }
 0x365   : > { %v2401_v27 = vadd.f32 %v2400_v62, %v2324_v6  ;;  %1635 = vst.msk [vmem:[#allocation2 + $0x100] sm:$0xff] %vm1618_vm11, %v1591_v52  ;;  %2346 = vmatmul.f32.gmra.mxu0 %v2194_v38 }
 0x366   : > { %1756 = vst.msk [vmem:[#allocation2 + $0x100] sm:$0xff] %vm1739_vm12, %v1712_v17 }
 0x367   : > { %v2446_v50 = vmax.f32 %v2401_v27, 0.0  ;;  %2147 = vst.msk [vmem:[#allocation2 + $0x38] sm:$0xff] %vm284_vm0, %v4254_v25  ;;  %v4255_v27 = vld [vmem:[%s4639_s10 + $0x94] sm:$0xff] }
 0x368   : > { %2148 = vst.msk [vmem:[#allocation2 + $0x48] sm:$0xff] %vm284_vm0, %v4255_v27 }
 0x369   : > { %2488 = vst.msk [vmem:[#allocation3 + $0x51] sm:$0xff] %vm2480_vm1, %v2446_v50 }
 0x36b   : > { %v1833_v30 = vpop.permute.xlu0 %1832  ;;  %v1955_v5 = vpop.permute.xlu1 %1954 }
 0x36c   : > { %1877 = vst.msk [vmem:[#allocation2 + $0x100] sm:$0xff] %vm1860_vm13, %v1833_v30  ;;  %v1473_v12 = vpop.permute.xlu2 %1472  ;;  %v2165_v30 = vld [vmem:[#allocation2 + $0x8] sm:$0xff] }
 0x36d   : > { %1999 = vst.msk [vmem:[#allocation2 + $0x100] sm:$0xff] %vm1982_vm14, %v1955_v5 }
 0x36e   : > { %2120 = vst.msk [vmem:[#allocation2 + $0x100] sm:$0xff] %vm2103_vm15, %v2076_v29 }
 0x372   : > { %v2326_v15 = vpop.f32.mrf.mxu0 }
 0x373   : > { %v2327_v43 = vadd.f32 %v5875_v54, %v2326_v15  ;;  %v1350_v33 = vpop.permute.xlu0 %1349  ;;  %v1471_v24 = vpop.permute.xlu1 %1470 }
 0x374   : > { %1393 = vst.msk [vmem:[#allocation2 + $0x110] sm:$0xff] %vm1375_vm9, %v1350_v33  ;;  %v1837_v2 = vpop.permute.xlu2 %1836  ;;  %v2169_v33 = vld [vmem:[#allocation2 + $0x28] sm:$0xff] }
 0x375   : > { %v2404_v58 = vadd.f32 %v2403_v18, %v2327_v43  ;;  %1514 = vst.msk [vmem:[#allocation2 + $0x110] sm:$0xff] %vm1496_vm10, %v1471_v24  ;;  %v2196_v1 = vld [vmem:[#allocation2 + $0x100] sm:$0xff] }
 0x376   : > { %1636 = vst.msk [vmem:[#allocation2 + $0x110] sm:$0xff] %vm1618_vm11, %v1593_v53  ;;  %2349 = vmatmul.f32.gmra.mxu0 %v2196_v1  ;;  %v2171_v1 = vld [vmem:[#allocation2 + $0x38] sm:$0xff] }
 0x377   : > { %v2447_v63 = vmax.f32 %v2404_v58, 0.0 }
 0x379   : > { %2489 = vst.msk [vmem:[#allocation3 + $0x61] sm:$0xff] %vm2480_vm1, %v2447_v63 }
 0x37b   : > { %v1714_v35 = vpop.permute.xlu0 %1713  ;;  %v1835_v41 = vpop.permute.xlu1 %1834 }
 0x37c   : > { %1757 = vst.msk [vmem:[#allocation2 + $0x110] sm:$0xff] %vm1739_vm12, %v1714_v35  ;;  %v1354_v32 = vpop.permute.xlu2 %1353  ;;  %v2173_v35 = vld [vmem:[#allocation2 + $0x48] sm:$0xff] }
 0x37d   : > { %1878 = vst.msk [vmem:[#allocation2 + $0x110] sm:$0xff] %vm1860_vm13, %v1835_v41 }
 0x37e   : > { %2000 = vst.msk [vmem:[#allocation2 + $0x110] sm:$0xff] %vm1982_vm14, %v1957_v45  ;;  %v2415_v45 = vpop.f32.mrf.mxu1 }
 0x37f   : > { %1395 = vst.msk [vmem:[#allocation2 + $0x130] sm:$0xff] %vm1375_vm9, %v1354_v32 }
 0x382   : > { %v2329_v47 = vpop.f32.mrf.mxu0 }
 0x383   : > { %v2330_v34 = vadd.f32 %v5875_v54, %v2329_v47  ;;  %v2078_v55 = vpop.permute.xlu0 %2077  ;;  %v1352_v60 = vpop.permute.xlu1 %1351 }
 0x384   : > { %2121 = vst.msk [vmem:[#allocation2 + $0x110] sm:$0xff] %vm2103_vm15, %v2078_v55  ;;  %v1718_v4 = vpop.permute.xlu2 %1717 }
 0x385   : > { %v2407_v8 = vadd.f32 %v2406_v48, %v2330_v34  ;;  %1394 = vst.msk [vmem:[#allocation2 + $0x120] sm:$0xff] %vm1375_vm9, %v1352_v60 }
 0x386   : > { %1515 = vst.msk [vmem:[#allocation2 + $0x120] sm:$0xff] %vm1496_vm10, %v1473_v12  ;;  %v2418_v18 = vpop.f32.mrf.mxu1 }
 0x387   : > { %v2448_v26 = vmax.f32 %v2407_v8, 0.0 }
 0x389   : > { %2490 = vst.msk [vmem:[#allocation3 + $0x69] sm:$0xff] %vm2480_vm1, %v2448_v26 }
 0x38b   : > { %v1595_v14 = vpop.permute.xlu0 %1594  ;;  %v1716_v42 = vpop.permute.xlu1 %1715  ;;  %v2198_v10 = vld [vmem:[#allocation2 + $0x110] sm:$0xff] }
 0x38c   : > { %1637 = vst.msk [vmem:[#allocation2 + $0x120] sm:$0xff] %vm1618_vm11, %v1595_v14  ;;  %2352 = vmatmul.f32.gmra.mxu0 %v2198_v10  ;;  %v2082_v31 = vpop.permute.xlu2 %2081 }
 0x38d   : > { %1758 = vst.msk [vmem:[#allocation2 + $0x120] sm:$0xff] %vm1739_vm12, %v1716_v42 }
 0x38e   : > { %1879 = vst.msk [vmem:[#allocation2 + $0x120] sm:$0xff] %vm1860_vm13, %v1837_v2  ;;  %v2421_v61 = vpop.f32.mrf.mxu1 }
 0x392   : > { %v2332_v0 = vpop.f32.mrf.mxu0 }
 0x393   : > { %v2333_v17 = vadd.f32 %v5875_v54, %v2332_v0  ;;  %v1959_v56 = vpop.permute.xlu0 %1958  ;;  %v2080_v57 = vpop.permute.xlu1 %2079 }
 0x394   : > { %2001 = vst.msk [vmem:[#allocation2 + $0x120] sm:$0xff] %vm1982_vm14, %v1959_v56 }
 0x395   : > { %v2410_v59 = vadd.f32 %v2409_v11, %v2333_v17  ;;  %2122 = vst.msk [vmem:[#allocation2 + $0x120] sm:$0xff] %vm2103_vm15, %v2080_v57 }
 0x397   : > { %v2449_v22 = vmax.f32 %v2410_v59, 0.0  ;;  %v2424_v47 = vpop.f32.mrf.mxu1 }
 0x399   : > { %2491 = vst.msk [vmem:[#allocation3 + $0x79] sm:$0xff] %vm2480_vm1, %v2449_v22 }
 0x39b   : > { %v1475_v51 = vpop.permute.xlu0 %1474  ;;  %v1597_v28 = vpop.permute.xlu1 %1596 }
 0x39c   : > { %1516 = vst.msk [vmem:[#allocation2 + $0x130] sm:$0xff] %vm1496_vm10, %v1475_v51  ;;  %v2200_v29 = vld [vmem:[#allocation2 + $0x120] sm:$0xff] }
 0x39d   : > { %1638 = vst.msk [vmem:[#allocation2 + $0x130] sm:$0xff] %vm1618_vm11, %v1597_v28  ;;  %2355 = vmatmul.f32.gmra.mxu0 %v2200_v29  ;;  %v2303_v29 = vadd.f32 %v5875_v54, %v5830_v40 }
 0x39e   : > { %1759 = vst.msk [vmem:[#allocation2 + $0x130] sm:$0xff] %vm1739_vm12, %v1718_v4 }
 0x39f   : > { %v2427_v8 = vpop.f32.mrf.mxu1 }
 0x3a2   : > { %v2335_v49 = vpop.f32.mrf.mxu0 }
 0x3a3   : > { %v2336_v53 = vadd.f32 %v5875_v54, %v2335_v49  ;;  %v1839_v37 = vpop.permute.xlu0 %1838  ;;  %v1961_v62 = vpop.permute.xlu1 %1960 }
 0x3a4   : > { %1880 = vst.msk [vmem:[#allocation2 + $0x130] sm:$0xff] %vm1860_vm13, %v1839_v37 }
 0x3a5   : > { %v2413_v6 = vadd.f32 %v2412_v23, %v2336_v53  ;;  %2002 = vst.msk [vmem:[#allocation2 + $0x130] sm:$0xff] %vm1982_vm14, %v1961_v62  ;;  %v2306_v53 = vadd.f32 %v5875_v54, %v5839_v7  ;;  %v2309_v7 = vadd.f32 %v5875_v54, %v5850_v19  ;;  %v2312_v19 = vadd.f32 %v5875_v54, %v5860_v3 }
 0x3a6   : > { %2123 = vst.msk [vmem:[#allocation2 + $0x130] sm:$0xff] %vm2103_vm15, %v2082_v31  ;;  %v4568_v31 = vmov 0.0  }
 0x3a7   : > { %v2450_v52 = vmax.f32 %v2413_v6, 0.0  ;;  %v2430_v10 = vpop.f32.mrf.mxu1 }
 0x3a9   : > { %2492 = vst.msk [vmem:[#allocation3 + $0x81] sm:$0xff] %vm2480_vm1, %v2450_v52 }
 0x3ad   : > { %v2202_v38 = vld [vmem:[#allocation2 + $0x130] sm:$0xff] }
 0x3ae   : > { %2358 = vmatmul.f32.gmra.mxu0 %v2202_v38 }
 0x3b2   : > { %v2338_v44 = vpop.f32.mrf.mxu0 }
 0x3b3   : > { %v2339_v50 = vadd.f32 %v5875_v54, %v2338_v44 }
 0x3b5   : > { %v2416_v5 = vadd.f32 %v2415_v45, %v2339_v50  ;;  %v2315_v45 = vadd.f32 %v5875_v54, %v5868_v9 }
 0x3b6   : > { %4271 = vmatmul.msk.f32.vlgmr.msrb.gmra.mxu0 %vm284_vm0, %v2165_v30 }
 0x3b7   : > { %v2451_v12 = vmax.f32 %v2416_v5, 0.0 }
 0x3b8   : > { %v2433_v17 = vpop.f32.mrf.mxu1 }
 0x3b9   : > { %2493 = vst.msk [vmem:[#allocation3 + $0x91] sm:$0xff] %vm2480_vm1, %v2451_v12 }
 0x3be   : > { %4272 = vmatmul.msk.f32.gmra.mxu0 %vm284_vm0, %v2167_v13 }
 0x3c2   : > { %v2341_v15 = vpop.f32.mrf.mxu0 }
 0x3c3   : > { %v2342_v43 = vadd.f32 %v5875_v54, %v2341_v15 }
 0x3c5   : > { %v2419_v24 = vadd.f32 %v2418_v18, %v2342_v43 }
 0x3c6   : > { %4273 = vmatmul.msk.f32.gmra.mxu0 %vm284_vm0, %v2169_v33 }
 0x3c7   : > { %v2452_v58 = vmax.f32 %v2419_v24, 0.0 }
 0x3c9   : > { %2494 = vst.msk [vmem:[#allocation3 + $0x99] sm:$0xff] %vm2480_vm1, %v2452_v58 }
 0x3cd   : > { %v2436_v22 = vpop.f32.mrf.mxu1 }
 0x3ce   : > { %4274 = vmatmul.msk.f32.gmra.mxu0 %vm284_vm0, %v2171_v1 }
 0x3d2   : > { %v2344_v2 = vpop.f32.mrf.mxu0 }
 0x3d3   : > { %v2345_v63 = vadd.f32 %v5875_v54, %v2344_v2 }
 0x3d5   : > { %v2422_v41 = vadd.f32 %v2421_v61, %v2345_v63 }
 0x3d6   : > { %4275 = vmatmul.msk.f32.gmra.mxu0 %vm284_vm0, %v2173_v35  ;;  %vm2459_vm0 = vcmask 24576  }
 0x3d7   : > { %v2453_v32 = vmax.f32 %v2422_v41, 0.0  ;;  %2460 = vst.msk [vmem:[#allocation3] sm:$0x1] %vm2459_vm0, %v4568_v31 }
 0x3d8   : > { %2461 = vst.msk [vmem:[#allocation3 + $0x18] sm:$0x1] %vm2459_vm0, %v4568_v31 }
 0x3d9   : > { %2495 = vst.msk [vmem:[#allocation3 + $0xa9] sm:$0xff] %vm2480_vm1, %v2453_v32 }
 0x3da   : > { %2462 = vst.msk [vmem:[#allocation3 + $0x30] sm:$0x1] %vm2459_vm0, %v4568_v31 }
 0x3db   : > { %2463 = vst.msk [vmem:[#allocation3 + $0x48] sm:$0x1] %vm2459_vm0, %v4568_v31 }
 0x3dc   : > { %2464 = vst.msk [vmem:[#allocation3 + $0x60] sm:$0x1] %vm2459_vm0, %v4568_v31 }
 0x3dd   : > { %2465 = vst.msk [vmem:[#allocation3 + $0x78] sm:$0x1] %vm2459_vm0, %v4568_v31 }
 0x3de   : > { %2466 = vst.msk [vmem:[#allocation3 + $0x90] sm:$0x1] %vm2459_vm0, %v4568_v31 }
 0x3df   : > { %2467 = vst.msk [vmem:[#allocation3 + $0xa8] sm:$0x1] %vm2459_vm0, %v4568_v31 }
 0x3e0   : > { %2468 = vst.msk [vmem:[#allocation3 + $0xc0] sm:$0x1] %vm2459_vm0, %v4568_v31 }
 0x3e1   : > { %2469 = vst.msk [vmem:[#allocation3 + $0xd8] sm:$0x1] %vm2459_vm0, %v4568_v31 }
 0x3e2   : > { %v2347_v21 = vpop.f32.mrf.mxu0  ;;  %2470 = vst.msk [vmem:[#allocation3 + $0x11] sm:$0x1] %vm2459_vm0, %v4568_v31 }
 0x3e3   : > { %v2348_v48 = vadd.f32 %v5875_v54, %v2347_v21  ;;  %2471 = vst.msk [vmem:[#allocation3 + $0x29] sm:$0x1] %vm2459_vm0, %v4568_v31 }
 0x3e4   : > { %2472 = vst.msk [vmem:[#allocation3 + $0x41] sm:$0x1] %vm2459_vm0, %v4568_v31 }
 0x3e5   : > { %v2425_v34 = vadd.f32 %v2424_v47, %v2348_v48  ;;  %2473 = vst.msk [vmem:[#allocation3 + $0x59] sm:$0x1] %vm2459_vm0, %v4568_v31 }
 0x3e6   : > { %2474 = vst.msk [vmem:[#allocation3 + $0x71] sm:$0x1] %vm2459_vm0, %v4568_v31 }
 0x3e7   : > { %v2454_v55 = vmax.f32 %v2425_v34, 0.0  ;;  %2475 = vst.msk [vmem:[#allocation3 + $0x89] sm:$0x1] %vm2459_vm0, %v4568_v31 }
 0x3e8   : > { %2476 = vst.msk [vmem:[#allocation3 + $0xa1] sm:$0x1] %vm2459_vm0, %v4568_v31 }
 0x3e9   : > { %2496 = vst.msk [vmem:[#allocation3 + $0xb1] sm:$0xff] %vm2480_vm1, %v2454_v55 }
 0x3ea   : > { %2477 = vst.msk [vmem:[#allocation3 + $0xb9] sm:$0x1] %vm2459_vm0, %v4568_v31 }
 0x3eb   : > { %2478 = vst.msk [vmem:[#allocation3 + $0xd1] sm:$0x1] %vm2459_vm0, %v4568_v31 }
 0x3ec   : > { %2479 = vst.msk [vmem:[#allocation3 + $0xe9] sm:$0x1] %vm2459_vm0, %v4568_v31 }
 0x3f3   : > { %v2350_v60 = vpop.f32.mrf.mxu0 }
 0x3f4   : > { %v2351_v26 = vadd.f32 %v5875_v54, %v2350_v60 }
 0x3f6   : > { %v2428_v46 = vadd.f32 %v2427_v8, %v2351_v26 }
 0x3f8   : > { %v2455_v14 = vmax.f32 %v2428_v46, 0.0 }
 0x3fa   : > { %2497 = vst.msk [vmem:[#allocation3 + $0xc1] sm:$0xff] %vm2480_vm1, %v2455_v14 }
 0x409   : > { %v2353_v42 = vpop.f32.mrf.mxu0 }
 0x40a   : > { %v2354_v39 = vadd.f32 %v5875_v54, %v2353_v42 }
 0x40c   : > { %v2431_v36 = vadd.f32 %v2430_v10, %v2354_v39 }
 0x40e   : > { %v2456_v0 = vmax.f32 %v2431_v36, 0.0 }
 0x410   : > { %2498 = vst.msk [vmem:[#allocation3 + $0xc9] sm:$0xff] %vm2480_vm1, %v2456_v0 }
 0x41a   : > { %v2356_v11 = vpop.f32.mrf.mxu0 }
 0x41b   : > { %v2357_v56 = vadd.f32 %v5875_v54, %v2356_v11 }
 0x41d   : > { %v2434_v57 = vadd.f32 %v2433_v17, %v2357_v56 }
 0x41f   : > { %v2457_v59 = vmax.f32 %v2434_v57, 0.0 }
 0x421   : > { %2499 = vst.msk [vmem:[#allocation3 + $0xd9] sm:$0xff] %vm2480_vm1, %v2457_v59 }
 0x42b   : > { %v2359_v20 = vpop.f32.mrf.mxu0 }
 0x42c   : > { %v2360_v4 = vadd.f32 %v5875_v54, %v2359_v20 }
 0x42e   : > { %v2437_v51 = vadd.f32 %v2436_v22, %v2360_v4 }
 0x430   : > { %v2458_v28 = vmax.f32 %v2437_v51, 0.0 }
 0x432   : > { %2500 = vst.msk [vmem:[#allocation3 + $0xe1] sm:$0xff] %vm2480_vm1, %v2458_v28 }
 0x433   : > { %v2379_v16 = vpop.f32.mrf.mxu0 }
 0x434   : > { %v2380_v23 = vadd.f32 %v2379_v16, %v2303_v29 }
 0x436   : > { %v2439_v49 = vmax.f32 %v2380_v23, 0.0 }
 0x438   : > { %2481 = vst.msk [vmem:[#allocation3 + $0x1] sm:$0xff] %vm2480_vm1, %v2439_v49 }
 0x43b   : > { %v2382_v37 = vpop.f32.mrf.mxu0 }
 0x43c   : > { %v2383_v40 = vadd.f32 %v2382_v37, %v2306_v53 }
 0x43e   : > { %v2440_v62 = vmax.f32 %v2383_v40, 0.0 }
 0x440   : > { %2482 = vst.msk [vmem:[#allocation3 + $0x9] sm:$0xff] %vm2480_vm1, %v2440_v62 }
 0x443   : > { %v2385_v6 = vpop.f32.mrf.mxu0 }
 0x444   : > { %v2386_v25 = vadd.f32 %v2385_v6, %v2309_v7 }
 0x446   : > { %v2441_v52 = vmax.f32 %v2386_v25, 0.0 }
 0x448   : > { %2483 = vst.msk [vmem:[#allocation3 + $0x19] sm:$0xff] %vm2480_vm1, %v2441_v52 }
 0x44b   : > { %v2388_v38 = vpop.f32.mrf.mxu0 }
 0x44c   : > { %v2389_v27 = vadd.f32 %v2388_v38, %v2312_v19 }
 0x44e   : > { %v2442_v44 = vmax.f32 %v2389_v27, 0.0 }
 0x450   : > { %2484 = vst.msk [vmem:[#allocation3 + $0x21] sm:$0xff] %vm2480_vm1, %v2442_v44 }
 0x453   : > { %v2391_v50 = vpop.f32.mrf.mxu0 }
 0x454   : > { %v2392_v3 = vadd.f32 %v2391_v50, %v2315_v45  ;;  %2504 = sbr.rel (%p4291_p8) target bundleno = 1117 (0x45d), region = 44 }
 0x456   : > { %v2443_v30 = vmax.f32 %v2392_v3, 0.0 }
 0x458   : > { %2485 = vst.msk [vmem:[#allocation3 + $0x31] sm:$0xff] %vm2480_vm1, %v2443_v30 }
 0x459   : > { %vm2507_vm2 = vcmask 25600   ;;  %v4569_v5 = vmov 0.0  }
 0x45a   : > { %2505 = vst.msk [vmem:[#allocation3] sm:$0xff] %vm2480_vm1, %v4569_v5 }
 0x45b   : > { %2506 = vst.msk [vmem:[#allocation3 + $0x8] sm:$0xff] %vm2480_vm1, %v4569_v5 }
 0x45c   : > { %2508 = vst.msk [vmem:[#allocation3 + $0x10] sm:$0x3] %vm2507_vm2, %v4569_v5 }
 0x45d PF: > { %p4292_p9 = scmp.ne.s32.totalorder %s4535_s18, 1 }
 0x45f   : > { %2512 = sbr.rel (%p4292_p9) target bundleno = 1128 (0x468), region = 48 }
 0x464   : > { %vm2516_vm3 = vcmask 25600   ;;  %v4570_v9 = vmov 0.0  }
 0x465   : > { %2514 = vst.msk [vmem:[#allocation3 + $0xd8] sm:$0xff] %vm2480_vm1, %v4570_v9 }
 0x466   : > { %2515 = vst.msk [vmem:[#allocation3 + $0xe0] sm:$0xff] %vm2480_vm1, %v4570_v9 }
 0x467   : > { %2517 = vst.msk [vmem:[#allocation3 + $0xe8] sm:$0x3] %vm2516_vm3, %v4570_v9 }
 0x468 PF: > { %v2551_v54 = vld [vmem:[%s6576_s3 + $0x4] sm:$0xf]  ;;  %vm2600_vm4 = vcmask 1043456   ;;  %v2534_v12 = vld [vmem:[%s6576_s3] sm:$0xf]  ;;  %v2536_v13 = vld [vmem:[#allocation3 + $0x9] sm:$0xff] }
 0x469   : > { %4449 = vmatpush.msk.msra.mxu2 %vm2600_vm4, %v2551_v54  ;;  %4450 = vmatpush.msk.msra.mxu3 %vm2600_vm4, %v2534_v12  ;;  %v2519_v15 = vld [vmem:[#allocation3 + $0x8] sm:$0xff]  ;;  %v2537_v33 = vld [vmem:[#allocation3 + $0x19] sm:$0xff]  ;;  %v6047_v2 = vld [vmem:[#allocation3 + $0x31] sm:$0xff] }
 0x46a   : > { %v2801_v18 = vld [vmem:[%s6576_s3 + $0x8] sm:$0xf]  ;;  %v2951_v43 = vld [vmem:[%s6576_s3 + $0xc] sm:$0xf]  ;;  %4295 = vmatmul.msk.f32.vlgmr.msra.gmra.mxu2 %vm2480_vm1, %v2536_v13  ;;  %4312 = vmatmul.msk.f32.vlgmr.msra.gmra.mxu3 %vm2480_vm1, %v2519_v15  ;;  %v6034_v24 = vld [vmem:[#allocation3 + $0x18] sm:$0xff] }
 0x46b   : > { %4327 = vmatpush.msk.msrb.mxu2 %vm2600_vm4, %v2801_v18  ;;  %4344 = vmatpush.msk.msrb.mxu3 %vm2600_vm4, %v2951_v43  ;;  %v6039_v58 = vld [vmem:[#allocation3 + $0x21] sm:$0xff]  ;;  %v6049_v61 = vld [vmem:[#allocation3 + $0x30] sm:$0xff]  ;;  %v6055_v63 = vld [vmem:[#allocation3 + $0x39] sm:$0xff] }
 0x46c   : > { %4293 = vmatpush.msk.msra.mxu0 %vm2600_vm4, %v2551_v54  ;;  %v6041_v1 = vld [vmem:[#allocation3 + $0x20] sm:$0xff]  ;;  %v6057_v35 = vld [vmem:[#allocation3 + $0x38] sm:$0xff]  ;;  %v6063_v41 = vld [vmem:[#allocation3 + $0x49] sm:$0xff] }
 0x46d   : > { %v6065_v32 = vld [vmem:[#allocation3 + $0x48] sm:$0xff]  ;;  %v6071_v21 = vld [vmem:[#allocation3 + $0x51] sm:$0xff]  ;;  %v6081_v34 = vld [vmem:[#allocation3 + $0x60] sm:$0xff] }
 0x46e   : > { %4310 = vmatpush.msk.msrb.mxu0 %vm2600_vm4, %v2534_v12  ;;  %v6073_v47 = vld [vmem:[#allocation3 + $0x50] sm:$0xff]  ;;  %v6079_v48 = vld [vmem:[#allocation3 + $0x61] sm:$0xff]  ;;  %v6095_v8 = vld [vmem:[#allocation3 + $0x79] sm:$0xff] }
 0x46f   : > { %v6087_v55 = vld [vmem:[#allocation3 + $0x69] sm:$0xff]  ;;  %v6097_v26 = vld [vmem:[#allocation3 + $0x78] sm:$0xff]  ;;  %v6103_v46 = vld [vmem:[#allocation3 + $0x81] sm:$0xff] }
 0x470   : > { %v6089_v60 = vld [vmem:[#allocation3 + $0x68] sm:$0xff]  ;;  %v6105_v14 = vld [vmem:[#allocation3 + $0x80] sm:$0xff]  ;;  %v6112_v10 = vld [vmem:[#allocation3 + $0x91] sm:$0xff] }
 0x471   : > { %v2535_v42 = vld [vmem:[#allocation3 + $0x1] sm:$0xff]  ;;  %v6114_v39 = vld [vmem:[#allocation3 + $0x90] sm:$0xff]  ;;  %v3399_v36 = vld [vmem:[%s6576_s3 + $0x18] sm:$0xf] }
 0x472   : > { %4296 = vmatmul.msk.f32.gmra.mxu2 %vm2480_vm1, %v2537_v33  ;;  %4313 = vmatmul.msk.f32.gmra.mxu3 %vm2480_vm1, %v6034_v24  ;;  %v3548_v0 = vld [vmem:[%s6576_s3 + $0x1c] sm:$0xf]  ;;  %v2518_v11 = vld [vmem:[#allocation3] sm:$0xff]  ;;  %v3100_v57 = vld [vmem:[%s6576_s3 + $0x10] sm:$0xf] }
 0x473   : > { %4294 = vmatmul.msk.f32.vlgmr.msra.gmra.mxu0 %vm2480_vm1, %v2535_v42  ;;  %4395 = vmatpush.msk.msra.mxu2 %vm2600_vm4, %v3399_v36  ;;  %v6129_v17 = vld [vmem:[#allocation3 + $0x99] sm:$0xff]  ;;  %v3249_v20 = vld [vmem:[%s6576_s3 + $0x14] sm:$0xf]  ;;  %v6151_v4 = vld [vmem:[#allocation3 + $0xa9] sm:$0xff] }
 0x474   : > { %4412 = vmatpush.msk.msra.mxu3 %vm2600_vm4, %v3548_v0  ;;  %v6131_v56 = vld [vmem:[#allocation3 + $0x98] sm:$0xff]  ;;  %v3697_v59 = vld [vmem:[%s6576_s3 + $0x20] sm:$0xf]  ;;  %4361 = vmatpush.msk.msrb.mxu1 %vm2600_vm4, %v3100_v57  ;;  %v6153_v51 = vld [vmem:[#allocation3 + $0xa8] sm:$0xff] }
 0x475   : > { %4362 = vmatmul.msk.f32.vlgmr.msrb.gmra.mxu1 %vm2480_vm1, %v2537_v33  ;;  %4378 = vmatpush.msk.msra.mxu0 %vm2600_vm4, %v3249_v20  ;;  %v3233_v22 = vld [vmem:[#allocation3 + $0x1a] sm:$0xff]  ;;  %v3234_v28 = vld [vmem:[#allocation3 + $0x22] sm:$0xff]  ;;  %v6162_v29 = vld [vmem:[#allocation3 + $0xb1] sm:$0xff] }
 0x476   : > { %4429 = vmatpush.msk.msra.mxu1 %vm2600_vm4, %v3697_v59  ;;  %v6164_v16 = vld [vmem:[#allocation3 + $0xb0] sm:$0xff]  ;;  %v2785_v49 = vld [vmem:[#allocation3 + $0x2] sm:$0xff]  ;;  %v6181_v31 = vld [vmem:[#allocation3 + $0x3a] sm:$0xff] }
 0x477   : > { %v6172_v23 = vld [vmem:[#allocation3 + $0x32] sm:$0xff]  ;;  %v2786_v53 = vld [vmem:[#allocation3 + $0xa] sm:$0xff]  ;;  %v6212_v44 = vld [vmem:[#allocation3 + $0x62] sm:$0xff] }
 0x478   : > { %v6190_v62 = vld [vmem:[#allocation3 + $0x4a] sm:$0xff]  ;;  %v6201_v52 = vld [vmem:[#allocation3 + $0x52] sm:$0xff]  ;;  %v6236_v12 = vld [vmem:[#allocation3 + $0x7a] sm:$0xff] }
 0x479   : > { %v6224_v30 = vld [vmem:[#allocation3 + $0x6a] sm:$0xff]  ;;  %v6248_v43 = vld [vmem:[#allocation3 + $0x82] sm:$0xff] }
 0x47a   : > { %4297 = vmatmul.msk.f32.gmra.mxu2 %vm2480_vm1, %v6039_v58  ;;  %4314 = vmatmul.msk.f32.gmra.mxu3 %vm2480_vm1, %v6041_v1 }
 0x47b   : > { %4311 = vmatmul.msk.f32.vlgmr.msrb.gmra.mxu0 %vm2480_vm1, %v2518_v11  ;;  %v6272_v11 = vld [vmem:[#allocation3 + $0x9a] sm:$0xff] }
 0x47d   : > { %4363 = vmatmul.msk.f32.gmra.mxu1 %vm2480_vm1, %v6039_v58 }
 0x482   : > { %4298 = vmatmul.msk.f32.gmra.mxu2 %vm2480_vm1, %v6047_v2  ;;  %4315 = vmatmul.msk.f32.gmra.mxu3 %vm2480_vm1, %v6049_v61 }
 0x483   : > { %4379 = vmatmul.msk.f32.vlgmr.msra.gmra.mxu0 %vm2480_vm1, %v3233_v22 }
 0x485   : > { %4364 = vmatmul.msk.f32.gmra.mxu1 %vm2480_vm1, %v6047_v2 }
 0x48a   : > { %4299 = vmatmul.msk.f32.gmra.mxu2 %vm2480_vm1, %v6055_v63  ;;  %4316 = vmatmul.msk.f32.gmra.mxu3 %vm2480_vm1, %v6057_v35 }
 0x48b   : > { %4380 = vmatmul.msk.f32.gmra.mxu0 %vm2480_vm1, %v3234_v28 }
 0x48d   : > { %4365 = vmatmul.msk.f32.gmra.mxu1 %vm2480_vm1, %v6055_v63 }
 0x492   : > { %4300 = vmatmul.msk.f32.gmra.mxu2 %vm2480_vm1, %v6063_v41  ;;  %4317 = vmatmul.msk.f32.gmra.mxu3 %vm2480_vm1, %v6065_v32 }
 0x493   : > { %4381 = vmatmul.msk.f32.gmra.mxu0 %vm2480_vm1, %v6172_v23 }
 0x495   : > { %4366 = vmatmul.msk.f32.gmra.mxu1 %vm2480_vm1, %v6063_v41 }
 0x49a   : > { %4301 = vmatmul.msk.f32.gmra.mxu2 %vm2480_vm1, %v6071_v21  ;;  %4318 = vmatmul.msk.f32.gmra.mxu3 %vm2480_vm1, %v6073_v47 }
 0x49b   : > { %4382 = vmatmul.msk.f32.gmra.mxu0 %vm2480_vm1, %v6181_v31 }
 0x49d   : > { %4367 = vmatmul.msk.f32.gmra.mxu1 %vm2480_vm1, %v6071_v21 }
 0x4a2   : > { %4302 = vmatmul.msk.f32.gmra.mxu2 %vm2480_vm1, %v6079_v48  ;;  %4319 = vmatmul.msk.f32.gmra.mxu3 %vm2480_vm1, %v6081_v34 }
 0x4a3   : > { %4383 = vmatmul.msk.f32.gmra.mxu0 %vm2480_vm1, %v6190_v62 }
 0x4a5   : > { %4368 = vmatmul.msk.f32.gmra.mxu1 %vm2480_vm1, %v6079_v48 }
 0x4aa   : > { %4303 = vmatmul.msk.f32.gmra.mxu2 %vm2480_vm1, %v6087_v55  ;;  %4320 = vmatmul.msk.f32.gmra.mxu3 %vm2480_vm1, %v6089_v60 }
 0x4ab   : > { %4384 = vmatmul.msk.f32.gmra.mxu0 %vm2480_vm1, %v6201_v52 }
 0x4ad   : > { %4369 = vmatmul.msk.f32.gmra.mxu1 %vm2480_vm1, %v6087_v55 }
 0x4b2   : > { %4304 = vmatmul.msk.f32.gmra.mxu2 %vm2480_vm1, %v6095_v8  ;;  %4321 = vmatmul.msk.f32.gmra.mxu3 %vm2480_vm1, %v6097_v26 }
 0x4b3   : > { %4385 = vmatmul.msk.f32.gmra.mxu0 %vm2480_vm1, %v6212_v44 }
 0x4b5   : > { %4370 = vmatmul.msk.f32.gmra.mxu1 %vm2480_vm1, %v6095_v8 }
 0x4ba   : > { %4305 = vmatmul.msk.f32.gmra.mxu2 %vm2480_vm1, %v6103_v46  ;;  %4322 = vmatmul.msk.f32.gmra.mxu3 %vm2480_vm1, %v6105_v14 }
 0x4bb   : > { %4386 = vmatmul.msk.f32.gmra.mxu0 %vm2480_vm1, %v6224_v30 }
 0x4bd   : > { %4371 = vmatmul.msk.f32.gmra.mxu1 %vm2480_vm1, %v6103_v46 }
 0x4c2   : > { %4306 = vmatmul.msk.f32.gmra.mxu2 %vm2480_vm1, %v6112_v10  ;;  %4323 = vmatmul.msk.f32.gmra.mxu3 %vm2480_vm1, %v6114_v39 }
 0x4c3   : > { %4387 = vmatmul.msk.f32.gmra.mxu0 %vm2480_vm1, %v6236_v12 }
 0x4c5   : > { %4372 = vmatmul.msk.f32.gmra.mxu1 %vm2480_vm1, %v6112_v10 }
 0x4ca   : > { %4307 = vmatmul.msk.f32.gmra.mxu2 %vm2480_vm1, %v6129_v17  ;;  %4324 = vmatmul.msk.f32.gmra.mxu3 %vm2480_vm1, %v6131_v56 }
 0x4cb   : > { %4388 = vmatmul.msk.f32.gmra.mxu0 %vm2480_vm1, %v6248_v43 }
 0x4cd   : > { %4373 = vmatmul.msk.f32.gmra.mxu1 %vm2480_vm1, %v6129_v17 }
 0x4d2   : > { %4308 = vmatmul.msk.f32.gmra.mxu2 %vm2480_vm1, %v6151_v4  ;;  %4325 = vmatmul.msk.f32.gmra.mxu3 %vm2480_vm1, %v6153_v51 }
 0x4d5   : > { %4374 = vmatmul.msk.f32.gmra.mxu1 %vm2480_vm1, %v6151_v4 }
 0x4da   : > { %4309 = vmatmul.msk.f32.gmra.mxu2 %vm2480_vm1, %v6162_v29  ;;  %4326 = vmatmul.msk.f32.gmra.mxu3 %vm2480_vm1, %v6164_v16 }
 0x4dd   : > { %4375 = vmatmul.msk.f32.gmra.mxu1 %vm2480_vm1, %v6162_v29 }
 0x4e2   : > { %4328 = vmatmul.msk.f32.vlgmr.msrb.gmra.mxu2 %vm2480_vm1, %v2785_v49  ;;  %4345 = vmatmul.msk.f32.vlgmr.msrb.gmra.mxu3 %vm2480_vm1, %v6034_v24 }
 0x4ea   : > { %4329 = vmatmul.msk.f32.gmra.mxu2 %vm2480_vm1, %v2786_v53  ;;  %4346 = vmatmul.msk.f32.gmra.mxu3 %vm2480_vm1, %v6041_v1  ;;  %v6260_v1 = vld [vmem:[#allocation3 + $0x92] sm:$0xff] }
 0x4eb   : > { %4389 = vmatmul.msk.f32.gmra.mxu0 %vm2480_vm1, %v6260_v1 }
 0x4ed   : > { %v2624_v37 = vpop.f32.mrf.mxu2  ;;  %v2740_v40 = vpop.f32.mrf.mxu3 }
 0x4ee   : > { %v6192_v7 = vadd.f32 %v2740_v40, %v2624_v37  ;;  %v6296_v37 = vld [vmem:[#allocation3 + $0xb2] sm:$0xff] }
 0x4f2   : > { %4330 = vmatmul.msk.f32.gmra.mxu2 %vm2480_vm1, %v3233_v22  ;;  %4347 = vmatmul.msk.f32.gmra.mxu3 %vm2480_vm1, %v6049_v61  ;;  %v6284_v22 = vld [vmem:[#allocation3 + $0xaa] sm:$0xff] }
 0x4f3   : > { %4390 = vmatmul.msk.f32.gmra.mxu0 %vm2480_vm1, %v6272_v11 }
 0x4f5   : > { %v2627_v6 = vpop.f32.mrf.mxu2  ;;  %v2743_v25 = vpop.f32.mrf.mxu3 }
 0x4f6   : > { %v6203_v19 = vadd.f32 %v2743_v25, %v2627_v6  ;;  %v6306_v6 = vld [vmem:[#allocation3 + $0xc1] sm:$0xff] }
 0x4f7   : > { %4376 = vmatmul.msk.f32.gmra.mxu1 %vm2480_vm1, %v6306_v6 }
 0x4fa   : > { %4331 = vmatmul.msk.f32.gmra.mxu2 %vm2480_vm1, %v3234_v28  ;;  %4348 = vmatmul.msk.f32.gmra.mxu3 %vm2480_vm1, %v6057_v35 }
 0x4fb   : > { %4391 = vmatmul.msk.f32.gmra.mxu0 %vm2480_vm1, %v6284_v22 }
 0x4fd   : > { %v2630_v38 = vpop.f32.mrf.mxu2  ;;  %v2746_v27 = vpop.f32.mrf.mxu3 }
 0x4fe   : > { %v6214_v45 = vadd.f32 %v2746_v27, %v2630_v38  ;;  %v6310_v27 = vld [vmem:[#allocation3 + $0xc2] sm:$0xff] }
 0x502   : > { %4332 = vmatmul.msk.f32.gmra.mxu2 %vm2480_vm1, %v6172_v23  ;;  %4349 = vmatmul.msk.f32.gmra.mxu3 %vm2480_vm1, %v6065_v32 }
 0x503   : > { %4392 = vmatmul.msk.f32.gmra.mxu0 %vm2480_vm1, %v6296_v37 }
 0x505   : > { %v2633_v50 = vpop.f32.mrf.mxu2  ;;  %v2749_v3 = vpop.f32.mrf.mxu3 }
 0x506   : > { %v6226_v5 = vadd.f32 %v2749_v3, %v2633_v50  ;;  %v6320_v3 = vld [vmem:[#allocation3 + $0xc9] sm:$0xff] }
 0x507   : > { %6581 = vst [vmem:[#allocation4_spill] sm:$0xff] %v6320_v3  ;;  %4377 = vmatmul.msk.f32.gmra.mxu1 %vm2480_vm1, %v6320_v3 }
 0x50a   : > { %4333 = vmatmul.msk.f32.gmra.mxu2 %vm2480_vm1, %v6181_v31  ;;  %4350 = vmatmul.msk.f32.gmra.mxu3 %vm2480_vm1, %v6073_v47 }
 0x50b   : > { %4393 = vmatmul.msk.f32.gmra.mxu0 %vm2480_vm1, %v6310_v27 }
 0x50d   : > { %v2636_v9 = vpop.f32.mrf.mxu2  ;;  %v2752_v54 = vpop.f32.mrf.mxu3 }
 0x50e   : > { %v6238_v13 = vadd.f32 %v2752_v54, %v2636_v9 }
 0x50f   : > { %4430 = vmatmul.msk.f32.vlgmr.msra.gmra.mxu1 %vm2480_vm1, %v6172_v23 }
 0x512   : > { %4334 = vmatmul.msk.f32.gmra.mxu2 %vm2480_vm1, %v6190_v62  ;;  %4351 = vmatmul.msk.f32.gmra.mxu3 %vm2480_vm1, %v6081_v34 }
 0x515   : > { %v2639_v15 = vpop.f32.mrf.mxu2  ;;  %v2755_v18 = vpop.f32.mrf.mxu3 }
 0x516   : > { %v6250_v33 = vadd.f32 %v2755_v18, %v2639_v15  ;;  %v6324_v15 = vld [vmem:[#allocation3 + $0xca] sm:$0xff] }
 0x517   : > { %4394 = vmatmul.msk.f32.gmra.mxu0 %vm2480_vm1, %v6324_v15  ;;  %4431 = vmatmul.msk.f32.gmra.mxu1 %vm2480_vm1, %v6181_v31 }
 0x51a   : > { %4335 = vmatmul.msk.f32.gmra.mxu2 %vm2480_vm1, %v6201_v52  ;;  %4352 = vmatmul.msk.f32.gmra.mxu3 %vm2480_vm1, %v6089_v60 }
 0x51d   : > { %v2642_v24 = vpop.f32.mrf.mxu2  ;;  %v2758_v58 = vpop.f32.mrf.mxu3 }
 0x51e   : > { %v6262_v42 = vadd.f32 %v2758_v58, %v2642_v24  ;;  %v3169_v24 = vpop.f32.mrf.mxu1 }
 0x51f   : > { %4432 = vmatmul.msk.f32.gmra.mxu1 %vm2480_vm1, %v6190_v62 }
 0x522   : > { %4336 = vmatmul.msk.f32.gmra.mxu2 %vm2480_vm1, %v6212_v44  ;;  %4353 = vmatmul.msk.f32.gmra.mxu3 %vm2480_vm1, %v6097_v26 }
 0x525   : > { %v2645_v36 = vpop.f32.mrf.mxu2  ;;  %v2761_v0 = vpop.f32.mrf.mxu3 }
 0x526   : > { %v6274_v57 = vadd.f32 %v2761_v0, %v2645_v36 }
 0x527   : > { %4433 = vmatmul.msk.f32.gmra.mxu1 %vm2480_vm1, %v6201_v52 }
 0x52a   : > { %4337 = vmatmul.msk.f32.gmra.mxu2 %vm2480_vm1, %v6224_v30  ;;  %4354 = vmatmul.msk.f32.gmra.mxu3 %vm2480_vm1, %v6105_v14 }
 0x52d   : > { %v2648_v59 = vpop.f32.mrf.mxu2  ;;  %v2764_v20 = vpop.f32.mrf.mxu3 }
 0x52e   : > { %v6286_v28 = vadd.f32 %v2764_v20, %v2648_v59  ;;  %v6338_v59 = vld [vmem:[#allocation3 + $0xc0] sm:$0xff]  ;;  %v3172_v20 = vpop.f32.mrf.mxu1 }
 0x52f   : > { %4434 = vmatmul.msk.f32.gmra.mxu1 %vm2480_vm1, %v6212_v44 }
 0x532   : > { %4338 = vmatmul.msk.f32.gmra.mxu2 %vm2480_vm1, %v6236_v12  ;;  %4355 = vmatmul.msk.f32.gmra.mxu3 %vm2480_vm1, %v6114_v39 }
 0x535   : > { %v2651_v49 = vpop.f32.mrf.mxu2  ;;  %v2767_v53 = vpop.f32.mrf.mxu3 }
 0x536   : > { %v6298_v40 = vadd.f32 %v2767_v53, %v2651_v49  ;;  %v2621_v49 = vpop.f32.mrf.mxu0 }
 0x537   : > { %4435 = vmatmul.msk.f32.gmra.mxu1 %vm2480_vm1, %v6224_v30 }
 0x53a   : > { %4339 = vmatmul.msk.f32.gmra.mxu2 %vm2480_vm1, %v6248_v43  ;;  %4356 = vmatmul.msk.f32.gmra.mxu3 %vm2480_vm1, %v6131_v56 }
 0x53d   : > { %v2654_v25 = vpop.f32.mrf.mxu2  ;;  %v2770_v38 = vpop.f32.mrf.mxu3 }
 0x53e   : > { %v6312_v50 = vadd.f32 %v2770_v38, %v2654_v25  ;;  %v6348_v38 = vld [vmem:[#allocation3 + $0xc8] sm:$0xff]  ;;  %v2737_v31 = vpop.f32.mrf.mxu0 }
 0x53f   : > { %6585 = vst [vmem:[#allocation8_spill] sm:$0xff] %v6348_v38  ;;  %4436 = vmatmul.msk.f32.gmra.mxu1 %vm2480_vm1, %v6236_v12 }
 0x542   : > { %4340 = vmatmul.msk.f32.gmra.mxu2 %vm2480_vm1, %v6260_v1  ;;  %4357 = vmatmul.msk.f32.gmra.mxu3 %vm2480_vm1, %v6153_v51 }
 0x545   : > { %v2657_v9 = vpop.f32.mrf.mxu2  ;;  %v2773_v54 = vpop.f32.mrf.mxu3 }
 0x546   : > { %v6326_v18 = vadd.f32 %v2773_v54, %v2657_v9  ;;  %v3175_v9 = vpop.f32.mrf.mxu1 }
 0x547   : > { %4437 = vmatmul.msk.f32.gmra.mxu1 %vm2480_vm1, %v6248_v43 }
 0x548   : > { %6582 = vst [vmem:[#allocation5_spill] sm:$0xff] %v6326_v18 }
 0x54a   : > { %4341 = vmatmul.msk.f32.gmra.mxu2 %vm2480_vm1, %v6272_v11  ;;  %4358 = vmatmul.msk.f32.gmra.mxu3 %vm2480_vm1, %v6164_v16 }
 0x54d   : > { %v2660_v58 = vpop.f32.mrf.mxu2  ;;  %v2776_v36 = vpop.f32.mrf.mxu3 }
 0x54e   : > { %v6336_v0 = vadd.f32 %v2776_v36, %v2660_v58 }
 0x54f   : > { %4438 = vmatmul.msk.f32.gmra.mxu1 %vm2480_vm1, %v6260_v1 }
 0x550   : > { %6583 = vst [vmem:[#allocation6_spill] sm:$0xff] %v6336_v0  ;;  %v3178_v0 = vpop.f32.mrf.mxu1 }
 0x552   : > { %4342 = vmatmul.msk.f32.gmra.mxu2 %vm2480_vm1, %v6284_v22  ;;  %4359 = vmatmul.msk.f32.gmra.mxu3 %vm2480_vm1, %v6338_v59 }
 0x555   : > { %v2663_v53 = vpop.f32.mrf.mxu2  ;;  %v2779_v25 = vpop.f32.mrf.mxu3 }
 0x556   : > { %v6346_v23 = vadd.f32 %v2779_v25, %v2663_v53  ;;  %v2738_v53 = vadd.f32 %v2737_v31, %v2621_v49 }
 0x557   : > { %4439 = vmatmul.msk.f32.gmra.mxu1 %vm2480_vm1, %v6272_v11 }
 0x558   : > { %6584 = vst [vmem:[#allocation7_spill] sm:$0xff] %v6346_v23 }
 0x55a   : > { %4343 = vmatmul.msk.f32.gmra.mxu2 %vm2480_vm1, %v6296_v37  ;;  %4360 = vmatmul.msk.f32.gmra.mxu3 %vm2480_vm1, %v6348_v38  ;;  %v3181_v38 = vpop.f32.mrf.mxu1 }
 0x55d   : > { %v2666_v54 = vpop.f32.mrf.mxu2  ;;  %v2782_v58 = vpop.f32.mrf.mxu3 }
 0x55e   : > { %v6356_v36 = vadd.f32 %v2782_v58, %v2666_v54 }
 0x55f   : > { %4440 = vmatmul.msk.f32.gmra.mxu1 %vm2480_vm1, %v6284_v22 }
 0x562   : > { %4396 = vmatmul.msk.f32.vlgmr.msra.gmra.mxu2 %vm2480_vm1, %v6049_v61  ;;  %4413 = vmatmul.msk.f32.vlgmr.msra.gmra.mxu3 %vm2480_vm1, %v6047_v2  ;;  %v3184_v54 = vpop.f32.mrf.mxu1 }
 0x565   : > { %v2870_v25 = vpop.f32.mrf.mxu2  ;;  %v3020_v23 = vpop.f32.mrf.mxu3 }
 0x566   : > { %v2918_v3 = vadd.f32 %v2870_v25, %v2738_v53 }
 0x567   : > { %4441 = vmatmul.msk.f32.gmra.mxu1 %vm2480_vm1, %v6296_v37 }
 0x568   : > { %v3068_v62 = vadd.f32 %v3020_v23, %v2918_v3 }
 0x56a   : > { %v6364_v18 = vadd.f32 %v3169_v24, %v3068_v62  ;;  %4397 = vmatmul.msk.f32.gmra.mxu2 %vm2480_vm1, %v6057_v35  ;;  %4414 = vmatmul.msk.f32.gmra.mxu3 %vm2480_vm1, %v6055_v63  ;;  %v3187_v24 = vpop.f32.mrf.mxu1 }
 0x56d   : > { %v2873_v2 = vpop.f32.mrf.mxu2  ;;  %v3023_v61 = vpop.f32.mrf.mxu3 }
 0x56e   : > { %v2919_v52 = vadd.f32 %v2873_v2, %v6192_v7 }
 0x56f   : > { %4442 = vmatmul.msk.f32.gmra.mxu1 %vm2480_vm1, %v6310_v27 }
 0x570   : > { %v3069_v49 = vadd.f32 %v3023_v61, %v2919_v52 }
 0x572   : > { %v6373_v58 = vadd.f32 %v3172_v20, %v3069_v49  ;;  %4398 = vmatmul.msk.f32.gmra.mxu2 %vm2480_vm1, %v6065_v32  ;;  %4415 = vmatmul.msk.f32.gmra.mxu3 %vm2480_vm1, %v6063_v41  ;;  %v3190_v23 = vpop.f32.mrf.mxu1 }
 0x575   : > { %v2876_v63 = vpop.f32.mrf.mxu2  ;;  %v3026_v35 = vpop.f32.mrf.mxu3 }
 0x576   : > { %v2920_v44 = vadd.f32 %v2876_v63, %v6203_v19 }
 0x577   : > { %4443 = vmatmul.msk.f32.gmra.mxu1 %vm2480_vm1, %v6324_v15 }
 0x578   : > { %v3070_v3 = vadd.f32 %v3026_v35, %v2920_v44 }
 0x57a   : > { %v6382_v7 = vadd.f32 %v3175_v9, %v3070_v3  ;;  %4399 = vmatmul.msk.f32.gmra.mxu2 %vm2480_vm1, %v6073_v47  ;;  %4416 = vmatmul.msk.f32.gmra.mxu3 %vm2480_vm1, %v6071_v21  ;;  %v3193_v31 = vpop.f32.mrf.mxu1 }
 0x57d   : > { %v2879_v41 = vpop.f32.mrf.mxu2  ;;  %v3029_v32 = vpop.f32.mrf.mxu3 }
 0x57e   : > { %v2921_v30 = vadd.f32 %v2879_v41, %v6214_v45 }
 0x580   : > { %v3071_v20 = vadd.f32 %v3029_v32, %v2921_v30  ;;  %v6586_v30 = vld [vmem:[#allocation5_spill] sm:$0xff] }
 0x582   : > { %v6391_v19 = vadd.f32 %v3178_v0, %v3071_v20  ;;  %4400 = vmatmul.msk.f32.gmra.mxu2 %vm2480_vm1, %v6081_v34  ;;  %4417 = vmatmul.msk.f32.gmra.mxu3 %vm2480_vm1, %v6079_v48  ;;  %v3196_v53 = vpop.f32.mrf.mxu1 }
 0x585   : > { %v2882_v21 = vpop.f32.mrf.mxu2  ;;  %v3032_v47 = vpop.f32.mrf.mxu3 }
 0x586   : > { %v2922_v12 = vadd.f32 %v2882_v21, %v6226_v5 }
 0x588   : > { %v3072_v9 = vadd.f32 %v3032_v47, %v2922_v12  ;;  %v6587_v47 = vld [vmem:[#allocation8_spill] sm:$0xff] }
 0x589   : > { %v6588_v12 = vld [vmem:[#allocation4_spill] sm:$0xff] }
 0x58a   : > { %v6400_v45 = vadd.f32 %v3181_v38, %v3072_v9  ;;  %4401 = vmatmul.msk.f32.gmra.mxu2 %vm2480_vm1, %v6089_v60  ;;  %4418 = vmatmul.msk.f32.gmra.mxu3 %vm2480_vm1, %v6087_v55  ;;  %v3199_v25 = vpop.f32.mrf.mxu1 }
 0x58d   : > { %v2885_v48 = vpop.f32.mrf.mxu2  ;;  %v3035_v34 = vpop.f32.mrf.mxu3 }
 0x58e   : > { %v2923_v43 = vadd.f32 %v2885_v48, %v6238_v13 }
 0x590   : > { %v3073_v0 = vadd.f32 %v3035_v34, %v2923_v43  ;;  %v3397_v34 = vld [vmem:[#allocation3 + $0xd8] sm:$0xff] }
 0x591   : > { %v3546_v43 = vld [vmem:[#allocation3 + $0xd9] sm:$0xff] }
 0x592   : > { %v6409_v5 = vadd.f32 %v3184_v54, %v3073_v0  ;;  %4402 = vmatmul.msk.f32.gmra.mxu2 %vm2480_vm1, %v6097_v26  ;;  %4419 = vmatmul.msk.f32.gmra.mxu3 %vm2480_vm1, %v6095_v8  ;;  %v3202_v2 = vpop.f32.mrf.mxu1 }
 0x595   : > { %v2888_v55 = vpop.f32.mrf.mxu2  ;;  %v3038_v60 = vpop.f32.mrf.mxu3 }
 0x596   : > { %v2924_v1 = vadd.f32 %v2888_v55, %v6250_v33 }
 0x598   : > { %v3074_v38 = vadd.f32 %v3038_v60, %v2924_v1 }
 0x59a   : > { %v6418_v13 = vadd.f32 %v3187_v24, %v3074_v38  ;;  %4403 = vmatmul.msk.f32.gmra.mxu2 %vm2480_vm1, %v6105_v14  ;;  %4420 = vmatmul.msk.f32.gmra.mxu3 %vm2480_vm1, %v6103_v46  ;;  %v3205_v52 = vpop.f32.mrf.mxu1 }
 0x59d   : > { %v2891_v8 = vpop.f32.mrf.mxu2  ;;  %v3041_v26 = vpop.f32.mrf.mxu3 }
 0x59e   : > { %v2925_v11 = vadd.f32 %v2891_v8, %v6262_v42 }
 0x5a0   : > { %v3075_v62 = vadd.f32 %v3041_v26, %v2925_v11  ;;  %v3398_v26 = vld [vmem:[#allocation3 + $0xe0] sm:$0xff] }
 0x5a1   : > { %v3547_v11 = vld [vmem:[#allocation3 + $0xe1] sm:$0xff] }
 0x5a2   : > { %v6427_v33 = vadd.f32 %v3190_v23, %v3075_v62  ;;  %4404 = vmatmul.msk.f32.gmra.mxu2 %vm2480_vm1, %v6114_v39  ;;  %4421 = vmatmul.msk.f32.gmra.mxu3 %vm2480_vm1, %v6112_v10  ;;  %v3208_v54 = vpop.f32.mrf.mxu1 }
 0x5a5   : > { %v2894_v46 = vpop.f32.mrf.mxu2  ;;  %v3044_v14 = vpop.f32.mrf.mxu3 }
 0x5a6   : > { %v2926_v22 = vadd.f32 %v2894_v46, %v6274_v57 }
 0x5a8   : > { %v3076_v61 = vadd.f32 %v3044_v14, %v2926_v22 }
 0x5aa   : > { %v6436_v42 = vadd.f32 %v3193_v31, %v3076_v61  ;;  %4405 = vmatmul.msk.f32.gmra.mxu2 %vm2480_vm1, %v6131_v56  ;;  %4422 = vmatmul.msk.f32.gmra.mxu3 %vm2480_vm1, %v6129_v17  ;;  %v3211_v35 = vpop.f32.mrf.mxu1  ;;  %v6589_v31 = vld [vmem:[#allocation6_spill] sm:$0xff] }
 0x5ad   : > { %v2897_v10 = vpop.f32.mrf.mxu2  ;;  %v3047_v39 = vpop.f32.mrf.mxu3 }
 0x5ae   : > { %v2927_v37 = vadd.f32 %v2897_v10, %v6286_v28 }
 0x5b0   : > { %v3077_v49 = vadd.f32 %v3047_v39, %v2927_v37 }
 0x5b2   : > { %v6445_v57 = vadd.f32 %v3196_v53, %v3077_v49  ;;  %4406 = vmatmul.msk.f32.gmra.mxu2 %vm2480_vm1, %v6153_v51  ;;  %4423 = vmatmul.msk.f32.gmra.mxu3 %vm2480_vm1, %v6151_v4  ;;  %v3695_v51 = vld [vmem:[#allocation3 + $0xda] sm:$0xff]  ;;  %v3214_v24 = vpop.f32.mrf.mxu1 }
 0x5b3   : > { %4444 = vmatmul.msk.f32.gmra.mxu1 %vm2480_vm1, %v3695_v51 }
 0x5b5   : > { %v2900_v17 = vpop.f32.mrf.mxu2  ;;  %v3050_v56 = vpop.f32.mrf.mxu3 }
 0x5b6   : > { %v2928_v27 = vadd.f32 %v2900_v17, %v6298_v40  ;;  %v3318_v40 = vpop.f32.mrf.mxu0 }
 0x5b7   : > { %v3366_v37 = vadd.f32 %v3318_v40, %v6364_v18 }
 0x5b8   : > { %v3078_v63 = vadd.f32 %v3050_v56, %v2928_v27 }
 0x5ba   : > { %v6454_v28 = vadd.f32 %v3199_v25, %v3078_v63  ;;  %4407 = vmatmul.msk.f32.gmra.mxu2 %vm2480_vm1, %v6164_v16  ;;  %4424 = vmatmul.msk.f32.gmra.mxu3 %vm2480_vm1, %v6162_v29  ;;  %v3696_v16 = vld [vmem:[#allocation3 + $0xe2] sm:$0xff]  ;;  %v6493_v63 = vld [vmem:[%s6577_s4] ss:$0 sm:$0xff] }
 0x5bb   : > { %4445 = vmatmul.msk.f32.gmra.mxu1 %vm2480_vm1, %v3696_v16  ;;  %v6590_v25 = vld [vmem:[#allocation7_spill] sm:$0xff] }
 0x5bd   : > { %v2903_v4 = vpop.f32.mrf.mxu2  ;;  %v3053_v44 = vpop.f32.mrf.mxu3 }
 0x5be   : > { %v2929_v15 = vadd.f32 %v2903_v4, %v6312_v50  ;;  %v3766_v50 = vpop.f32.mrf.mxu1 }
 0x5c0   : > { %v3079_v3 = vadd.f32 %v3053_v44, %v2929_v15 }
 0x5c2   : > { %v6462_v41 = vadd.f32 %v3202_v2, %v3079_v3  ;;  %4408 = vmatmul.msk.f32.gmra.mxu2 %vm2480_vm1, %v6338_v59  ;;  %4425 = vmatmul.msk.f32.gmra.mxu3 %vm2480_vm1, %v6306_v6  ;;  %v3321_v59 = vpop.f32.mrf.mxu0 }
 0x5c5   : > { %v2906_v29 = vpop.f32.mrf.mxu2  ;;  %v3056_v32 = vpop.f32.mrf.mxu3 }
 0x5c6   : > { %v2930_v20 = vadd.f32 %v2906_v29, %v6586_v30  ;;  %v3769_v55 = vpop.f32.mrf.mxu1 }
 0x5c8   : > { %v3080_v23 = vadd.f32 %v3056_v32, %v2930_v20 }
 0x5ca   : > { %v6470_v21 = vadd.f32 %v3205_v52, %v3080_v23  ;;  %4409 = vmatmul.msk.f32.gmra.mxu2 %vm2480_vm1, %v6587_v47  ;;  %4426 = vmatmul.msk.f32.gmra.mxu3 %vm2480_vm1, %v6588_v12  ;;  %v3324_v38 = vpop.f32.mrf.mxu0 }
 0x5cb   : > { %v3368_v29 = vadd.f32 %v3324_v38, %v6382_v7 }
 0x5cd   : > { %v2909_v9 = vpop.f32.mrf.mxu2  ;;  %v3059_v6 = vpop.f32.mrf.mxu3 }
 0x5ce   : > { %v2931_v48 = vadd.f32 %v2909_v9, %v6589_v31  ;;  %v3772_v46 = vpop.f32.mrf.mxu1 }
 0x5d0   : > { %v3081_v0 = vadd.f32 %v3059_v6, %v2931_v48 }
 0x5d2   : > { %v6477_v53 = vadd.f32 %v3208_v54, %v3081_v0  ;;  %4410 = vmatmul.msk.f32.gmra.mxu2 %vm2480_vm1, %v3397_v34  ;;  %4427 = vmatmul.msk.f32.gmra.mxu3 %vm2480_vm1, %v3546_v43  ;;  %v3327_v52 = vpop.f32.mrf.mxu0 }
 0x5d3   : > { %v3369_v9 = vadd.f32 %v3327_v52, %v6391_v19 }
 0x5d5   : > { %v2912_v60 = vpop.f32.mrf.mxu2  ;;  %v3062_v1 = vpop.f32.mrf.mxu3 }
 0x5d6   : > { %v2932_v8 = vadd.f32 %v2912_v60, %v6590_v25  ;;  %v3775_v56 = vpop.f32.mrf.mxu1 }
 0x5d8   : > { %v3082_v62 = vadd.f32 %v3062_v1, %v2932_v8 }
 0x5da   : > { %v6482_v2 = vadd.f32 %v3211_v35, %v3082_v62  ;;  %4411 = vmatmul.msk.f32.gmra.mxu2 %vm2480_vm1, %v3398_v26  ;;  %4428 = vmatmul.msk.f32.gmra.mxu3 %vm2480_vm1, %v3547_v11  ;;  %v3330_v35 = vpop.f32.mrf.mxu0 }
 0x5db   : > { %v3370_v60 = vadd.f32 %v3330_v35, %v6400_v45 }
 0x5dd   : > { %v2915_v14 = vpop.f32.mrf.mxu2  ;;  %v3065_v22 = vpop.f32.mrf.mxu3 }
 0x5de   : > { %v2933_v61 = vadd.f32 %v2915_v14, %v6356_v36  ;;  %v3367_v36 = vadd.f32 %v3321_v59, %v6373_v58  ;;  %v3778_v40 = vpop.f32.mrf.mxu1 }
 0x5e0   : > { %v3083_v10 = vadd.f32 %v3065_v22, %v2933_v61 }
 0x5e2   : > { %v6487_v39 = vadd.f32 %v3214_v24, %v3083_v10  ;;  %v3333_v32 = vpop.f32.mrf.mxu0 }
 0x5e3   : > { %v3371_v14 = vadd.f32 %v3333_v32, %v6409_v5 }
 0x5e5   : > { %v3468_v49 = vpop.f32.mrf.mxu2  ;;  %v3617_v54 = vpop.f32.mrf.mxu3 }
 0x5e6   : > { %v3516_v17 = vadd.f32 %v3468_v49, %v3366_v37  ;;  %v3781_v59 = vpop.f32.mrf.mxu1 }
 0x5e8   : > { %v3665_v27 = vadd.f32 %v3617_v54, %v3516_v17 }
 0x5ea   : > { %v3814_v51 = vadd.f32 %v3766_v50, %v3665_v27  ;;  %v3336_v48 = vpop.f32.mrf.mxu0 }
 0x5ec   : > { %v3834_v4 = vadd.f32 %v6493_v63, %v3814_v51 }
 0x5ed   : > { %v3471_v44 = vpop.f32.mrf.mxu2  ;;  %v3620_v15 = vpop.f32.mrf.mxu3 }
 0x5ee   : > { %v3850_v18 = vmax.f32 %v3834_v4, 0.0  ;;  %v3517_v3 = vadd.f32 %v3471_v44, %v3367_v36  ;;  %v3784_v38 = vpop.f32.mrf.mxu1 }
 0x5f0   : > { %3866 = vst.msk [vmem:[%s4648_s15] sm:$0xff] %vm2480_vm1, %v3850_v18  ;;  %v3666_v24 = vadd.f32 %v3620_v15, %v3517_v3 }
 0x5f2   : > { %v3815_v16 = vadd.f32 %v3769_v55, %v3666_v24  ;;  %v3339_v11 = vpop.f32.mrf.mxu0 }
 0x5f3   : > { %v3373_v18 = vadd.f32 %v3339_v11, %v6427_v33 }
 0x5f4   : > { %v3835_v30 = vadd.f32 %v6493_v63, %v3815_v16 }
 0x5f5   : > { %v3474_v20 = vpop.f32.mrf.mxu2  ;;  %v3623_v58 = vpop.f32.mrf.mxu3 }
 0x5f6   : > { %v3851_v23 = vmax.f32 %v3835_v30, 0.0  ;;  %v3518_v50 = vadd.f32 %v3474_v20, %v3368_v29  ;;  %v3787_v37 = vpop.f32.mrf.mxu1 }
 0x5f8   : > { %3867 = vst.msk [vmem:[%s4648_s15 + $0x8] sm:$0xff] %vm2480_vm1, %v3851_v23  ;;  %v3667_v47 = vadd.f32 %v3623_v58, %v3518_v50 }
 0x5fa   : > { %v3816_v12 = vadd.f32 %v3772_v46, %v3667_v47  ;;  %v3342_v54 = vpop.f32.mrf.mxu0 }
 0x5fb   : > { %v3374_v58 = vadd.f32 %v3342_v54, %v6436_v42 }
 0x5fc   : > { %v3836_v6 = vadd.f32 %v6493_v63, %v3816_v12 }
 0x5fd   : > { %v3477_v31 = vpop.f32.mrf.mxu2  ;;  %v3626_v7 = vpop.f32.mrf.mxu3 }
 0x5fe   : > { %v3852_v34 = vmax.f32 %v3836_v6, 0.0  ;;  %v3519_v43 = vadd.f32 %v3477_v31, %v3369_v9  ;;  %v3790_v44 = vpop.f32.mrf.mxu1 }
 0x600   : > { %3868 = vst.msk [vmem:[%s4648_s15 + $0x10] sm:$0xff] %vm2480_vm1, %v3852_v34  ;;  %v3668_v0 = vadd.f32 %v3626_v7, %v3519_v43 }
 0x602   : > { %v3817_v55 = vadd.f32 %v3775_v56, %v3668_v0  ;;  %v3372_v56 = vadd.f32 %v3336_v48, %v6418_v13  ;;  %v3345_v3 = vpop.f32.mrf.mxu0 }
 0x603   : > { %v3375_v31 = vadd.f32 %v3345_v3, %v6445_v57 }
 0x604   : > { %v3837_v1 = vadd.f32 %v6493_v63, %v3817_v55 }
 0x605   : > { %v3480_v25 = vpop.f32.mrf.mxu2  ;;  %v3629_v19 = vpop.f32.mrf.mxu3 }
 0x606   : > { %v3853_v8 = vmax.f32 %v3837_v1, 0.0  ;;  %v3520_v26 = vadd.f32 %v3480_v25, %v3370_v60  ;;  %v3793_v20 = vpop.f32.mrf.mxu1 }
 0x608   : > { %3869 = vst.msk [vmem:[%s4648_s15 + $0x18] sm:$0xff] %vm2480_vm1, %v3853_v8  ;;  %v3669_v62 = vadd.f32 %v3629_v19, %v3520_v26 }
 0x60a   : > { %v3818_v46 = vadd.f32 %v3778_v40, %v3669_v62  ;;  %v3348_v47 = vpop.f32.mrf.mxu0 }
 0x60c   : > { %v3838_v22 = vadd.f32 %v6493_v63, %v3818_v46 }
 0x60d   : > { %v3483_v61 = vpop.f32.mrf.mxu2  ;;  %v3632_v45 = vpop.f32.mrf.mxu3 }
 0x60e   : > { %v3854_v52 = vmax.f32 %v3838_v22, 0.0  ;;  %v3521_v10 = vadd.f32 %v3483_v61, %v3371_v14  ;;  %v3796_v48 = vpop.f32.mrf.mxu1 }
 0x610   : > { %3870 = vst.msk [vmem:[%s4648_s15 + $0x20] sm:$0xff] %vm2480_vm1, %v3854_v52  ;;  %v3670_v49 = vadd.f32 %v3632_v45, %v3521_v10 }
 0x612   : > { %v3819_v17 = vadd.f32 %v3781_v59, %v3670_v49  ;;  %v3351_v55 = vpop.f32.mrf.mxu0 }
 0x613   : > { %v3377_v22 = vadd.f32 %v3351_v55, %v6462_v41 }
 0x614   : > { %v3839_v27 = vadd.f32 %v6493_v63, %v3819_v17 }
 0x615   : > { %v3486_v35 = vpop.f32.mrf.mxu2  ;;  %v3635_v5 = vpop.f32.mrf.mxu3 }
 0x616   : > { %v3855_v51 = vmax.f32 %v3839_v27, 0.0  ;;  %v3522_v36 = vadd.f32 %v3486_v35, %v3372_v56  ;;  %v3799_v11 = vpop.f32.mrf.mxu1 }
 0x618   : > { %3871 = vst.msk [vmem:[%s4648_s15 + $0x28] sm:$0xff] %vm2480_vm1, %v3855_v51  ;;  %v3671_v4 = vadd.f32 %v3635_v5, %v3522_v36 }
 0x61a   : > { %v3820_v15 = vadd.f32 %v3784_v38, %v3671_v4  ;;  %v3376_v38 = vadd.f32 %v3348_v47, %v6454_v28  ;;  %v3354_v46 = vpop.f32.mrf.mxu0 }
 0x61b   : > { %v3378_v17 = vadd.f32 %v3354_v46, %v6470_v21 }
 0x61c   : > { %v3840_v24 = vadd.f32 %v6493_v63, %v3820_v15 }
 0x61d   : > { %v3489_v40 = vpop.f32.mrf.mxu2  ;;  %v3638_v13 = vpop.f32.mrf.mxu3 }
 0x61e   : > { %v3856_v16 = vmax.f32 %v3840_v24, 0.0  ;;  %v3523_v29 = vadd.f32 %v3489_v40, %v3373_v18  ;;  %v3802_v49 = vpop.f32.mrf.mxu1 }
 0x620   : > { %3872 = vst.msk [vmem:[%s4648_s15 + $0x30] sm:$0xff] %vm2480_vm1, %v3856_v16  ;;  %v3672_v32 = vadd.f32 %v3638_v13, %v3523_v29 }
 0x622   : > { %v3821_v30 = vadd.f32 %v3787_v37, %v3672_v32  ;;  %v3357_v56 = vpop.f32.mrf.mxu0 }
 0x623   : > { %v3379_v15 = vadd.f32 %v3357_v56, %v6477_v53 }
 0x624   : > { %v3841_v23 = vadd.f32 %v6493_v63, %v3821_v30 }
 0x625   : > { %v3492_v50 = vpop.f32.mrf.mxu2  ;;  %v3641_v33 = vpop.f32.mrf.mxu3 }
 0x626   : > { %v3857_v12 = vmax.f32 %v3841_v23, 0.0  ;;  %v3524_v59 = vadd.f32 %v3492_v50, %v3374_v58 }
 0x628   : > { %3873 = vst.msk [vmem:[%s4648_s15 + $0x38] sm:$0xff] %vm2480_vm1, %v3857_v12  ;;  %v3673_v9 = vadd.f32 %v3641_v33, %v3524_v59 }
 0x62a   : > { %v3822_v6 = vadd.f32 %v3790_v44, %v3673_v9  ;;  %v3805_v44 = vpop.f32.mrf.mxu1  ;;  %v3360_v13 = vpop.f32.mrf.mxu0 }
 0x62b   : > { %v3380_v32 = vadd.f32 %v3360_v13, %v6482_v2 }
 0x62c   : > { %v3842_v7 = vadd.f32 %v6493_v63, %v3822_v6 }
 0x62d   : > { %v3495_v34 = vpop.f32.mrf.mxu2  ;;  %v3644_v42 = vpop.f32.mrf.mxu3 }
 0x62e   : > { %v3858_v43 = vmax.f32 %v3842_v7, 0.0  ;;  %v3525_v0 = vadd.f32 %v3495_v34, %v3375_v31 }
 0x630   : > { %3874 = vst.msk [vmem:[%s4648_s15 + $0x40] sm:$0xff] %vm2480_vm1, %v3858_v43  ;;  %v3674_v60 = vadd.f32 %v3644_v42, %v3525_v0 }
 0x632   : > { %v3823_v1 = vadd.f32 %v3793_v20, %v3674_v60  ;;  %v3808_v20 = vpop.f32.mrf.mxu1  ;;  %v3363_v47 = vpop.f32.mrf.mxu0 }
 0x633   : > { %v3381_v59 = vadd.f32 %v3363_v47, %v6487_v39 }
 0x634   : > { %v3843_v25 = vadd.f32 %v6493_v63, %v3823_v1 }
 0x635   : > { %v3498_v19 = vpop.f32.mrf.mxu2  ;;  %v3647_v57 = vpop.f32.mrf.mxu3 }
 0x636   : > { %v3859_v8 = vmax.f32 %v3843_v25, 0.0  ;;  %v3526_v26 = vadd.f32 %v3498_v19, %v3376_v38 }
 0x638   : > { %3875 = vst.msk [vmem:[%s4648_s15 + $0x48] sm:$0xff] %vm2480_vm1, %v3859_v8  ;;  %v3675_v62 = vadd.f32 %v3647_v57, %v3526_v26 }
 0x63a   : > { %v3824_v14 = vadd.f32 %v3796_v48, %v3675_v62  ;;  %v3811_v48 = vpop.f32.mrf.mxu1 }
 0x63c   : > { %v3844_v61 = vadd.f32 %v6493_v63, %v3824_v14 }
 0x63d   : > { %v3501_v45 = vpop.f32.mrf.mxu2  ;;  %v3650_v28 = vpop.f32.mrf.mxu3 }
 0x63e   : > { %v3860_v52 = vmax.f32 %v3844_v61, 0.0  ;;  %v3527_v10 = vadd.f32 %v3501_v45, %v3377_v22 }
 0x640   : > { %3876 = vst.msk [vmem:[%s4648_s15 + $0x50] sm:$0xff] %vm2480_vm1, %v3860_v52  ;;  %v3676_v37 = vadd.f32 %v3650_v28, %v3527_v10 }
 0x642   : > { %v3825_v54 = vadd.f32 %v3799_v11, %v3676_v37 }
 0x644   : > { %v3845_v27 = vadd.f32 %v6493_v63, %v3825_v54 }
 0x645   : > { %v3504_v35 = vpop.f32.mrf.mxu2  ;;  %v3653_v41 = vpop.f32.mrf.mxu3 }
 0x646   : > { %v3861_v5 = vmax.f32 %v3845_v27, 0.0  ;;  %v3528_v51 = vadd.f32 %v3504_v35, %v3378_v17 }
 0x648   : > { %3877 = vst.msk [vmem:[%s4648_s15 + $0x58] sm:$0xff] %vm2480_vm1, %v3861_v5  ;;  %v3677_v36 = vadd.f32 %v3653_v41, %v3528_v51 }
 0x64a   : > { %v3826_v4 = vadd.f32 %v3802_v49, %v3677_v36 }
 0x64c   : > { %v3846_v18 = vadd.f32 %v6493_v63, %v3826_v4 }
 0x64d   : > { %v3507_v3 = vpop.f32.mrf.mxu2  ;;  %v3656_v21 = vpop.f32.mrf.mxu3 }
 0x64e   : > { %v3862_v24 = vmax.f32 %v3846_v18, 0.0  ;;  %v3529_v40 = vadd.f32 %v3507_v3, %v3379_v15 }
 0x650   : > { %3878 = vst.msk [vmem:[%s4648_s15 + $0x60] sm:$0xff] %vm2480_vm1, %v3862_v24  ;;  %v3678_v16 = vadd.f32 %v3656_v21, %v3529_v40 }
 0x652   : > { %v3827_v29 = vadd.f32 %v3805_v44, %v3678_v16 }
 0x654   : > { %v3847_v30 = vadd.f32 %v6493_v63, %v3827_v29 }
 0x655   : > { %v3510_v58 = vpop.f32.mrf.mxu2  ;;  %v3659_v53 = vpop.f32.mrf.mxu3 }
 0x656   : > { %v3863_v23 = vmax.f32 %v3847_v30, 0.0  ;;  %v3530_v50 = vadd.f32 %v3510_v58, %v3380_v32 }
 0x658   : > { %3879 = vst.msk [vmem:[%s4648_s15 + $0x68] sm:$0xff] %vm2480_vm1, %v3863_v23  ;;  %v3679_v33 = vadd.f32 %v3659_v53, %v3530_v50 }
 0x65a   : > { %v3828_v12 = vadd.f32 %v3808_v20, %v3679_v33 }
 0x65c   : > { %v3848_v9 = vadd.f32 %v6493_v63, %v3828_v12 }
 0x65d   : > { %v3513_v6 = vpop.f32.mrf.mxu2  ;;  %v3662_v2 = vpop.f32.mrf.mxu3 }
 0x65e   : > { %v3864_v31 = vmax.f32 %v3848_v9, 0.0  ;;  %v3531_v7 = vadd.f32 %v3513_v6, %v3381_v59 }
 0x660   : > { %3880 = vst.msk [vmem:[%s4648_s15 + $0x70] sm:$0xff] %vm2480_vm1, %v3864_v31  ;;  %v3680_v34 = vadd.f32 %v3662_v2, %v3531_v7 }
 0x662   : > { %v3829_v42 = vadd.f32 %v3811_v48, %v3680_v34 }
 0x664   : > { %v3849_v43 = vadd.f32 %v6493_v63, %v3829_v42 }
 0x666   : > { %v3865_v0 = vmax.f32 %v3849_v43, 0.0 }
 0x668   : > { %3881 = vst.msk [vmem:[%s4648_s15 + $0x78] sm:$0xff] %vm2480_vm1, %v3865_v0 }
 0x669 PF: > { %s15_s22 = sadd.s32 1, %s4551_s22   ;;  %s6591_s18 = smov %s4543_s20 }
 0x66a   : > { %p12_p10 = scmp.ge.s32.totalorder %s15_s22, 6   ;;  %s6592_s19 = smov %s4547_s21 }
 0x66b   : > { %s6593_s20 = smov %s6596_s23  ;;  %s6594_s21 = smov %s6600_s24 }
 0x66c   :  { %14 = sbr.rel (!%p12_p10) target bundleno = 3 (0x3), region = 85 }

</bundles_post_ra>
